<compile_context>
chip_gen: v5e
topology: v5e:2x2
jax: 0.10.0
libtpu: 0.0.40
codegen_flags: <defaults>
</compile_context>

<pallas_src>
import functools

import jax
import jax.numpy as jnp
from jax.experimental import pallas as pl
from jax.experimental.pallas import tpu as pltpu

LANES = 128  # lane-padded output width (saturates v5e MXU; half of v6e/v7x)


# ----------------------------------------------------------------------------
# Activation helpers (f32 math inside the kernel)
# ----------------------------------------------------------------------------
def _apply_act(x, act):
    if act == "leaky":
        return jnp.where(x > 0, x, 0.2 * x)
    if act == "sigmoid":
        # Numerically stable sigmoid; exp issues on the EUP slot.
        z = jnp.exp(-jnp.abs(x))
        return jnp.where(x >= 0, 1.0 / (1.0 + z), z / (1.0 + z))
    return x


# ----------------------------------------------------------------------------
# Pallas kernels: fused GEMM (+ BatchNorm) + activation, lane-dense output
# ----------------------------------------------------------------------------
def _gemm_act_kernel(p_ref, w_ref, o_ref, *, act):
    # bf16 x bf16 -> f32 on the MXU.
    acc = jnp.dot(p_ref[...], w_ref[...], preferred_element_type=jnp.float32)
    o_ref[...] = _apply_act(acc, act).astype(o_ref.dtype)


def _gemm_bn_act_kernel(p_ref, w_ref, g_ref, b_ref, o_ref, *, act):
    acc = jnp.dot(p_ref[...], w_ref[...], preferred_element_type=jnp.float32)
    # Training-mode BatchNorm2d: per-channel stats over N*OH*OW rows, biased
    # variance, eps=1e-5, affine gamma/beta.  Padded lanes stay exactly zero.
    mean = jnp.mean(acc, axis=0, keepdims=True)
    var = jnp.mean(jnp.square(acc - mean), axis=0, keepdims=True)
    acc = (acc - mean) * jax.lax.rsqrt(var + 1e-5)
    acc = acc * g_ref[...] + b_ref[...]
    o_ref[...] = _apply_act(acc, act).astype(o_ref.dtype)


def gemm_act(patches, w_pad, *, act, out_dtype, tile_m=1024):
    """No-BN layer: M-tiled, 'parallel' grid axis (activation is elementwise)."""
    M, K = patches.shape
    Npad = w_pad.shape[1]
    if M % tile_m != 0:
        tile_m = M
    grid_m = M // tile_m
    kernel = functools.partial(_gemm_act_kernel, act=act)
    return pl.pallas_call(
        kernel,
        out_shape=jax.ShapeDtypeStruct((M, Npad), out_dtype),
        grid=(grid_m,),
        in_specs=[
            pl.BlockSpec((tile_m, K), lambda i: (i, 0)),
            pl.BlockSpec((K, Npad), lambda i: (0, 0)),
        ],
        out_specs=pl.BlockSpec((tile_m, Npad), lambda i: (i, 0)),
        compiler_params=pltpu.CompilerParams(
            dimension_semantics=("parallel",),
            vmem_limit_bytes=32 * 1024 * 1024,
        ),
    )(patches, w_pad)


def gemm_bn_act(patches, w_pad, g_pad, b_pad, *, act, out_dtype):
    """BN layer: single block so batch statistics cover the full M dimension.

    # TODO(synk): for large batch, split into an M-tiled GEMM pass plus a small
    # BN/act pass (or a two-pass accumulator scheme) instead of one full-M block.
    """
    M, K = patches.shape
    Npad = w_pad.shape[1]
    kernel = functools.partial(_gemm_bn_act_kernel, act=act)
    return pl.pallas_call(
        kernel,
        out_shape=jax.ShapeDtypeStruct((M, Npad), out_dtype),
        grid=(1,),
        in_specs=[
            pl.BlockSpec((M, K), lambda i: (0, 0)),
            pl.BlockSpec((K, Npad), lambda i: (0, 0)),
            pl.BlockSpec((1, Npad), lambda i: (0, 0)),
            pl.BlockSpec((1, Npad), lambda i: (0, 0)),
        ],
        out_specs=pl.BlockSpec((M, Npad), lambda i: (0, 0)),
        compiler_params=pltpu.CompilerParams(
            dimension_semantics=("arbitrary",),
            vmem_limit_bytes=32 * 1024 * 1024,
        ),
    )(patches, w_pad, g_pad, b_pad)


# ----------------------------------------------------------------------------
# Plain-JAX glue: im2col patch extraction + lane padding (layout plumbing)
# ----------------------------------------------------------------------------
def im2col(x_nhwc, kh, kw, stride, pad):
    N, H, W, C = x_nhwc.shape
    xp = jnp.pad(x_nhwc, ((0, 0), (pad, pad), (pad, pad), (0, 0)))
    OH = (H + 2 * pad - kh) // stride + 1
    OW = (W + 2 * pad - kw) // stride + 1
    cols = []
    for i in range(kh):
        for j in range(kw):
            cols.append(xp[:, i:i + stride * OH:stride, j:j + stride * OW:stride, :])
    patches = jnp.stack(cols, axis=3).reshape(N * OH * OW, kh * kw * C)
    return patches.astype(jnp.bfloat16), OH, OW


def _pad_lanes(m2d, lanes=LANES):
    rows, cols = m2d.shape
    out = jnp.zeros((rows, lanes), m2d.dtype)
    return out.at[:, :cols].set(m2d)


def conv_block(x_nhwc, w_oihw, gamma=None, beta=None, *, stride, pad, act,
               out_dtype=jnp.bfloat16):
    """One Conv2d(k=4, bias=False) [+ BN] [+ activation] layer."""
    Cout, Cin, KH, KW = w_oihw.shape
    N = x_nhwc.shape[0]
    patches, OH, OW = im2col(x_nhwc, KH, KW, stride, pad)
    # Reorder weight to match the (kh, kw, cin) flattening of the patches and
    # zero-pad the output-channel axis to 128 lanes.
    w_mat = jnp.transpose(w_oihw, (2, 3, 1, 0)).reshape(KH * KW * Cin, Cout)
    w_pad = _pad_lanes(w_mat.astype(jnp.bfloat16))
    if gamma is None:
        out = gemm_act(patches, w_pad, act=act, out_dtype=out_dtype)
    else:
        g_pad = _pad_lanes(gamma.astype(jnp.float32))
        b_pad = _pad_lanes(beta.astype(jnp.float32))
        out = gemm_bn_act(patches, w_pad, g_pad, b_pad, act=act, out_dtype=out_dtype)
    # Slice away the padded lanes; this fuses into the next layer's im2col.
    return out[:, :Cout].reshape(N, OH, OW, Cout)


# ----------------------------------------------------------------------------
# The full _netlocalD forward pass
# ----------------------------------------------------------------------------
def init_params(key, nc=3, ndf=8):
    """Deterministic DCGAN-style init (conv ~ N(0, 0.02), BN gamma=1, beta=0)."""
    ks = jax.random.split(key, 5)

    def conv_w(k, cout, cin):
        return (0.02 * jax.random.normal(k, (cout, cin, 4, 4))).astype(jnp.float32)

    return {
        "w1": conv_w(ks[0], ndf, nc),
        "w2": conv_w(ks[1], ndf * 2, ndf),
        "g2": jnp.ones((1, ndf * 2), jnp.float32),
        "b2": jnp.zeros((1, ndf * 2), jnp.float32),
        "w3": conv_w(ks[2], ndf * 4, ndf * 2),
        "g3": jnp.ones((1, ndf * 4), jnp.float32),
        "b3": jnp.zeros((1, ndf * 4), jnp.float32),
        "w4": conv_w(ks[3], ndf * 8, ndf * 4),
        "g4": jnp.ones((1, ndf * 8), jnp.float32),
        "b4": jnp.zeros((1, ndf * 8), jnp.float32),
        "w5": conv_w(ks[4], 1, ndf * 8),
    }


def netlocalD_forward(params, x_nchw):
    # TODO(synk): the ngpu>1 nn.parallel.data_parallel branch is a multi-GPU
    # dispatch detail with no single-kernel equivalent; single-device path only.
    # TODO(synk): BatchNorm running_mean/running_var buffers are not tracked;
    # this reproduces the training-mode forward only.
    # TODO(synk): full five-layer fusion with VMEM-resident activations and
    # in-kernel im2col was not done: it requires Mosaic strided window reads
    # plus lane-crossing reshapes whose lowering is not guaranteed; instead the
    # wrapper-side im2col is XLA-fused and feeds bf16 patches (half the bytes).
    x = jnp.transpose(x_nchw, (0, 2, 3, 1)).astype(jnp.float32)  # NCHW -> NHWC

    # Conv(nc -> ndf, 4, 2, 1) + LeakyReLU(0.2)            (M-tiled, parallel)
    x = conv_block(x, params["w1"], stride=2, pad=1, act="leaky")
    # Conv(ndf -> 2ndf, 4, 2, 1) + BN + LeakyReLU
    x = conv_block(x, params["w2"], params["g2"], params["b2"],
                   stride=2, pad=1, act="leaky")
    # Conv(2ndf -> 4ndf, 4, 2, 1) + BN + LeakyReLU
    x = conv_block(x, params["w3"], params["g3"], params["b3"],
                   stride=2, pad=1, act="leaky")
    # Conv(4ndf -> 8ndf, 4, 2, 1) + BN + LeakyReLU
    x = conv_block(x, params["w4"], params["g4"], params["b4"],
                   stride=2, pad=1, act="leaky")
    # Conv(8ndf -> 1, 4, 1, 0) + Sigmoid
    x = conv_block(x, params["w5"], stride=1, pad=0, act="sigmoid",
                   out_dtype=jnp.float32)

    # output.view(-1)
    return x.reshape(-1)


if __name__ == "__main__":
    key = jax.random.PRNGKey(0)
    k_param, k_x = jax.random.split(key)

    NC, NDF, BATCH, SPATIAL = 3, 8, 2, 64
    params = init_params(k_param, nc=NC, ndf=NDF)
    x = jax.random.normal(k_x, (BATCH, NC, SPATIAL, SPATIAL), dtype=jnp.float32)

    forward = jax.jit(netlocalD_forward)
    out = jax.block_until_ready(forward(params, x))

    assert out.shape == (BATCH,), out.shape
    assert bool(jnp.all(jnp.isfinite(out)))
    assert bool(jnp.all((out >= 0.0) & (out <= 1.0)))  # sigmoid range
    print("KERNEL_OK")
</pallas_src>

<mosaic_0001>
module attributes {stable_mosaic.version = 11 : i64} {
  func.func @_gemm_act_kernel(%arg0: i32, %arg1: memref<1024x48xbf16, #tpu.memory_space<vmem>>, %arg2: memref<48x128xbf16, #tpu.memory_space<vmem>>, %arg3: memref<1024x128xbf16, #tpu.memory_space<vmem>>) attributes {dimension_semantics = [#tpu.dimension_semantics<parallel>], iteration_bounds = array<i64: 2>, scalar_prefetch = 0 : i64, scratch_operands = 0 : i64, tpu.core_type = #tpu.core_type<tc>, window_params = [{transform_indices = @transform_0, window_bounds = array<i64: 1024, 48>}, {pipeline_mode = #tpu.pipeline_mode<synchronous>, transform_indices = @transform_1, window_bounds = array<i64: 48, 128>}, {transform_indices = @transform_2, window_bounds = array<i64: 1024, 128>}]} {
    %c0 = arith.constant 0 : index
    %c0_0 = arith.constant 0 : index
    %0 = vector.load %arg1[%c0, %c0_0] : memref<1024x48xbf16, #tpu.memory_space<vmem>>, vector<1024x48xbf16>
    %c0_1 = arith.constant 0 : index
    %c0_2 = arith.constant 0 : index
    %1 = vector.load %arg2[%c0_1, %c0_2] : memref<48x128xbf16, #tpu.memory_space<vmem>>, vector<48x128xbf16>
    %cst = arith.constant dense<0.000000e+00> : vector<1024x128xf32>
    %2 = tpu.matmul %0, %1, %cst {dimension_numbers = #tpu.dot_dimension_numbers<[1], [0], [0], [1], [0, 0, 1, 1], [], []>} : vector<1024x48xbf16>, vector<48x128xbf16>, vector<1024x128xf32> -> vector<1024x128xf32>
    %cst_3 = arith.constant 0.000000e+00 : f32
    %3 = vector.broadcast %cst_3 : f32 to vector<1024x128xf32>
    %4 = arith.cmpf ogt, %2, %3 : vector<1024x128xf32>
    %cst_4 = arith.constant 2.000000e-01 : f32
    %5 = vector.broadcast %cst_4 : f32 to vector<1024x128xf32>
    %6 = arith.mulf %5, %2 : vector<1024x128xf32>
    %7 = arith.select %4, %2, %6 : vector<1024x128xi1>, vector<1024x128xf32>
    %8 = arith.truncf %7 : vector<1024x128xf32> to vector<1024x128xbf16>
    %c0_5 = arith.constant 0 : index
    %c0_6 = arith.constant 0 : index
    %9 = vector.load %arg3[%c0_5, %c0_6] : memref<1024x128xbf16, #tpu.memory_space<vmem>>, vector<1024x128xbf16>
    tpu.vector_store %arg3[%c0_5, %c0_6], %8 {strides = array<i32>} : memref<1024x128xbf16, #tpu.memory_space<vmem>>, vector<1024x128xbf16>,
    return
  }
  func.func @transform_0(%arg0: i32) -> (i32, i32) {
    %c0_i32 = arith.constant 0 : i32
    %c0_i32_0 = arith.constant 0 : i32
    return %arg0, %c0_i32 : i32, i32
  }
  func.func @transform_1(%arg0: i32) -> (i32, i32) {
    %c0_i32 = arith.constant 0 : i32
    %c0_i32_0 = arith.constant 0 : i32
    %c0_i32_1 = arith.constant 0 : i32
    return %c0_i32, %c0_i32_0 : i32, i32
  }
  func.func @transform_2(%arg0: i32) -> (i32, i32) {
    %c0_i32 = arith.constant 0 : i32
    %c0_i32_0 = arith.constant 0 : i32
    return %arg0, %c0_i32 : i32, i32
  }
}

module attributes {stable_mosaic.version = 11 : i64} {
  func.func @_gemm_bn_act_kernel(%arg0: i32, %arg1: memref<512x128xbf16, #tpu.memory_space<vmem>>, %arg2: memref<128x128xbf16, #tpu.memory_space<vmem>>, %arg3: memref<1x128xf32, #tpu.memory_space<vmem>>, %arg4: memref<1x128xf32, #tpu.memory_space<vmem>>, %arg5: memref<512x128xbf16, #tpu.memory_space<vmem>>) attributes {dimension_semantics = [#tpu.dimension_semantics<arbitrary>], iteration_bounds = array<i64: 1>, scalar_prefetch = 0 : i64, scratch_operands = 0 : i64, tpu.core_type = #tpu.core_type<tc>, window_params = [{pipeline_mode = #tpu.pipeline_mode<synchronous>, transform_indices = @transform_0, window_bounds = array<i64: 512, 128>}, {pipeline_mode = #tpu.pipeline_mode<synchronous>, transform_indices = @transform_1, window_bounds = array<i64: 128, 128>}, {pipeline_mode = #tpu.pipeline_mode<synchronous>, transform_indices = @transform_2, window_bounds = array<i64: 1, 128>}, {pipeline_mode = #tpu.pipeline_mode<synchronous>, transform_indices = @transform_3, window_bounds = array<i64: 1, 128>}, {pipeline_mode = #tpu.pipeline_mode<synchronous>, transform_indices = @transform_4, window_bounds = array<i64: 512, 128>}]} {
    %c0 = arith.constant 0 : index
    %c0_0 = arith.constant 0 : index
    %0 = vector.load %arg1[%c0, %c0_0] : memref<512x128xbf16, #tpu.memory_space<vmem>>, vector<512x128xbf16>
    %c0_1 = arith.constant 0 : index
    %c0_2 = arith.constant 0 : index
    %1 = vector.load %arg2[%c0_1, %c0_2] : memref<128x128xbf16, #tpu.memory_space<vmem>>, vector<128x128xbf16>
    %cst = arith.constant dense<0.000000e+00> : vector<512x128xf32>
    %2 = tpu.matmul %0, %1, %cst {dimension_numbers = #tpu.dot_dimension_numbers<[1], [0], [0], [1], [0, 0, 1, 1], [], []>} : vector<512x128xbf16>, vector<128x128xbf16>, vector<512x128xf32> -> vector<512x128xf32>
    %cst_3 = arith.constant dense<0.000000e+00> : vector<128xf32>
    %3 = vector.multi_reduction <add>, %2, %cst_3 [0] : vector<512x128xf32> to vector<128xf32>
    %4 = vector.shape_cast %3 : vector<128xf32> to vector<1x128xf32>
    %cst_4 = arith.constant 5.120000e+02 : f32
    %5 = vector.broadcast %cst_4 : f32 to vector<1x128xf32>
    %6 = arith.divf %4, %5 : vector<1x128xf32>
    %7 = vector.broadcast %6 : vector<1x128xf32> to vector<512x128xf32>
    %8 = arith.subf %2, %7 : vector<512x128xf32>
    %9 = arith.mulf %8, %8 : vector<512x128xf32>
    %cst_5 = arith.constant dense<0.000000e+00> : vector<128xf32>
    %10 = vector.multi_reduction <add>, %9, %cst_5 [0] : vector<512x128xf32> to vector<128xf32>
    %11 = vector.shape_cast %10 : vector<128xf32> to vector<1x128xf32>
    %cst_6 = arith.constant 5.120000e+02 : f32
    %12 = vector.broadcast %cst_6 : f32 to vector<1x128xf32>
    %13 = arith.divf %11, %12 : vector<1x128xf32>
    %14 = vector.broadcast %6 : vector<1x128xf32> to vector<512x128xf32>
    %15 = arith.subf %2, %14 : vector<512x128xf32>
    %cst_7 = arith.constant 9.99999974E-6 : f32
    %16 = vector.broadcast %cst_7 : f32 to vector<1x128xf32>
    %17 = arith.addf %13, %16 : vector<1x128xf32>
    %18 = math.rsqrt %17 : vector<1x128xf32>
    %19 = vector.broadcast %18 : vector<1x128xf32> to vector<512x128xf32>
    %20 = arith.mulf %15, %19 : vector<512x128xf32>
    %c0_8 = arith.constant 0 : index
    %c0_9 = arith.constant 0 : index
    %21 = vector.load %arg3[%c0_8, %c0_9] : memref<1x128xf32, #tpu.memory_space<vmem>>, vector<1x128xf32>
    %22 = vector.broadcast %21 : vector<1x128xf32> to vector<512x128xf32>
    %23 = arith.mulf %20, %22 : vector<512x128xf32>
    %c0_10 = arith.constant 0 : index
    %c0_11 = arith.constant 0 : index
    %24 = vector.load %arg4[%c0_10, %c0_11] : memref<1x128xf32, #tpu.memory_space<vmem>>, vector<1x128xf32>
    %25 = vector.broadcast %24 : vector<1x128xf32> to vector<512x128xf32>
    %26 = arith.addf %23, %25 : vector<512x128xf32>
    %cst_12 = arith.constant 0.000000e+00 : f32
    %27 = vector.broadcast %cst_12 : f32 to vector<512x128xf32>
    %28 = arith.cmpf ogt, %26, %27 : vector<512x128xf32>
    %cst_13 = arith.constant 2.000000e-01 : f32
    %29 = vector.broadcast %cst_13 : f32 to vector<512x128xf32>
    %30 = arith.mulf %29, %26 : vector<512x128xf32>
    %31 = arith.select %28, %26, %30 : vector<512x128xi1>, vector<512x128xf32>
    %32 = arith.truncf %31 : vector<512x128xf32> to vector<512x128xbf16>
    %c0_14 = arith.constant 0 : index
    %c0_15 = arith.constant 0 : index
    %33 = vector.load %arg5[%c0_14, %c0_15] : memref<512x128xbf16, #tpu.memory_space<vmem>>, vector<512x128xbf16>
    tpu.vector_store %arg5[%c0_14, %c0_15], %32 {strides = array<i32>} : memref<512x128xbf16, #tpu.memory_space<vmem>>, vector<512x128xbf16>,
    return
  }
  func.func @transform_0(%arg0: i32) -> (i32, i32) {
    %c0_i32 = arith.constant 0 : i32
    %c0_i32_0 = arith.constant 0 : i32
    %c0_i32_1 = arith.constant 0 : i32
    return %c0_i32, %c0_i32_0 : i32, i32
  }
  func.func @transform_1(%arg0: i32) -> (i32, i32) {
    %c0_i32 = arith.constant 0 : i32
    %c0_i32_0 = arith.constant 0 : i32
    %c0_i32_1 = arith.constant 0 : i32
    return %c0_i32, %c0_i32_0 : i32, i32
  }
  func.func @transform_2(%arg0: i32) -> (i32, i32) {
    %c0_i32 = arith.constant 0 : i32
    %c0_i32_0 = arith.constant 0 : i32
    %c0_i32_1 = arith.constant 0 : i32
    return %c0_i32, %c0_i32_0 : i32, i32
  }
  func.func @transform_3(%arg0: i32) -> (i32, i32) {
    %c0_i32 = arith.constant 0 : i32
    %c0_i32_0 = arith.constant 0 : i32
    %c0_i32_1 = arith.constant 0 : i32
    return %c0_i32, %c0_i32_0 : i32, i32
  }
  func.func @transform_4(%arg0: i32) -> (i32, i32) {
    %c0_i32 = arith.constant 0 : i32
    %c0_i32_0 = arith.constant 0 : i32
    %c0_i32_1 = arith.constant 0 : i32
    return %c0_i32, %c0_i32_0 : i32, i32
  }
}

module attributes {stable_mosaic.version = 11 : i64} {
  func.func @_gemm_bn_act_kernel(%arg0: i32, %arg1: memref<128x256xbf16, #tpu.memory_space<vmem>>, %arg2: memref<256x128xbf16, #tpu.memory_space<vmem>>, %arg3: memref<1x128xf32, #tpu.memory_space<vmem>>, %arg4: memref<1x128xf32, #tpu.memory_space<vmem>>, %arg5: memref<128x128xbf16, #tpu.memory_space<vmem>>) attributes {dimension_semantics = [#tpu.dimension_semantics<arbitrary>], iteration_bounds = array<i64: 1>, scalar_prefetch = 0 : i64, scratch_operands = 0 : i64, tpu.core_type = #tpu.core_type<tc>, window_params = [{pipeline_mode = #tpu.pipeline_mode<synchronous>, transform_indices = @transform_0, window_bounds = array<i64: 128, 256>}, {pipeline_mode = #tpu.pipeline_mode<synchronous>, transform_indices = @transform_1, window_bounds = array<i64: 256, 128>}, {pipeline_mode = #tpu.pipeline_mode<synchronous>, transform_indices = @transform_2, window_bounds = array<i64: 1, 128>}, {pipeline_mode = #tpu.pipeline_mode<synchronous>, transform_indices = @transform_3, window_bounds = array<i64: 1, 128>}, {pipeline_mode = #tpu.pipeline_mode<synchronous>, transform_indices = @transform_4, window_bounds = array<i64: 128, 128>}]} {
    %c0 = arith.constant 0 : index
    %c0_0 = arith.constant 0 : index
    %0 = vector.load %arg1[%c0, %c0_0] : memref<128x256xbf16, #tpu.memory_space<vmem>>, vector<128x256xbf16>
    %c0_1 = arith.constant 0 : index
    %c0_2 = arith.constant 0 : index
    %1 = vector.load %arg2[%c0_1, %c0_2] : memref<256x128xbf16, #tpu.memory_space<vmem>>, vector<256x128xbf16>
    %cst = arith.constant dense<0.000000e+00> : vector<128x128xf32>
    %2 = tpu.matmul %0, %1, %cst {dimension_numbers = #tpu.dot_dimension_numbers<[1], [0], [0], [1], [0, 0, 1, 1], [], []>} : vector<128x256xbf16>, vector<256x128xbf16>, vector<128x128xf32> -> vector<128x128xf32>
    %cst_3 = arith.constant dense<0.000000e+00> : vector<128xf32>
    %3 = vector.multi_reduction <add>, %2, %cst_3 [0] : vector<128x128xf32> to vector<128xf32>
    %4 = vector.shape_cast %3 : vector<128xf32> to vector<1x128xf32>
    %cst_4 = arith.constant 1.280000e+02 : f32
    %5 = vector.broadcast %cst_4 : f32 to vector<1x128xf32>
    %6 = arith.divf %4, %5 : vector<1x128xf32>
    %7 = vector.broadcast %6 : vector<1x128xf32> to vector<128x128xf32>
    %8 = arith.subf %2, %7 : vector<128x128xf32>
    %9 = arith.mulf %8, %8 : vector<128x128xf32>
    %cst_5 = arith.constant dense<0.000000e+00> : vector<128xf32>
    %10 = vector.multi_reduction <add>, %9, %cst_5 [0] : vector<128x128xf32> to vector<128xf32>
    %11 = vector.shape_cast %10 : vector<128xf32> to vector<1x128xf32>
    %cst_6 = arith.constant 1.280000e+02 : f32
    %12 = vector.broadcast %cst_6 : f32 to vector<1x128xf32>
    %13 = arith.divf %11, %12 : vector<1x128xf32>
    %14 = vector.broadcast %6 : vector<1x128xf32> to vector<128x128xf32>
    %15 = arith.subf %2, %14 : vector<128x128xf32>
    %cst_7 = arith.constant 9.99999974E-6 : f32
    %16 = vector.broadcast %cst_7 : f32 to vector<1x128xf32>
    %17 = arith.addf %13, %16 : vector<1x128xf32>
    %18 = math.rsqrt %17 : vector<1x128xf32>
    %19 = vector.broadcast %18 : vector<1x128xf32> to vector<128x128xf32>
    %20 = arith.mulf %15, %19 : vector<128x128xf32>
    %c0_8 = arith.constant 0 : index
    %c0_9 = arith.constant 0 : index
    %21 = vector.load %arg3[%c0_8, %c0_9] : memref<1x128xf32, #tpu.memory_space<vmem>>, vector<1x128xf32>
    %22 = vector.broadcast %21 : vector<1x128xf32> to vector<128x128xf32>
    %23 = arith.mulf %20, %22 : vector<128x128xf32>
    %c0_10 = arith.constant 0 : index
    %c0_11 = arith.constant 0 : index
    %24 = vector.load %arg4[%c0_10, %c0_11] : memref<1x128xf32, #tpu.memory_space<vmem>>, vector<1x128xf32>
    %25 = vector.broadcast %24 : vector<1x128xf32> to vector<128x128xf32>
    %26 = arith.addf %23, %25 : vector<128x128xf32>
    %cst_12 = arith.constant 0.000000e+00 : f32
    %27 = vector.broadcast %cst_12 : f32 to vector<128x128xf32>
    %28 = arith.cmpf ogt, %26, %27 : vector<128x128xf32>
    %cst_13 = arith.constant 2.000000e-01 : f32
    %29 = vector.broadcast %cst_13 : f32 to vector<128x128xf32>
    %30 = arith.mulf %29, %26 : vector<128x128xf32>
    %31 = arith.select %28, %26, %30 : vector<128x128xi1>, vector<128x128xf32>
    %32 = arith.truncf %31 : vector<128x128xf32> to vector<128x128xbf16>
    %c0_14 = arith.constant 0 : index
    %c0_15 = arith.constant 0 : index
    %33 = vector.load %arg5[%c0_14, %c0_15] : memref<128x128xbf16, #tpu.memory_space<vmem>>, vector<128x128xbf16>
    tpu.vector_store %arg5[%c0_14, %c0_15], %32 {strides = array<i32>} : memref<128x128xbf16, #tpu.memory_space<vmem>>, vector<128x128xbf16>,
    return
  }
  func.func @transform_0(%arg0: i32) -> (i32, i32) {
    %c0_i32 = arith.constant 0 : i32
    %c0_i32_0 = arith.constant 0 : i32
    %c0_i32_1 = arith.constant 0 : i32
    return %c0_i32, %c0_i32_0 : i32, i32
  }
  func.func @transform_1(%arg0: i32) -> (i32, i32) {
    %c0_i32 = arith.constant 0 : i32
    %c0_i32_0 = arith.constant 0 : i32
    %c0_i32_1 = arith.constant 0 : i32
    return %c0_i32, %c0_i32_0 : i32, i32
  }
  func.func @transform_2(%arg0: i32) -> (i32, i32) {
    %c0_i32 = arith.constant 0 : i32
    %c0_i32_0 = arith.constant 0 : i32
    %c0_i32_1 = arith.constant 0 : i32
    return %c0_i32, %c0_i32_0 : i32, i32
  }
  func.func @transform_3(%arg0: i32) -> (i32, i32) {
    %c0_i32 = arith.constant 0 : i32
    %c0_i32_0 = arith.constant 0 : i32
    %c0_i32_1 = arith.constant 0 : i32
    return %c0_i32, %c0_i32_0 : i32, i32
  }
  func.func @transform_4(%arg0: i32) -> (i32, i32) {
    %c0_i32 = arith.constant 0 : i32
    %c0_i32_0 = arith.constant 0 : i32
    %c0_i32_1 = arith.constant 0 : i32
    return %c0_i32, %c0_i32_0 : i32, i32
  }
}

module attributes {stable_mosaic.version = 11 : i64} {
  func.func @_gemm_bn_act_kernel(%arg0: i32, %arg1: memref<32x512xbf16, #tpu.memory_space<vmem>>, %arg2: memref<512x128xbf16, #tpu.memory_space<vmem>>, %arg3: memref<1x128xf32, #tpu.memory_space<vmem>>, %arg4: memref<1x128xf32, #tpu.memory_space<vmem>>, %arg5: memref<32x128xbf16, #tpu.memory_space<vmem>>) attributes {dimension_semantics = [#tpu.dimension_semantics<arbitrary>], iteration_bounds = array<i64: 1>, scalar_prefetch = 0 : i64, scratch_operands = 0 : i64, tpu.core_type = #tpu.core_type<tc>, window_params = [{pipeline_mode = #tpu.pipeline_mode<synchronous>, transform_indices = @transform_0, window_bounds = array<i64: 32, 512>}, {pipeline_mode = #tpu.pipeline_mode<synchronous>, transform_indices = @transform_1, window_bounds = array<i64: 512, 128>}, {pipeline_mode = #tpu.pipeline_mode<synchronous>, transform_indices = @transform_2, window_bounds = array<i64: 1, 128>}, {pipeline_mode = #tpu.pipeline_mode<synchronous>, transform_indices = @transform_3, window_bounds = array<i64: 1, 128>}, {pipeline_mode = #tpu.pipeline_mode<synchronous>, transform_indices = @transform_4, window_bounds = array<i64: 32, 128>}]} {
    %c0 = arith.constant 0 : index
    %c0_0 = arith.constant 0 : index
    %0 = vector.load %arg1[%c0, %c0_0] : memref<32x512xbf16, #tpu.memory_space<vmem>>, vector<32x512xbf16>
    %c0_1 = arith.constant 0 : index
    %c0_2 = arith.constant 0 : index
    %1 = vector.load %arg2[%c0_1, %c0_2] : memref<512x128xbf16, #tpu.memory_space<vmem>>, vector<512x128xbf16>
    %cst = arith.constant dense<0.000000e+00> : vector<32x128xf32>
    %2 = tpu.matmul %0, %1, %cst {dimension_numbers = #tpu.dot_dimension_numbers<[1], [0], [0], [1], [0, 0, 1, 1], [], []>} : vector<32x512xbf16>, vector<512x128xbf16>, vector<32x128xf32> -> vector<32x128xf32>
    %cst_3 = arith.constant dense<0.000000e+00> : vector<128xf32>
    %3 = vector.multi_reduction <add>, %2, %cst_3 [0] : vector<32x128xf32> to vector<128xf32>
    %4 = vector.shape_cast %3 : vector<128xf32> to vector<1x128xf32>
    %cst_4 = arith.constant 3.200000e+01 : f32
    %5 = vector.broadcast %cst_4 : f32 to vector<1x128xf32>
    %6 = arith.divf %4, %5 : vector<1x128xf32>
    %7 = vector.broadcast %6 : vector<1x128xf32> to vector<32x128xf32>
    %8 = arith.subf %2, %7 : vector<32x128xf32>
    %9 = arith.mulf %8, %8 : vector<32x128xf32>
    %cst_5 = arith.constant dense<0.000000e+00> : vector<128xf32>
    %10 = vector.multi_reduction <add>, %9, %cst_5 [0] : vector<32x128xf32> to vector<128xf32>
    %11 = vector.shape_cast %10 : vector<128xf32> to vector<1x128xf32>
    %cst_6 = arith.constant 3.200000e+01 : f32
    %12 = vector.broadcast %cst_6 : f32 to vector<1x128xf32>
    %13 = arith.divf %11, %12 : vector<1x128xf32>
    %14 = vector.broadcast %6 : vector<1x128xf32> to vector<32x128xf32>
    %15 = arith.subf %2, %14 : vector<32x128xf32>
    %cst_7 = arith.constant 9.99999974E-6 : f32
    %16 = vector.broadcast %cst_7 : f32 to vector<1x128xf32>
    %17 = arith.addf %13, %16 : vector<1x128xf32>
    %18 = math.rsqrt %17 : vector<1x128xf32>
    %19 = vector.broadcast %18 : vector<1x128xf32> to vector<32x128xf32>
    %20 = arith.mulf %15, %19 : vector<32x128xf32>
    %c0_8 = arith.constant 0 : index
    %c0_9 = arith.constant 0 : index
    %21 = vector.load %arg3[%c0_8, %c0_9] : memref<1x128xf32, #tpu.memory_space<vmem>>, vector<1x128xf32>
    %22 = vector.broadcast %21 : vector<1x128xf32> to vector<32x128xf32>
    %23 = arith.mulf %20, %22 : vector<32x128xf32>
    %c0_10 = arith.constant 0 : index
    %c0_11 = arith.constant 0 : index
    %24 = vector.load %arg4[%c0_10, %c0_11] : memref<1x128xf32, #tpu.memory_space<vmem>>, vector<1x128xf32>
    %25 = vector.broadcast %24 : vector<1x128xf32> to vector<32x128xf32>
    %26 = arith.addf %23, %25 : vector<32x128xf32>
    %cst_12 = arith.constant 0.000000e+00 : f32
    %27 = vector.broadcast %cst_12 : f32 to vector<32x128xf32>
    %28 = arith.cmpf ogt, %26, %27 : vector<32x128xf32>
    %cst_13 = arith.constant 2.000000e-01 : f32
    %29 = vector.broadcast %cst_13 : f32 to vector<32x128xf32>
    %30 = arith.mulf %29, %26 : vector<32x128xf32>
    %31 = arith.select %28, %26, %30 : vector<32x128xi1>, vector<32x128xf32>
    %32 = arith.truncf %31 : vector<32x128xf32> to vector<32x128xbf16>
    %c0_14 = arith.constant 0 : index
    %c0_15 = arith.constant 0 : index
    %33 = vector.load %arg5[%c0_14, %c0_15] : memref<32x128xbf16, #tpu.memory_space<vmem>>, vector<32x128xbf16>
    tpu.vector_store %arg5[%c0_14, %c0_15], %32 {strides = array<i32>} : memref<32x128xbf16, #tpu.memory_space<vmem>>, vector<32x128xbf16>,
    return
  }
  func.func @transform_0(%arg0: i32) -> (i32, i32) {
    %c0_i32 = arith.constant 0 : i32
    %c0_i32_0 = arith.constant 0 : i32
    %c0_i32_1 = arith.constant 0 : i32
    return %c0_i32, %c0_i32_0 : i32, i32
  }
  func.func @transform_1(%arg0: i32) -> (i32, i32) {
    %c0_i32 = arith.constant 0 : i32
    %c0_i32_0 = arith.constant 0 : i32
    %c0_i32_1 = arith.constant 0 : i32
    return %c0_i32, %c0_i32_0 : i32, i32
  }
  func.func @transform_2(%arg0: i32) -> (i32, i32) {
    %c0_i32 = arith.constant 0 : i32
    %c0_i32_0 = arith.constant 0 : i32
    %c0_i32_1 = arith.constant 0 : i32
    return %c0_i32, %c0_i32_0 : i32, i32
  }
  func.func @transform_3(%arg0: i32) -> (i32, i32) {
    %c0_i32 = arith.constant 0 : i32
    %c0_i32_0 = arith.constant 0 : i32
    %c0_i32_1 = arith.constant 0 : i32
    return %c0_i32, %c0_i32_0 : i32, i32
  }
  func.func @transform_4(%arg0: i32) -> (i32, i32) {
    %c0_i32 = arith.constant 0 : i32
    %c0_i32_0 = arith.constant 0 : i32
    %c0_i32_1 = arith.constant 0 : i32
    return %c0_i32, %c0_i32_0 : i32, i32
  }
}

module attributes {stable_mosaic.version = 11 : i64} {
  func.func @_gemm_act_kernel(%arg0: i32, %arg1: memref<2x1024xbf16, #tpu.memory_space<vmem>>, %arg2: memref<1024x128xbf16, #tpu.memory_space<vmem>>, %arg3: memref<2x128xf32, #tpu.memory_space<vmem>>) attributes {dimension_semantics = [#tpu.dimension_semantics<parallel>], iteration_bounds = array<i64: 1>, scalar_prefetch = 0 : i64, scratch_operands = 0 : i64, tpu.core_type = #tpu.core_type<tc>, window_params = [{transform_indices = @transform_0, window_bounds = array<i64: 2, 1024>}, {pipeline_mode = #tpu.pipeline_mode<synchronous>, transform_indices = @transform_1, window_bounds = array<i64: 1024, 128>}, {transform_indices = @transform_2, window_bounds = array<i64: 2, 128>}]} {
    %c0 = arith.constant 0 : index
    %c0_0 = arith.constant 0 : index
    %0 = vector.load %arg1[%c0, %c0_0] : memref<2x1024xbf16, #tpu.memory_space<vmem>>, vector<2x1024xbf16>
    %c0_1 = arith.constant 0 : index
    %c0_2 = arith.constant 0 : index
    %1 = vector.load %arg2[%c0_1, %c0_2] : memref<1024x128xbf16, #tpu.memory_space<vmem>>, vector<1024x128xbf16>
    %cst = arith.constant dense<0.000000e+00> : vector<2x128xf32>
    %2 = tpu.matmul %0, %1, %cst {dimension_numbers = #tpu.dot_dimension_numbers<[1], [0], [0], [1], [0, 0, 1, 1], [], []>} : vector<2x1024xbf16>, vector<1024x128xbf16>, vector<2x128xf32> -> vector<2x128xf32>
    %3 = math.absf %2 : vector<2x128xf32>
    %cst_3 = arith.constant 0.000000e+00 : f32
    %4 = vector.broadcast %cst_3 : f32 to vector<2x128xf32>
    %5 = arith.subf %4, %3 : vector<2x128xf32>
    %6 = math.exp %5 : vector<2x128xf32>
    %cst_4 = arith.constant 0.000000e+00 : f32
    %7 = vector.broadcast %cst_4 : f32 to vector<2x128xf32>
    %8 = arith.cmpf oge, %2, %7 : vector<2x128xf32>
    %cst_5 = arith.constant 1.000000e+00 : f32
    %9 = vector.broadcast %cst_5 : f32 to vector<2x128xf32>
    %10 = arith.addf %9, %6 : vector<2x128xf32>
    %cst_6 = arith.constant 1.000000e+00 : f32
    %11 = vector.broadcast %cst_6 : f32 to vector<2x128xf32>
    %12 = arith.divf %11, %10 : vector<2x128xf32>
    %cst_7 = arith.constant 1.000000e+00 : f32
    %13 = vector.broadcast %cst_7 : f32 to vector<2x128xf32>
    %14 = arith.addf %13, %6 : vector<2x128xf32>
    %15 = arith.divf %6, %14 : vector<2x128xf32>
    %16 = arith.select %8, %12, %15 : vector<2x128xi1>, vector<2x128xf32>
    %c0_8 = arith.constant 0 : index
    %c0_9 = arith.constant 0 : index
    %17 = vector.load %arg3[%c0_8, %c0_9] : memref<2x128xf32, #tpu.memory_space<vmem>>, vector<2x128xf32>
    tpu.vector_store %arg3[%c0_8, %c0_9], %16 {strides = array<i32>} : memref<2x128xf32, #tpu.memory_space<vmem>>, vector<2x128xf32>,
    return
  }
  func.func @transform_0(%arg0: i32) -> (i32, i32) {
    %c0_i32 = arith.constant 0 : i32
    %c0_i32_0 = arith.constant 0 : i32
    return %arg0, %c0_i32 : i32, i32
  }
  func.func @transform_1(%arg0: i32) -> (i32, i32) {
    %c0_i32 = arith.constant 0 : i32
    %c0_i32_0 = arith.constant 0 : i32
    %c0_i32_1 = arith.constant 0 : i32
    return %c0_i32, %c0_i32_0 : i32, i32
  }
  func.func @transform_2(%arg0: i32) -> (i32, i32) {
    %c0_i32 = arith.constant 0 : i32
    %c0_i32_0 = arith.constant 0 : i32
    return %arg0, %c0_i32 : i32, i32
  }
}

</mosaic_0001>

<bundles_post_ra>
// kernel: netlocalD_forward.5
= control target key start
LH: loop header
LB: loop body
LE: loop exit
PB: predicated region body
PF: predicated region fallthrough
CT: control target
= control target key end

     0   :  { %s2671_s9 = smov 0   ;;  %s2900_s0 = inlined_call_operand.vmem [shape: bf16[2048,48], index: 0, kind: input, shape index: {}]   ;;  %s2901_s1 = inlined_call_operand.vmem [shape: bf16[48,128], index: 1, kind: input, shape index: {}]   ;;  %s2902_s2 = inlined_call_operand.vmem [shape: bf16[2048,128], index: 2, kind: output, shape index: {}]  }
   0x1 LB: > { %s1838_s10 = sadd.s32 4294967295, %s2654_s9   ;;  %p1842_p0 = scmp.ge.s32.totalorder %s2654_s9, 1  ;;  %s2654_s9 = sphi %s2671_s9, %s12_s9  }
   0x2   : > { %p113_p1 = scmp.lt.s32.totalorder %s2654_s9, 3 }
   0x4   : > { %p114_p2 = pnand %p1842_p0, %p113_p1 }
   0x5   : > { %s1843_s13 = sshll.u32 (!%p114_p2), %s1838_s10, 7 }
   0x6   : > { %117 = sbr.rel (%p114_p2) target bundleno = 411 (0x19b), region = 28  ;;  %p136_p3 = scmp.lt.s32.totalorder (!%p114_p2), %s1843_s13, 255 }
   0xb   : > { %v2247_v0 = vld [vmem:[%s2901_s1 + $0x10] sm:$0xff]  ;;  %v2246_v1 = vld [vmem:[%s2901_s1 + $0x8] sm:$0xff]  ;;  %s2904_s13 = smov (!%p136_p3, %s1843_s13), 255  ;;  %v2245_v2 = vld [vmem:[%s2901_s1] sm:$0xff]  ;;  %vm620_vm0 = vcmask 392192  }
   0xc   : > { %818 = vmatpush.bf16.msra.mxu0 %v2247_v0  ;;  %2631 = vmatpush.bf16.msra.mxu1 %v2247_v0  ;;  %s1844_s16 = sshll.u32 %s2904_s13, 2 }
   0xd   : > { %2632 = vmatpush.bf16.msra.mxu2 %v2247_v0  ;;  %2633 = vmatpush.bf16.msra.mxu3 %v2247_v0  ;;  %s2696_s21 = scalar_lea.vmem %s2900_s0, %s1844_s16  ;;  %s2775_s24 = scalar_lea.vmem %s2902_s2, %s1844_s16 }
   0xe   : > { %v2181_v3 = vld [vmem:[%s2696_s21] sm:$0xff]  ;;  %v2182_v7 = vld [vmem:[%s2696_s21 + $0x8] sm:$0xff]  ;;  %v2183_v11 = vld [vmem:[%s2696_s21 + $0x10] sm:$0xff] }
   0xf   : > { %v2197_v4 = vld [vmem:[%s2696_s21 + $0x80] sm:$0xff]  ;;  %v2198_v8 = vld [vmem:[%s2696_s21 + $0x88] sm:$0xff]  ;;  %v2199_v12 = vld [vmem:[%s2696_s21 + $0x90] sm:$0xff] }
  0x10   : > { %819 = vmatpush.bf16.msra.mxu0 %v2246_v1  ;;  %2634 = vmatpush.bf16.msra.mxu1 %v2246_v1  ;;  %v2213_v5 = vld [vmem:[%s2696_s21 + $0x100] sm:$0xff]  ;;  %v2214_v9 = vld [vmem:[%s2696_s21 + $0x108] sm:$0xff]  ;;  %v2215_v13 = vld [vmem:[%s2696_s21 + $0x110] sm:$0xff] }
  0x11   : > { %2635 = vmatpush.bf16.msra.mxu2 %v2246_v1  ;;  %2636 = vmatpush.bf16.msra.mxu3 %v2246_v1  ;;  %v2229_v6 = vld [vmem:[%s2696_s21 + $0x180] sm:$0xff]  ;;  %v2230_v10 = vld [vmem:[%s2696_s21 + $0x188] sm:$0xff]  ;;  %v2231_v14 = vld [vmem:[%s2696_s21 + $0x190] sm:$0xff] }
  0x12   : > { %v2184_v15 = vld [vmem:[%s2696_s21 + $0x18] sm:$0xff]  ;;  %v2185_v19 = vld [vmem:[%s2696_s21 + $0x20] sm:$0xff]  ;;  %v2186_v23 = vld [vmem:[%s2696_s21 + $0x28] sm:$0xff] }
  0x13   : > { %v2200_v16 = vld [vmem:[%s2696_s21 + $0x98] sm:$0xff]  ;;  %v2201_v20 = vld [vmem:[%s2696_s21 + $0xa0] sm:$0xff]  ;;  %v2202_v24 = vld [vmem:[%s2696_s21 + $0xa8] sm:$0xff] }
  0x14   : > { %820 = vmatpush.bf16.msra.mxu0 %v2245_v2  ;;  %2637 = vmatpush.bf16.msra.mxu1 %v2245_v2  ;;  %v2216_v17 = vld [vmem:[%s2696_s21 + $0x118] sm:$0xff]  ;;  %v2217_v21 = vld [vmem:[%s2696_s21 + $0x120] sm:$0xff]  ;;  %v2218_v25 = vld [vmem:[%s2696_s21 + $0x128] sm:$0xff] }
  0x15   : > { %2638 = vmatpush.bf16.msra.mxu2 %v2245_v2  ;;  %2639 = vmatpush.bf16.msra.mxu3 %v2245_v2  ;;  %v2232_v18 = vld [vmem:[%s2696_s21 + $0x198] sm:$0xff]  ;;  %v2233_v22 = vld [vmem:[%s2696_s21 + $0x1a0] sm:$0xff]  ;;  %v2234_v26 = vld [vmem:[%s2696_s21 + $0x1a8] sm:$0xff] }
  0x16   : > { %v2187_v27 = vld [vmem:[%s2696_s21 + $0x30] sm:$0xff]  ;;  %v2188_v31 = vld [vmem:[%s2696_s21 + $0x38] sm:$0xff]  ;;  %v2189_v35 = vld [vmem:[%s2696_s21 + $0x40] sm:$0xff] }
  0x17   : > { %2115 = vmatmul.msk.bf16.vlgmr.msra.gmra.mxu0 %vm620_vm0, %v2181_v3  ;;  %2131 = vmatmul.msk.bf16.vlgmr.msra.gmra.mxu1 %vm620_vm0, %v2197_v4  ;;  %v2203_v28 = vld [vmem:[%s2696_s21 + $0xb0] sm:$0xff]  ;;  %v2204_v32 = vld [vmem:[%s2696_s21 + $0xb8] sm:$0xff]  ;;  %v2205_v36 = vld [vmem:[%s2696_s21 + $0xc0] sm:$0xff] }
  0x18   : > { %2147 = vmatmul.msk.bf16.vlgmr.msra.gmra.mxu2 %vm620_vm0, %v2213_v5  ;;  %2163 = vmatmul.msk.bf16.vlgmr.msra.gmra.mxu3 %vm620_vm0, %v2229_v6  ;;  %v2219_v29 = vld [vmem:[%s2696_s21 + $0x130] sm:$0xff]  ;;  %v2220_v33 = vld [vmem:[%s2696_s21 + $0x138] sm:$0xff]  ;;  %v2221_v39 = vld [vmem:[%s2696_s21 + $0x140] sm:$0xff] }
  0x19   : > { %v2235_v30 = vld [vmem:[%s2696_s21 + $0x1b0] sm:$0xff]  ;;  %v2236_v34 = vld [vmem:[%s2696_s21 + $0x1b8] sm:$0xff]  ;;  %v2237_v40 = vld [vmem:[%s2696_s21 + $0x1c0] sm:$0xff] }
  0x1a   : > { %v2190_v59 = vld [vmem:[%s2696_s21 + $0x48] sm:$0xff] }
  0x1b   : > { %v2206_v60 = vld [vmem:[%s2696_s21 + $0xc8] sm:$0xff] }
  0x1c   : > { %v2222_v61 = vld [vmem:[%s2696_s21 + $0x148] sm:$0xff] }
  0x1d   : > { %v2238_v2 = vld [vmem:[%s2696_s21 + $0x1c8] sm:$0xff] }
  0x27   : > { %2116 = vmatmul.msk.bf16.gmra.mxu0 %vm620_vm0, %v2182_v7  ;;  %2132 = vmatmul.msk.bf16.gmra.mxu1 %vm620_vm0, %v2198_v8 }
  0x28   : > { %2148 = vmatmul.msk.bf16.gmra.mxu2 %vm620_vm0, %v2214_v9  ;;  %2164 = vmatmul.msk.bf16.gmra.mxu3 %vm620_vm0, %v2230_v10 }
  0x37   : > { %2117 = vmatmul.msk.bf16.gmra.mxu0 %vm620_vm0, %v2183_v11  ;;  %2133 = vmatmul.msk.bf16.gmra.mxu1 %vm620_vm0, %v2199_v12 }
  0x38   : > { %2149 = vmatmul.msk.bf16.gmra.mxu2 %vm620_vm0, %v2215_v13  ;;  %2165 = vmatmul.msk.bf16.gmra.mxu3 %vm620_vm0, %v2231_v14 }
  0x47   : > { %2118 = vmatmul.msk.bf16.gmra.mxu0 %vm620_vm0, %v2184_v15  ;;  %2134 = vmatmul.msk.bf16.gmra.mxu1 %vm620_vm0, %v2200_v16 }
  0x48   : > { %2150 = vmatmul.msk.bf16.gmra.mxu2 %vm620_vm0, %v2216_v17  ;;  %2166 = vmatmul.msk.bf16.gmra.mxu3 %vm620_vm0, %v2232_v18 }
  0x57   : > { %2119 = vmatmul.msk.bf16.gmra.mxu0 %vm620_vm0, %v2185_v19  ;;  %2135 = vmatmul.msk.bf16.gmra.mxu1 %vm620_vm0, %v2201_v20 }
  0x58   : > { %2151 = vmatmul.msk.bf16.gmra.mxu2 %vm620_vm0, %v2217_v21  ;;  %2167 = vmatmul.msk.bf16.gmra.mxu3 %vm620_vm0, %v2233_v22 }
  0x67   : > { %2120 = vmatmul.msk.bf16.gmra.mxu0 %vm620_vm0, %v2186_v23  ;;  %2136 = vmatmul.msk.bf16.gmra.mxu1 %vm620_vm0, %v2202_v24 }
  0x68   : > { %2152 = vmatmul.msk.bf16.gmra.mxu2 %vm620_vm0, %v2218_v25  ;;  %2168 = vmatmul.msk.bf16.gmra.mxu3 %vm620_vm0, %v2234_v26 }
  0x77   : > { %2121 = vmatmul.msk.bf16.gmra.mxu0 %vm620_vm0, %v2187_v27  ;;  %2137 = vmatmul.msk.bf16.gmra.mxu1 %vm620_vm0, %v2203_v28  ;;  %v2191_v27 = vld [vmem:[%s2696_s21 + $0x50] sm:$0xff] }
  0x78   : > { %2153 = vmatmul.msk.bf16.gmra.mxu2 %vm620_vm0, %v2219_v29  ;;  %2169 = vmatmul.msk.bf16.gmra.mxu3 %vm620_vm0, %v2235_v30  ;;  %v2207_v28 = vld [vmem:[%s2696_s21 + $0xd0] sm:$0xff] }
  0x79   : > { %v2223_v29 = vld [vmem:[%s2696_s21 + $0x150] sm:$0xff] }
  0x87   : > { %2122 = vmatmul.msk.bf16.gmra.mxu0 %vm620_vm0, %v2188_v31  ;;  %2138 = vmatmul.msk.bf16.gmra.mxu1 %vm620_vm0, %v2204_v32 }
  0x88   : > { %2154 = vmatmul.msk.bf16.gmra.mxu2 %vm620_vm0, %v2220_v33  ;;  %2170 = vmatmul.msk.bf16.gmra.mxu3 %vm620_vm0, %v2236_v34  ;;  %v2239_v34 = vld [vmem:[%s2696_s21 + $0x1d0] sm:$0xff] }
  0x94   : > { %v822_v37 = vpop.f32.mrf.mxu0  ;;  %v902_v38 = vpop.f32.mrf.mxu1 }
  0x95   : > { %v1270_v41 = vmul.f32 0.2, %v822_v37  ;;  %v1302_v42 = vmul.f32 0.2, %v902_v38  ;;  %vm1142_vm1 = vcmp.gt.f32.partialorder %v822_v37, 0.0  ;;  %vm1174_vm2 = vcmp.gt.f32.partialorder %v902_v38, 0.0 }
  0x97   : > { %2123 = vmatmul.msk.bf16.gmra.mxu0 %vm620_vm0, %v2189_v35  ;;  %2139 = vmatmul.msk.bf16.gmra.mxu1 %vm620_vm0, %v2205_v36  ;;  %v1398_v49 = vsel %vm1142_vm1, %v822_v37, %v1270_v41  ;;  %v1430_v50 = vsel %vm1174_vm2, %v902_v38, %v1302_v42 }
  0x98   : > { %2155 = vmatmul.msk.bf16.gmra.mxu2 %vm620_vm0, %v2221_v39  ;;  %2171 = vmatmul.msk.bf16.gmra.mxu3 %vm620_vm0, %v2237_v40 }
  0x9b   : > { %v982_v43 = vpop.f32.mrf.mxu2  ;;  %v1062_v44 = vpop.f32.mrf.mxu3 }
  0x9c   : > { %v824_v45 = vpop.f32.mrf.mxu0  ;;  %v904_v46 = vpop.f32.mrf.mxu1  ;;  %v1334_v55 = vmul.f32 0.2, %v982_v43  ;;  %v1366_v56 = vmul.f32 0.2, %v1062_v44  ;;  %vm1206_vm5 = vcmp.gt.f32.partialorder %v982_v43, 0.0  ;;  %vm1238_vm6 = vcmp.gt.f32.partialorder %v1062_v44, 0.0 }
  0x9d   : > { %vm1143_vm3 = vcmp.gt.f32.partialorder %v824_v45, 0.0  ;;  %v1271_v47 = vmul.f32 0.2, %v824_v45  ;;  %vm1175_vm4 = vcmp.gt.f32.partialorder %v904_v46, 0.0  ;;  %v1303_v48 = vmul.f32 0.2, %v904_v46 }
  0x9e   : > { %v1462_v3 = vsel %vm1206_vm5, %v982_v43, %v1334_v55  ;;  %v1494_v4 = vsel %vm1238_vm6, %v1062_v44, %v1366_v56 }
  0x9f   : > { %v1399_v51 = vsel %vm1143_vm3, %v824_v45, %v1271_v47  ;;  %v1431_v52 = vsel %vm1175_vm4, %v904_v46, %v1303_v48 }
  0xa0   : > { %v2251_v53 = vpack.c.bf16 %v1399_v51, %v1398_v49  ;;  %v2331_v54 = vpack.c.bf16 %v1431_v52, %v1430_v50 }
  0xa2   : > { %2252 = vst [vmem:[%s2775_s24] sm:$0xff] %v2251_v53  }
  0xa3   : > { %2583 = vst [vmem:[%s2775_s24 + $0x80] sm:$0xff] %v2331_v54   ;;  %v984_v57 = vpop.f32.mrf.mxu2  ;;  %v1064_v58 = vpop.f32.mrf.mxu3 }
  0xa4   : > { %vm1207_vm7 = vcmp.gt.f32.partialorder %v984_v57, 0.0  ;;  %v1335_v62 = vmul.f32 0.2, %v984_v57  ;;  %vm1239_vm8 = vcmp.gt.f32.partialorder %v1064_v58, 0.0  ;;  %v1367_v63 = vmul.f32 0.2, %v1064_v58  ;;  %v827_v0 = vpop.f32.mrf.mxu0  ;;  %v907_v1 = vpop.f32.mrf.mxu1 }
  0xa5   : > { %v1272_v9 = vmul.f32 0.2, %v827_v0  ;;  %v1304_v10 = vmul.f32 0.2, %v907_v1  ;;  %vm1144_vm9 = vcmp.gt.f32.partialorder %v827_v0, 0.0  ;;  %vm1176_vm10 = vcmp.gt.f32.partialorder %v907_v1, 0.0 }
  0xa6   : > { %v1463_v5 = vsel %vm1207_vm7, %v984_v57, %v1335_v62  ;;  %v1495_v6 = vsel %vm1239_vm8, %v1064_v58, %v1367_v63 }
  0xa7   : > { %v2411_v7 = vpack.c.bf16 %v1463_v5, %v1462_v3  ;;  %v2491_v8 = vpack.c.bf16 %v1495_v6, %v1494_v4  ;;  %2124 = vmatmul.msk.bf16.gmra.mxu0 %vm620_vm0, %v2190_v59  ;;  %2140 = vmatmul.msk.bf16.gmra.mxu1 %vm620_vm0, %v2206_v60  ;;  %v1400_v17 = vsel %vm1144_vm9, %v827_v0, %v1272_v9  ;;  %v2192_v59 = vld [vmem:[%s2696_s21 + $0x58] sm:$0xff] }
  0xa8   : > { %2156 = vmatmul.msk.bf16.gmra.mxu2 %vm620_vm0, %v2222_v61  ;;  %2172 = vmatmul.msk.bf16.gmra.mxu3 %vm620_vm0, %v2238_v2  ;;  %v1432_v18 = vsel %vm1176_vm10, %v907_v1, %v1304_v10  ;;  %v2208_v60 = vld [vmem:[%s2696_s21 + $0xd8] sm:$0xff] }
  0xa9   : > { %2599 = vst [vmem:[%s2775_s24 + $0x100] sm:$0xff] %v2411_v7   ;;  %v2224_v61 = vld [vmem:[%s2696_s21 + $0x158] sm:$0xff] }
  0xaa   : > { %2615 = vst [vmem:[%s2775_s24 + $0x180] sm:$0xff] %v2491_v8   ;;  %v2240_v2 = vld [vmem:[%s2696_s21 + $0x1d8] sm:$0xff] }
  0xab   : > { %v987_v11 = vpop.f32.mrf.mxu2  ;;  %v1067_v12 = vpop.f32.mrf.mxu3 }
  0xac   : > { %v829_v13 = vpop.f32.mrf.mxu0  ;;  %v909_v14 = vpop.f32.mrf.mxu1  ;;  %v1336_v23 = vmul.f32 0.2, %v987_v11  ;;  %v1368_v24 = vmul.f32 0.2, %v1067_v12  ;;  %vm1208_vm13 = vcmp.gt.f32.partialorder %v987_v11, 0.0  ;;  %vm1240_vm14 = vcmp.gt.f32.partialorder %v1067_v12, 0.0 }
  0xad   : > { %vm1145_vm11 = vcmp.gt.f32.partialorder %v829_v13, 0.0  ;;  %v1273_v15 = vmul.f32 0.2, %v829_v13  ;;  %vm1177_vm12 = vcmp.gt.f32.partialorder %v909_v14, 0.0  ;;  %v1305_v16 = vmul.f32 0.2, %v909_v14 }
  0xae   : > { %v1464_v35 = vsel %vm1208_vm13, %v987_v11, %v1336_v23  ;;  %v1496_v36 = vsel %vm1240_vm14, %v1067_v12, %v1368_v24 }
  0xaf   : > { %v1401_v19 = vsel %vm1145_vm11, %v829_v13, %v1273_v15  ;;  %v1433_v20 = vsel %vm1177_vm12, %v909_v14, %v1305_v16 }
  0xb0   : > { %v2256_v21 = vpack.c.bf16 %v1401_v19, %v1400_v17  ;;  %v2336_v22 = vpack.c.bf16 %v1433_v20, %v1432_v18 }
  0xb2   : > { %2568 = vst [vmem:[%s2775_s24 + $0x8] sm:$0xff] %v2256_v21  }
  0xb3   : > { %2584 = vst [vmem:[%s2775_s24 + $0x88] sm:$0xff] %v2336_v22   ;;  %v989_v25 = vpop.f32.mrf.mxu2  ;;  %v1069_v26 = vpop.f32.mrf.mxu3 }
  0xb4   : > { %vm1209_vm15 = vcmp.gt.f32.partialorder %v989_v25, 0.0  ;;  %v1337_v30 = vmul.f32 0.2, %v989_v25  ;;  %vm1241_vm1 = vcmp.gt.f32.partialorder %v1069_v26, 0.0  ;;  %v1369_v31 = vmul.f32 0.2, %v1069_v26  ;;  %v832_v32 = vpop.f32.mrf.mxu0  ;;  %v912_v33 = vpop.f32.mrf.mxu1 }
  0xb5   : > { %v1274_v41 = vmul.f32 0.2, %v832_v32  ;;  %v1306_v42 = vmul.f32 0.2, %v912_v33  ;;  %vm1146_vm2 = vcmp.gt.f32.partialorder %v832_v32, 0.0  ;;  %vm1178_vm3 = vcmp.gt.f32.partialorder %v912_v33, 0.0 }
  0xb6   : > { %v1465_v37 = vsel %vm1209_vm15, %v989_v25, %v1337_v30  ;;  %v1497_v38 = vsel %vm1241_vm1, %v1069_v26, %v1369_v31 }
  0xb7   : > { %v2416_v39 = vpack.c.bf16 %v1465_v37, %v1464_v35  ;;  %v2496_v40 = vpack.c.bf16 %v1497_v38, %v1496_v36  ;;  %2125 = vmatmul.msk.bf16.gmra.mxu0 %vm620_vm0, %v2191_v27  ;;  %2141 = vmatmul.msk.bf16.gmra.mxu1 %vm620_vm0, %v2207_v28  ;;  %v1402_v49 = vsel %vm1146_vm2, %v832_v32, %v1274_v41  ;;  %v2193_v27 = vld [vmem:[%s2696_s21 + $0x60] sm:$0xff] }
  0xb8   : > { %2157 = vmatmul.msk.bf16.gmra.mxu2 %vm620_vm0, %v2223_v29  ;;  %2173 = vmatmul.msk.bf16.gmra.mxu3 %vm620_vm0, %v2239_v34  ;;  %v1434_v50 = vsel %vm1178_vm3, %v912_v33, %v1306_v42  ;;  %v2209_v28 = vld [vmem:[%s2696_s21 + $0xe0] sm:$0xff] }
  0xb9   : > { %2600 = vst [vmem:[%s2775_s24 + $0x108] sm:$0xff] %v2416_v39   ;;  %v2225_v29 = vld [vmem:[%s2696_s21 + $0x160] sm:$0xff] }
  0xba   : > { %2616 = vst [vmem:[%s2775_s24 + $0x188] sm:$0xff] %v2496_v40   ;;  %v2241_v34 = vld [vmem:[%s2696_s21 + $0x1e0] sm:$0xff] }
  0xbb   : > { %v992_v43 = vpop.f32.mrf.mxu2  ;;  %v1072_v44 = vpop.f32.mrf.mxu3 }
  0xbc   : > { %v834_v45 = vpop.f32.mrf.mxu0  ;;  %v914_v46 = vpop.f32.mrf.mxu1  ;;  %v1338_v55 = vmul.f32 0.2, %v992_v43  ;;  %v1370_v56 = vmul.f32 0.2, %v1072_v44  ;;  %vm1210_vm6 = vcmp.gt.f32.partialorder %v992_v43, 0.0  ;;  %vm1242_vm7 = vcmp.gt.f32.partialorder %v1072_v44, 0.0 }
  0xbd   : > { %vm1147_vm4 = vcmp.gt.f32.partialorder %v834_v45, 0.0  ;;  %v1275_v47 = vmul.f32 0.2, %v834_v45  ;;  %vm1179_vm5 = vcmp.gt.f32.partialorder %v914_v46, 0.0  ;;  %v1307_v48 = vmul.f32 0.2, %v914_v46 }
  0xbe   : > { %v1466_v3 = vsel %vm1210_vm6, %v992_v43, %v1338_v55  ;;  %v1498_v4 = vsel %vm1242_vm7, %v1072_v44, %v1370_v56 }
  0xbf   : > { %v1403_v51 = vsel %vm1147_vm4, %v834_v45, %v1275_v47  ;;  %v1435_v52 = vsel %vm1179_vm5, %v914_v46, %v1307_v48 }
  0xc0   : > { %v2261_v53 = vpack.c.bf16 %v1403_v51, %v1402_v49  ;;  %v2341_v54 = vpack.c.bf16 %v1435_v52, %v1434_v50 }
  0xc2   : > { %2569 = vst [vmem:[%s2775_s24 + $0x10] sm:$0xff] %v2261_v53  }
  0xc3   : > { %2585 = vst [vmem:[%s2775_s24 + $0x90] sm:$0xff] %v2341_v54   ;;  %v994_v57 = vpop.f32.mrf.mxu2  ;;  %v1074_v58 = vpop.f32.mrf.mxu3 }
  0xc4   : > { %vm1211_vm8 = vcmp.gt.f32.partialorder %v994_v57, 0.0  ;;  %v1339_v62 = vmul.f32 0.2, %v994_v57  ;;  %vm1243_vm9 = vcmp.gt.f32.partialorder %v1074_v58, 0.0  ;;  %v1371_v63 = vmul.f32 0.2, %v1074_v58  ;;  %v837_v0 = vpop.f32.mrf.mxu0  ;;  %v917_v1 = vpop.f32.mrf.mxu1 }
  0xc5   : > { %v1276_v9 = vmul.f32 0.2, %v837_v0  ;;  %v1308_v10 = vmul.f32 0.2, %v917_v1  ;;  %vm1148_vm10 = vcmp.gt.f32.partialorder %v837_v0, 0.0  ;;  %vm1180_vm11 = vcmp.gt.f32.partialorder %v917_v1, 0.0 }
  0xc6   : > { %v1467_v5 = vsel %vm1211_vm8, %v994_v57, %v1339_v62  ;;  %v1499_v6 = vsel %vm1243_vm9, %v1074_v58, %v1371_v63 }
  0xc7   : > { %v2421_v7 = vpack.c.bf16 %v1467_v5, %v1466_v3  ;;  %v2501_v8 = vpack.c.bf16 %v1499_v6, %v1498_v4  ;;  %2126 = vmatmul.msk.bf16.gmra.mxu0 %vm620_vm0, %v2192_v59  ;;  %2142 = vmatmul.msk.bf16.gmra.mxu1 %vm620_vm0, %v2208_v60  ;;  %v1404_v17 = vsel %vm1148_vm10, %v837_v0, %v1276_v9  ;;  %v2194_v59 = vld [vmem:[%s2696_s21 + $0x68] sm:$0xff] }
  0xc8   : > { %2158 = vmatmul.msk.bf16.gmra.mxu2 %vm620_vm0, %v2224_v61  ;;  %2174 = vmatmul.msk.bf16.gmra.mxu3 %vm620_vm0, %v2240_v2  ;;  %v1436_v18 = vsel %vm1180_vm11, %v917_v1, %v1308_v10  ;;  %v2210_v60 = vld [vmem:[%s2696_s21 + $0xe8] sm:$0xff] }
  0xc9   : > { %2601 = vst [vmem:[%s2775_s24 + $0x110] sm:$0xff] %v2421_v7   ;;  %v2226_v61 = vld [vmem:[%s2696_s21 + $0x168] sm:$0xff] }
  0xca   : > { %2617 = vst [vmem:[%s2775_s24 + $0x190] sm:$0xff] %v2501_v8   ;;  %v2242_v2 = vld [vmem:[%s2696_s21 + $0x1e8] sm:$0xff] }
  0xcb   : > { %v997_v11 = vpop.f32.mrf.mxu2  ;;  %v1077_v12 = vpop.f32.mrf.mxu3 }
  0xcc   : > { %v839_v13 = vpop.f32.mrf.mxu0  ;;  %v919_v14 = vpop.f32.mrf.mxu1  ;;  %v1340_v23 = vmul.f32 0.2, %v997_v11  ;;  %v1372_v24 = vmul.f32 0.2, %v1077_v12  ;;  %vm1212_vm14 = vcmp.gt.f32.partialorder %v997_v11, 0.0  ;;  %vm1244_vm15 = vcmp.gt.f32.partialorder %v1077_v12, 0.0 }
  0xcd   : > { %vm1149_vm12 = vcmp.gt.f32.partialorder %v839_v13, 0.0  ;;  %v1277_v15 = vmul.f32 0.2, %v839_v13  ;;  %vm1181_vm13 = vcmp.gt.f32.partialorder %v919_v14, 0.0  ;;  %v1309_v16 = vmul.f32 0.2, %v919_v14 }
  0xce   : > { %v1468_v35 = vsel %vm1212_vm14, %v997_v11, %v1340_v23  ;;  %v1500_v36 = vsel %vm1244_vm15, %v1077_v12, %v1372_v24 }
  0xcf   : > { %v1405_v19 = vsel %vm1149_vm12, %v839_v13, %v1277_v15  ;;  %v1437_v20 = vsel %vm1181_vm13, %v919_v14, %v1309_v16 }
  0xd0   : > { %v2266_v21 = vpack.c.bf16 %v1405_v19, %v1404_v17  ;;  %v2346_v22 = vpack.c.bf16 %v1437_v20, %v1436_v18 }
  0xd2   : > { %2570 = vst [vmem:[%s2775_s24 + $0x18] sm:$0xff] %v2266_v21  }
  0xd3   : > { %2586 = vst [vmem:[%s2775_s24 + $0x98] sm:$0xff] %v2346_v22   ;;  %v999_v25 = vpop.f32.mrf.mxu2  ;;  %v1079_v26 = vpop.f32.mrf.mxu3 }
  0xd4   : > { %vm1213_vm1 = vcmp.gt.f32.partialorder %v999_v25, 0.0  ;;  %v1341_v30 = vmul.f32 0.2, %v999_v25  ;;  %vm1245_vm2 = vcmp.gt.f32.partialorder %v1079_v26, 0.0  ;;  %v1373_v31 = vmul.f32 0.2, %v1079_v26  ;;  %v842_v32 = vpop.f32.mrf.mxu0  ;;  %v922_v33 = vpop.f32.mrf.mxu1 }
  0xd5   : > { %v1278_v41 = vmul.f32 0.2, %v842_v32  ;;  %v1310_v42 = vmul.f32 0.2, %v922_v33  ;;  %vm1150_vm3 = vcmp.gt.f32.partialorder %v842_v32, 0.0  ;;  %vm1182_vm4 = vcmp.gt.f32.partialorder %v922_v33, 0.0 }
  0xd6   : > { %v1469_v37 = vsel %vm1213_vm1, %v999_v25, %v1341_v30  ;;  %v1501_v38 = vsel %vm1245_vm2, %v1079_v26, %v1373_v31 }
  0xd7   : > { %v2426_v39 = vpack.c.bf16 %v1469_v37, %v1468_v35  ;;  %v2506_v40 = vpack.c.bf16 %v1501_v38, %v1500_v36  ;;  %2127 = vmatmul.msk.bf16.gmra.mxu0 %vm620_vm0, %v2193_v27  ;;  %2143 = vmatmul.msk.bf16.gmra.mxu1 %vm620_vm0, %v2209_v28  ;;  %v1406_v49 = vsel %vm1150_vm3, %v842_v32, %v1278_v41  ;;  %v2195_v27 = vld [vmem:[%s2696_s21 + $0x70] sm:$0xff] }
  0xd8   : > { %2159 = vmatmul.msk.bf16.gmra.mxu2 %vm620_vm0, %v2225_v29  ;;  %2175 = vmatmul.msk.bf16.gmra.mxu3 %vm620_vm0, %v2241_v34  ;;  %v1438_v50 = vsel %vm1182_vm4, %v922_v33, %v1310_v42  ;;  %v2211_v28 = vld [vmem:[%s2696_s21 + $0xf0] sm:$0xff] }
  0xd9   : > { %2602 = vst [vmem:[%s2775_s24 + $0x118] sm:$0xff] %v2426_v39   ;;  %v2227_v29 = vld [vmem:[%s2696_s21 + $0x170] sm:$0xff] }
  0xda   : > { %2618 = vst [vmem:[%s2775_s24 + $0x198] sm:$0xff] %v2506_v40   ;;  %v2243_v34 = vld [vmem:[%s2696_s21 + $0x1f0] sm:$0xff] }
  0xdb   : > { %v1002_v43 = vpop.f32.mrf.mxu2  ;;  %v1082_v44 = vpop.f32.mrf.mxu3 }
  0xdc   : > { %v844_v45 = vpop.f32.mrf.mxu0  ;;  %v924_v46 = vpop.f32.mrf.mxu1  ;;  %v1342_v55 = vmul.f32 0.2, %v1002_v43  ;;  %v1374_v56 = vmul.f32 0.2, %v1082_v44  ;;  %vm1214_vm7 = vcmp.gt.f32.partialorder %v1002_v43, 0.0  ;;  %vm1246_vm8 = vcmp.gt.f32.partialorder %v1082_v44, 0.0 }
  0xdd   : > { %vm1151_vm5 = vcmp.gt.f32.partialorder %v844_v45, 0.0  ;;  %v1279_v47 = vmul.f32 0.2, %v844_v45  ;;  %vm1183_vm6 = vcmp.gt.f32.partialorder %v924_v46, 0.0  ;;  %v1311_v48 = vmul.f32 0.2, %v924_v46 }
  0xde   : > { %v1470_v3 = vsel %vm1214_vm7, %v1002_v43, %v1342_v55  ;;  %v1502_v4 = vsel %vm1246_vm8, %v1082_v44, %v1374_v56 }
  0xdf   : > { %v1407_v51 = vsel %vm1151_vm5, %v844_v45, %v1279_v47  ;;  %v1439_v52 = vsel %vm1183_vm6, %v924_v46, %v1311_v48 }
  0xe0   : > { %v2271_v53 = vpack.c.bf16 %v1407_v51, %v1406_v49  ;;  %v2351_v54 = vpack.c.bf16 %v1439_v52, %v1438_v50 }
  0xe2   : > { %2571 = vst [vmem:[%s2775_s24 + $0x20] sm:$0xff] %v2271_v53  }
  0xe3   : > { %2587 = vst [vmem:[%s2775_s24 + $0xa0] sm:$0xff] %v2351_v54   ;;  %v1004_v57 = vpop.f32.mrf.mxu2  ;;  %v1084_v58 = vpop.f32.mrf.mxu3 }
  0xe4   : > { %vm1215_vm9 = vcmp.gt.f32.partialorder %v1004_v57, 0.0  ;;  %v1343_v62 = vmul.f32 0.2, %v1004_v57  ;;  %vm1247_vm10 = vcmp.gt.f32.partialorder %v1084_v58, 0.0  ;;  %v1375_v63 = vmul.f32 0.2, %v1084_v58  ;;  %v847_v0 = vpop.f32.mrf.mxu0  ;;  %v927_v1 = vpop.f32.mrf.mxu1 }
  0xe5   : > { %v1280_v9 = vmul.f32 0.2, %v847_v0  ;;  %v1312_v10 = vmul.f32 0.2, %v927_v1  ;;  %vm1152_vm11 = vcmp.gt.f32.partialorder %v847_v0, 0.0  ;;  %vm1184_vm12 = vcmp.gt.f32.partialorder %v927_v1, 0.0 }
  0xe6   : > { %v1471_v5 = vsel %vm1215_vm9, %v1004_v57, %v1343_v62  ;;  %v1503_v6 = vsel %vm1247_vm10, %v1084_v58, %v1375_v63 }
  0xe7   : > { %v2431_v7 = vpack.c.bf16 %v1471_v5, %v1470_v3  ;;  %v2511_v8 = vpack.c.bf16 %v1503_v6, %v1502_v4  ;;  %2128 = vmatmul.msk.bf16.gmra.mxu0 %vm620_vm0, %v2194_v59  ;;  %2144 = vmatmul.msk.bf16.gmra.mxu1 %vm620_vm0, %v2210_v60  ;;  %v1408_v17 = vsel %vm1152_vm11, %v847_v0, %v1280_v9  ;;  %v2196_v59 = vld [vmem:[%s2696_s21 + $0x78] sm:$0xff] }
  0xe8   : > { %2160 = vmatmul.msk.bf16.gmra.mxu2 %vm620_vm0, %v2226_v61  ;;  %2176 = vmatmul.msk.bf16.gmra.mxu3 %vm620_vm0, %v2242_v2  ;;  %v1440_v18 = vsel %vm1184_vm12, %v927_v1, %v1312_v10  ;;  %v2212_v60 = vld [vmem:[%s2696_s21 + $0xf8] sm:$0xff] }
  0xe9   : > { %2603 = vst [vmem:[%s2775_s24 + $0x120] sm:$0xff] %v2431_v7   ;;  %v2228_v61 = vld [vmem:[%s2696_s21 + $0x178] sm:$0xff] }
  0xea   : > { %2619 = vst [vmem:[%s2775_s24 + $0x1a0] sm:$0xff] %v2511_v8   ;;  %v2244_v2 = vld [vmem:[%s2696_s21 + $0x1f8] sm:$0xff] }
  0xeb   : > { %v1007_v11 = vpop.f32.mrf.mxu2  ;;  %v1087_v12 = vpop.f32.mrf.mxu3 }
  0xec   : > { %v849_v13 = vpop.f32.mrf.mxu0  ;;  %v929_v14 = vpop.f32.mrf.mxu1  ;;  %v1344_v23 = vmul.f32 0.2, %v1007_v11  ;;  %v1376_v24 = vmul.f32 0.2, %v1087_v12  ;;  %vm1216_vm15 = vcmp.gt.f32.partialorder %v1007_v11, 0.0  ;;  %vm1248_vm1 = vcmp.gt.f32.partialorder %v1087_v12, 0.0 }
  0xed   : > { %vm1153_vm13 = vcmp.gt.f32.partialorder %v849_v13, 0.0  ;;  %v1281_v15 = vmul.f32 0.2, %v849_v13  ;;  %vm1185_vm14 = vcmp.gt.f32.partialorder %v929_v14, 0.0  ;;  %v1313_v16 = vmul.f32 0.2, %v929_v14 }
  0xee   : > { %v1472_v35 = vsel %vm1216_vm15, %v1007_v11, %v1344_v23  ;;  %v1504_v36 = vsel %vm1248_vm1, %v1087_v12, %v1376_v24 }
  0xef   : > { %v1409_v19 = vsel %vm1153_vm13, %v849_v13, %v1281_v15  ;;  %v1441_v20 = vsel %vm1185_vm14, %v929_v14, %v1313_v16 }
  0xf0   : > { %v2276_v21 = vpack.c.bf16 %v1409_v19, %v1408_v17  ;;  %v2356_v22 = vpack.c.bf16 %v1441_v20, %v1440_v18 }
  0xf2   : > { %2572 = vst [vmem:[%s2775_s24 + $0x28] sm:$0xff] %v2276_v21  }
  0xf3   : > { %2588 = vst [vmem:[%s2775_s24 + $0xa8] sm:$0xff] %v2356_v22   ;;  %v1009_v25 = vpop.f32.mrf.mxu2  ;;  %v1089_v26 = vpop.f32.mrf.mxu3 }
  0xf4   : > { %vm1217_vm2 = vcmp.gt.f32.partialorder %v1009_v25, 0.0  ;;  %v1345_v30 = vmul.f32 0.2, %v1009_v25  ;;  %vm1249_vm3 = vcmp.gt.f32.partialorder %v1089_v26, 0.0  ;;  %v1377_v31 = vmul.f32 0.2, %v1089_v26  ;;  %v852_v32 = vpop.f32.mrf.mxu0  ;;  %v932_v33 = vpop.f32.mrf.mxu1 }
  0xf5   : > { %v1282_v41 = vmul.f32 0.2, %v852_v32  ;;  %v1314_v42 = vmul.f32 0.2, %v932_v33  ;;  %vm1154_vm4 = vcmp.gt.f32.partialorder %v852_v32, 0.0  ;;  %vm1186_vm5 = vcmp.gt.f32.partialorder %v932_v33, 0.0 }
  0xf6   : > { %v1473_v37 = vsel %vm1217_vm2, %v1009_v25, %v1345_v30  ;;  %v1505_v38 = vsel %vm1249_vm3, %v1089_v26, %v1377_v31 }
  0xf7   : > { %v2436_v39 = vpack.c.bf16 %v1473_v37, %v1472_v35  ;;  %v2516_v40 = vpack.c.bf16 %v1505_v38, %v1504_v36  ;;  %2129 = vmatmul.msk.bf16.gmra.mxu0 %vm620_vm0, %v2195_v27  ;;  %2145 = vmatmul.msk.bf16.gmra.mxu1 %vm620_vm0, %v2211_v28  ;;  %v1410_v49 = vsel %vm1154_vm4, %v852_v32, %v1282_v41 }
  0xf8   : > { %2161 = vmatmul.msk.bf16.gmra.mxu2 %vm620_vm0, %v2227_v29  ;;  %2177 = vmatmul.msk.bf16.gmra.mxu3 %vm620_vm0, %v2243_v34  ;;  %v1442_v50 = vsel %vm1186_vm5, %v932_v33, %v1314_v42 }
  0xf9   : > { %2604 = vst [vmem:[%s2775_s24 + $0x128] sm:$0xff] %v2436_v39  }
  0xfa   : > { %2620 = vst [vmem:[%s2775_s24 + $0x1a8] sm:$0xff] %v2516_v40  }
  0xfb   : > { %v1012_v43 = vpop.f32.mrf.mxu2  ;;  %v1092_v44 = vpop.f32.mrf.mxu3 }
  0xfc   : > { %v854_v45 = vpop.f32.mrf.mxu0  ;;  %v934_v46 = vpop.f32.mrf.mxu1  ;;  %v1346_v55 = vmul.f32 0.2, %v1012_v43  ;;  %v1378_v56 = vmul.f32 0.2, %v1092_v44  ;;  %vm1218_vm8 = vcmp.gt.f32.partialorder %v1012_v43, 0.0  ;;  %vm1250_vm9 = vcmp.gt.f32.partialorder %v1092_v44, 0.0 }
  0xfd   : > { %vm1155_vm6 = vcmp.gt.f32.partialorder %v854_v45, 0.0  ;;  %v1283_v47 = vmul.f32 0.2, %v854_v45  ;;  %vm1187_vm7 = vcmp.gt.f32.partialorder %v934_v46, 0.0  ;;  %v1315_v48 = vmul.f32 0.2, %v934_v46 }
  0xfe   : > { %v1474_v3 = vsel %vm1218_vm8, %v1012_v43, %v1346_v55  ;;  %v1506_v4 = vsel %vm1250_vm9, %v1092_v44, %v1378_v56 }
  0xff   : > { %v1411_v51 = vsel %vm1155_vm6, %v854_v45, %v1283_v47  ;;  %v1443_v52 = vsel %vm1187_vm7, %v934_v46, %v1315_v48 }
 0x100   : > { %v2281_v53 = vpack.c.bf16 %v1411_v51, %v1410_v49  ;;  %v2361_v54 = vpack.c.bf16 %v1443_v52, %v1442_v50 }
 0x102   : > { %2573 = vst [vmem:[%s2775_s24 + $0x30] sm:$0xff] %v2281_v53  }
 0x103   : > { %2589 = vst [vmem:[%s2775_s24 + $0xb0] sm:$0xff] %v2361_v54   ;;  %v1014_v57 = vpop.f32.mrf.mxu2  ;;  %v1094_v58 = vpop.f32.mrf.mxu3 }
 0x104   : > { %vm1219_vm10 = vcmp.gt.f32.partialorder %v1014_v57, 0.0  ;;  %v1347_v62 = vmul.f32 0.2, %v1014_v57  ;;  %vm1251_vm11 = vcmp.gt.f32.partialorder %v1094_v58, 0.0  ;;  %v1379_v63 = vmul.f32 0.2, %v1094_v58  ;;  %v857_v0 = vpop.f32.mrf.mxu0  ;;  %v937_v1 = vpop.f32.mrf.mxu1 }
 0x105   : > { %v1284_v9 = vmul.f32 0.2, %v857_v0  ;;  %v1316_v10 = vmul.f32 0.2, %v937_v1  ;;  %vm1156_vm12 = vcmp.gt.f32.partialorder %v857_v0, 0.0  ;;  %vm1188_vm13 = vcmp.gt.f32.partialorder %v937_v1, 0.0 }
 0x106   : > { %v1475_v5 = vsel %vm1219_vm10, %v1014_v57, %v1347_v62  ;;  %v1507_v6 = vsel %vm1251_vm11, %v1094_v58, %v1379_v63 }
 0x107   : > { %v2441_v7 = vpack.c.bf16 %v1475_v5, %v1474_v3  ;;  %v2521_v8 = vpack.c.bf16 %v1507_v6, %v1506_v4  ;;  %2130 = vmatmul.msk.bf16.gmra.mxu0 %vm620_vm0, %v2196_v59  ;;  %2146 = vmatmul.msk.bf16.gmra.mxu1 %vm620_vm0, %v2212_v60  ;;  %v1412_v17 = vsel %vm1156_vm12, %v857_v0, %v1284_v9 }
 0x108   : > { %2162 = vmatmul.msk.bf16.gmra.mxu2 %vm620_vm0, %v2228_v61  ;;  %2178 = vmatmul.msk.bf16.gmra.mxu3 %vm620_vm0, %v2244_v2  ;;  %v1444_v18 = vsel %vm1188_vm13, %v937_v1, %v1316_v10 }
 0x109   : > { %2605 = vst [vmem:[%s2775_s24 + $0x130] sm:$0xff] %v2441_v7  }
 0x10a   : > { %2621 = vst [vmem:[%s2775_s24 + $0x1b0] sm:$0xff] %v2521_v8  }
 0x10b   : > { %v1017_v11 = vpop.f32.mrf.mxu2  ;;  %v1097_v12 = vpop.f32.mrf.mxu3 }
 0x10c   : > { %v859_v13 = vpop.f32.mrf.mxu0  ;;  %v939_v14 = vpop.f32.mrf.mxu1  ;;  %v1348_v23 = vmul.f32 0.2, %v1017_v11  ;;  %v1380_v24 = vmul.f32 0.2, %v1097_v12  ;;  %vm1220_vm0 = vcmp.gt.f32.partialorder %v1017_v11, 0.0  ;;  %vm1252_vm1 = vcmp.gt.f32.partialorder %v1097_v12, 0.0 }
 0x10d   : > { %vm1157_vm14 = vcmp.gt.f32.partialorder %v859_v13, 0.0  ;;  %v1285_v15 = vmul.f32 0.2, %v859_v13  ;;  %vm1189_vm15 = vcmp.gt.f32.partialorder %v939_v14, 0.0  ;;  %v1317_v16 = vmul.f32 0.2, %v939_v14 }
 0x10e   : > { %v1476_v31 = vsel %vm1220_vm0, %v1017_v11, %v1348_v23  ;;  %v1508_v32 = vsel %vm1252_vm1, %v1097_v12, %v1380_v24 }
 0x10f   : > { %v1413_v19 = vsel %vm1157_vm14, %v859_v13, %v1285_v15  ;;  %v1445_v20 = vsel %vm1189_vm15, %v939_v14, %v1317_v16 }
 0x110   : > { %v2286_v21 = vpack.c.bf16 %v1413_v19, %v1412_v17  ;;  %v2366_v22 = vpack.c.bf16 %v1445_v20, %v1444_v18 }
 0x112   : > { %2574 = vst [vmem:[%s2775_s24 + $0x38] sm:$0xff] %v2286_v21  }
 0x113   : > { %2590 = vst [vmem:[%s2775_s24 + $0xb8] sm:$0xff] %v2366_v22   ;;  %v1019_v25 = vpop.f32.mrf.mxu2  ;;  %v1099_v26 = vpop.f32.mrf.mxu3 }
 0x114   : > { %vm1221_vm2 = vcmp.gt.f32.partialorder %v1019_v25, 0.0  ;;  %v1349_v27 = vmul.f32 0.2, %v1019_v25  ;;  %vm1253_vm3 = vcmp.gt.f32.partialorder %v1099_v26, 0.0  ;;  %v1381_v28 = vmul.f32 0.2, %v1099_v26  ;;  %v862_v29 = vpop.f32.mrf.mxu0  ;;  %v942_v30 = vpop.f32.mrf.mxu1 }
 0x115   : > { %v1286_v37 = vmul.f32 0.2, %v862_v29  ;;  %v1318_v38 = vmul.f32 0.2, %v942_v30  ;;  %vm1158_vm4 = vcmp.gt.f32.partialorder %v862_v29, 0.0  ;;  %vm1190_vm5 = vcmp.gt.f32.partialorder %v942_v30, 0.0 }
 0x116   : > { %v1477_v33 = vsel %vm1221_vm2, %v1019_v25, %v1349_v27  ;;  %v1509_v34 = vsel %vm1253_vm3, %v1099_v26, %v1381_v28 }
 0x117   : > { %v2446_v35 = vpack.c.bf16 %v1477_v33, %v1476_v31  ;;  %v2526_v36 = vpack.c.bf16 %v1509_v34, %v1508_v32  ;;  %v1414_v45 = vsel %vm1158_vm4, %v862_v29, %v1286_v37  ;;  %v1446_v46 = vsel %vm1190_vm5, %v942_v30, %v1318_v38 }
 0x119   : > { %2606 = vst [vmem:[%s2775_s24 + $0x138] sm:$0xff] %v2446_v35  }
 0x11a   : > { %2622 = vst [vmem:[%s2775_s24 + $0x1b8] sm:$0xff] %v2526_v36  }
 0x11b   : > { %v1022_v39 = vpop.f32.mrf.mxu2  ;;  %v1102_v40 = vpop.f32.mrf.mxu3 }
 0x11c   : > { %v864_v41 = vpop.f32.mrf.mxu0  ;;  %v944_v42 = vpop.f32.mrf.mxu1  ;;  %v1350_v51 = vmul.f32 0.2, %v1022_v39  ;;  %v1382_v52 = vmul.f32 0.2, %v1102_v40  ;;  %vm1222_vm8 = vcmp.gt.f32.partialorder %v1022_v39, 0.0  ;;  %vm1254_vm9 = vcmp.gt.f32.partialorder %v1102_v40, 0.0 }
 0x11d   : > { %vm1159_vm6 = vcmp.gt.f32.partialorder %v864_v41, 0.0  ;;  %v1287_v43 = vmul.f32 0.2, %v864_v41  ;;  %vm1191_vm7 = vcmp.gt.f32.partialorder %v944_v42, 0.0  ;;  %v1319_v44 = vmul.f32 0.2, %v944_v42 }
 0x11e   : > { %v1478_v59 = vsel %vm1222_vm8, %v1022_v39, %v1350_v51  ;;  %v1510_v60 = vsel %vm1254_vm9, %v1102_v40, %v1382_v52 }
 0x11f   : > { %v1415_v47 = vsel %vm1159_vm6, %v864_v41, %v1287_v43  ;;  %v1447_v48 = vsel %vm1191_vm7, %v944_v42, %v1319_v44 }
 0x120   : > { %v2291_v49 = vpack.c.bf16 %v1415_v47, %v1414_v45  ;;  %v2371_v50 = vpack.c.bf16 %v1447_v48, %v1446_v46 }
 0x122   : > { %2575 = vst [vmem:[%s2775_s24 + $0x40] sm:$0xff] %v2291_v49  }
 0x123   : > { %2591 = vst [vmem:[%s2775_s24 + $0xc0] sm:$0xff] %v2371_v50   ;;  %v1024_v53 = vpop.f32.mrf.mxu2  ;;  %v1104_v54 = vpop.f32.mrf.mxu3 }
 0x124   : > { %vm1223_vm10 = vcmp.gt.f32.partialorder %v1024_v53, 0.0  ;;  %v1351_v55 = vmul.f32 0.2, %v1024_v53  ;;  %vm1255_vm11 = vcmp.gt.f32.partialorder %v1104_v54, 0.0  ;;  %v1383_v56 = vmul.f32 0.2, %v1104_v54  ;;  %v867_v57 = vpop.f32.mrf.mxu0  ;;  %v947_v58 = vpop.f32.mrf.mxu1 }
 0x125   : > { %v1288_v1 = vmul.f32 0.2, %v867_v57  ;;  %vm1160_vm12 = vcmp.gt.f32.partialorder %v867_v57, 0.0  ;;  %v1320_v3 = vmul.f32 0.2, %v947_v58  ;;  %vm1192_vm13 = vcmp.gt.f32.partialorder %v947_v58, 0.0 }
 0x126   : > { %v1479_v61 = vsel %vm1223_vm10, %v1024_v53, %v1351_v55  ;;  %v1511_v62 = vsel %vm1255_vm11, %v1104_v54, %v1383_v56 }
 0x127   : > { %v2451_v63 = vpack.c.bf16 %v1479_v61, %v1478_v59  ;;  %v2531_v0 = vpack.c.bf16 %v1511_v62, %v1510_v60  ;;  %v1416_v9 = vsel %vm1160_vm12, %v867_v57, %v1288_v1  ;;  %v1448_v11 = vsel %vm1192_vm13, %v947_v58, %v1320_v3 }
 0x129   : > { %2607 = vst [vmem:[%s2775_s24 + $0x140] sm:$0xff] %v2451_v63  }
 0x12a   : > { %2623 = vst [vmem:[%s2775_s24 + $0x1c0] sm:$0xff] %v2531_v0  }
 0x12b   : > { %v1027_v2 = vpop.f32.mrf.mxu2  ;;  %v1107_v4 = vpop.f32.mrf.mxu3 }
 0x12c   : > { %v869_v5 = vpop.f32.mrf.mxu0  ;;  %v949_v7 = vpop.f32.mrf.mxu1  ;;  %v1352_v15 = vmul.f32 0.2, %v1027_v2  ;;  %vm1224_vm0 = vcmp.gt.f32.partialorder %v1027_v2, 0.0  ;;  %v1384_v16 = vmul.f32 0.2, %v1107_v4  ;;  %vm1256_vm1 = vcmp.gt.f32.partialorder %v1107_v4, 0.0 }
 0x12d   : > { %vm1161_vm14 = vcmp.gt.f32.partialorder %v869_v5, 0.0  ;;  %v1289_v6 = vmul.f32 0.2, %v869_v5  ;;  %vm1193_vm15 = vcmp.gt.f32.partialorder %v949_v7, 0.0  ;;  %v1321_v8 = vmul.f32 0.2, %v949_v7 }
 0x12e   : > { %v1480_v23 = vsel %vm1224_vm0, %v1027_v2, %v1352_v15  ;;  %v1512_v25 = vsel %vm1256_vm1, %v1107_v4, %v1384_v16 }
 0x12f   : > { %v1417_v10 = vsel %vm1161_vm14, %v869_v5, %v1289_v6  ;;  %v1449_v13 = vsel %vm1193_vm15, %v949_v7, %v1321_v8 }
 0x130   : > { %v2296_v12 = vpack.c.bf16 %v1417_v10, %v1416_v9  ;;  %v2376_v14 = vpack.c.bf16 %v1449_v13, %v1448_v11 }
 0x132   : > { %2576 = vst [vmem:[%s2775_s24 + $0x48] sm:$0xff] %v2296_v12  }
 0x133   : > { %2592 = vst [vmem:[%s2775_s24 + $0xc8] sm:$0xff] %v2376_v14   ;;  %v1029_v17 = vpop.f32.mrf.mxu2  ;;  %v1109_v19 = vpop.f32.mrf.mxu3 }
 0x134   : > { %vm1225_vm2 = vcmp.gt.f32.partialorder %v1029_v17, 0.0  ;;  %v1353_v18 = vmul.f32 0.2, %v1029_v17  ;;  %v872_v20 = vpop.f32.mrf.mxu0  ;;  %vm1257_vm3 = vcmp.gt.f32.partialorder %v1109_v19, 0.0  ;;  %v1385_v21 = vmul.f32 0.2, %v1109_v19  ;;  %v952_v22 = vpop.f32.mrf.mxu1 }
 0x135   : > { %v1290_v29 = vmul.f32 0.2, %v872_v20  ;;  %vm1162_vm4 = vcmp.gt.f32.partialorder %v872_v20, 0.0  ;;  %v1322_v31 = vmul.f32 0.2, %v952_v22  ;;  %vm1194_vm5 = vcmp.gt.f32.partialorder %v952_v22, 0.0 }
 0x136   : > { %v1481_v24 = vsel %vm1225_vm2, %v1029_v17, %v1353_v18  ;;  %v1513_v27 = vsel %vm1257_vm3, %v1109_v19, %v1385_v21 }
 0x137   : > { %v2456_v26 = vpack.c.bf16 %v1481_v24, %v1480_v23  ;;  %v2536_v28 = vpack.c.bf16 %v1513_v27, %v1512_v25  ;;  %v1418_v37 = vsel %vm1162_vm4, %v872_v20, %v1290_v29  ;;  %v1450_v39 = vsel %vm1194_vm5, %v952_v22, %v1322_v31 }
 0x139   : > { %2608 = vst [vmem:[%s2775_s24 + $0x148] sm:$0xff] %v2456_v26  }
 0x13a   : > { %2624 = vst [vmem:[%s2775_s24 + $0x1c8] sm:$0xff] %v2536_v28  }
 0x13b   : > { %v1032_v30 = vpop.f32.mrf.mxu2  ;;  %v1112_v32 = vpop.f32.mrf.mxu3 }
 0x13c   : > { %v874_v33 = vpop.f32.mrf.mxu0  ;;  %v954_v35 = vpop.f32.mrf.mxu1  ;;  %v1354_v43 = vmul.f32 0.2, %v1032_v30  ;;  %vm1226_vm8 = vcmp.gt.f32.partialorder %v1032_v30, 0.0  ;;  %v1386_v44 = vmul.f32 0.2, %v1112_v32  ;;  %vm1258_vm9 = vcmp.gt.f32.partialorder %v1112_v32, 0.0 }
 0x13d   : > { %vm1163_vm6 = vcmp.gt.f32.partialorder %v874_v33, 0.0  ;;  %v1291_v34 = vmul.f32 0.2, %v874_v33  ;;  %vm1195_vm7 = vcmp.gt.f32.partialorder %v954_v35, 0.0  ;;  %v1323_v36 = vmul.f32 0.2, %v954_v35 }
 0x13e   : > { %v1482_v51 = vsel %vm1226_vm8, %v1032_v30, %v1354_v43  ;;  %v1514_v53 = vsel %vm1258_vm9, %v1112_v32, %v1386_v44 }
 0x13f   : > { %v1419_v38 = vsel %vm1163_vm6, %v874_v33, %v1291_v34  ;;  %v1451_v41 = vsel %vm1195_vm7, %v954_v35, %v1323_v36 }
 0x140   : > { %v2301_v40 = vpack.c.bf16 %v1419_v38, %v1418_v37  ;;  %v2381_v42 = vpack.c.bf16 %v1451_v41, %v1450_v39 }
 0x142   : > { %2577 = vst [vmem:[%s2775_s24 + $0x50] sm:$0xff] %v2301_v40  }
 0x143   : > { %2593 = vst [vmem:[%s2775_s24 + $0xd0] sm:$0xff] %v2381_v42   ;;  %v1034_v45 = vpop.f32.mrf.mxu2  ;;  %v1114_v47 = vpop.f32.mrf.mxu3 }
 0x144   : > { %vm1227_vm10 = vcmp.gt.f32.partialorder %v1034_v45, 0.0  ;;  %v1355_v46 = vmul.f32 0.2, %v1034_v45  ;;  %v877_v48 = vpop.f32.mrf.mxu0  ;;  %vm1259_vm11 = vcmp.gt.f32.partialorder %v1114_v47, 0.0  ;;  %v1387_v49 = vmul.f32 0.2, %v1114_v47  ;;  %v957_v50 = vpop.f32.mrf.mxu1 }
 0x145   : > { %v1292_v57 = vmul.f32 0.2, %v877_v48  ;;  %vm1164_vm12 = vcmp.gt.f32.partialorder %v877_v48, 0.0  ;;  %v1324_v59 = vmul.f32 0.2, %v957_v50  ;;  %vm1196_vm13 = vcmp.gt.f32.partialorder %v957_v50, 0.0 }
 0x146   : > { %v1483_v52 = vsel %vm1227_vm10, %v1034_v45, %v1355_v46  ;;  %v1515_v55 = vsel %vm1259_vm11, %v1114_v47, %v1387_v49 }
 0x147   : > { %v2461_v54 = vpack.c.bf16 %v1483_v52, %v1482_v51  ;;  %v2541_v56 = vpack.c.bf16 %v1515_v55, %v1514_v53  ;;  %v1420_v1 = vsel %vm1164_vm12, %v877_v48, %v1292_v57  ;;  %v1452_v3 = vsel %vm1196_vm13, %v957_v50, %v1324_v59 }
 0x149   : > { %2609 = vst [vmem:[%s2775_s24 + $0x150] sm:$0xff] %v2461_v54  }
 0x14a   : > { %2625 = vst [vmem:[%s2775_s24 + $0x1d0] sm:$0xff] %v2541_v56  }
 0x14b   : > { %v1037_v58 = vpop.f32.mrf.mxu2  ;;  %v1117_v60 = vpop.f32.mrf.mxu3 }
 0x14c   : > { %v879_v61 = vpop.f32.mrf.mxu0  ;;  %v959_v63 = vpop.f32.mrf.mxu1  ;;  %v1356_v7 = vmul.f32 0.2, %v1037_v58  ;;  %vm1228_vm0 = vcmp.gt.f32.partialorder %v1037_v58, 0.0  ;;  %v1388_v8 = vmul.f32 0.2, %v1117_v60  ;;  %vm1260_vm1 = vcmp.gt.f32.partialorder %v1117_v60, 0.0 }
 0x14d   : > { %vm1165_vm14 = vcmp.gt.f32.partialorder %v879_v61, 0.0  ;;  %v1293_v62 = vmul.f32 0.2, %v879_v61  ;;  %vm1197_vm15 = vcmp.gt.f32.partialorder %v959_v63, 0.0  ;;  %v1325_v0 = vmul.f32 0.2, %v959_v63 }
 0x14e   : > { %v1484_v15 = vsel %vm1228_vm0, %v1037_v58, %v1356_v7  ;;  %v1516_v17 = vsel %vm1260_vm1, %v1117_v60, %v1388_v8 }
 0x14f   : > { %v1421_v2 = vsel %vm1165_vm14, %v879_v61, %v1293_v62  ;;  %v1453_v5 = vsel %vm1197_vm15, %v959_v63, %v1325_v0 }
 0x150   : > { %v2306_v4 = vpack.c.bf16 %v1421_v2, %v1420_v1  ;;  %v2386_v6 = vpack.c.bf16 %v1453_v5, %v1452_v3 }
 0x152   : > { %2578 = vst [vmem:[%s2775_s24 + $0x58] sm:$0xff] %v2306_v4  }
 0x153   : > { %2594 = vst [vmem:[%s2775_s24 + $0xd8] sm:$0xff] %v2386_v6   ;;  %v1039_v9 = vpop.f32.mrf.mxu2  ;;  %v1119_v11 = vpop.f32.mrf.mxu3 }
 0x154   : > { %vm1229_vm2 = vcmp.gt.f32.partialorder %v1039_v9, 0.0  ;;  %v1357_v10 = vmul.f32 0.2, %v1039_v9  ;;  %v882_v12 = vpop.f32.mrf.mxu0  ;;  %vm1261_vm3 = vcmp.gt.f32.partialorder %v1119_v11, 0.0  ;;  %v1389_v13 = vmul.f32 0.2, %v1119_v11  ;;  %v962_v14 = vpop.f32.mrf.mxu1 }
 0x155   : > { %v1294_v21 = vmul.f32 0.2, %v882_v12  ;;  %vm1166_vm4 = vcmp.gt.f32.partialorder %v882_v12, 0.0  ;;  %v1326_v23 = vmul.f32 0.2, %v962_v14  ;;  %vm1198_vm5 = vcmp.gt.f32.partialorder %v962_v14, 0.0 }
 0x156   : > { %v1485_v16 = vsel %vm1229_vm2, %v1039_v9, %v1357_v10  ;;  %v1517_v19 = vsel %vm1261_vm3, %v1119_v11, %v1389_v13 }
 0x157   : > { %v2466_v18 = vpack.c.bf16 %v1485_v16, %v1484_v15  ;;  %v2546_v20 = vpack.c.bf16 %v1517_v19, %v1516_v17  ;;  %v1422_v29 = vsel %vm1166_vm4, %v882_v12, %v1294_v21  ;;  %v1454_v31 = vsel %vm1198_vm5, %v962_v14, %v1326_v23 }
 0x159   : > { %2610 = vst [vmem:[%s2775_s24 + $0x158] sm:$0xff] %v2466_v18  }
 0x15a   : > { %2626 = vst [vmem:[%s2775_s24 + $0x1d8] sm:$0xff] %v2546_v20  }
 0x15b   : > { %v1042_v22 = vpop.f32.mrf.mxu2  ;;  %v1122_v24 = vpop.f32.mrf.mxu3 }
 0x15c   : > { %v884_v25 = vpop.f32.mrf.mxu0  ;;  %v964_v27 = vpop.f32.mrf.mxu1  ;;  %v1358_v35 = vmul.f32 0.2, %v1042_v22  ;;  %vm1230_vm8 = vcmp.gt.f32.partialorder %v1042_v22, 0.0  ;;  %v1390_v36 = vmul.f32 0.2, %v1122_v24  ;;  %vm1262_vm9 = vcmp.gt.f32.partialorder %v1122_v24, 0.0 }
 0x15d   : > { %vm1167_vm6 = vcmp.gt.f32.partialorder %v884_v25, 0.0  ;;  %v1295_v26 = vmul.f32 0.2, %v884_v25  ;;  %vm1199_vm7 = vcmp.gt.f32.partialorder %v964_v27, 0.0  ;;  %v1327_v28 = vmul.f32 0.2, %v964_v27 }
 0x15e   : > { %v1486_v43 = vsel %vm1230_vm8, %v1042_v22, %v1358_v35  ;;  %v1518_v45 = vsel %vm1262_vm9, %v1122_v24, %v1390_v36 }
 0x15f   : > { %v1423_v30 = vsel %vm1167_vm6, %v884_v25, %v1295_v26  ;;  %v1455_v33 = vsel %vm1199_vm7, %v964_v27, %v1327_v28 }
 0x160   : > { %v2311_v32 = vpack.c.bf16 %v1423_v30, %v1422_v29  ;;  %v2391_v34 = vpack.c.bf16 %v1455_v33, %v1454_v31 }
 0x162   : > { %2579 = vst [vmem:[%s2775_s24 + $0x60] sm:$0xff] %v2311_v32  }
 0x163   : > { %2595 = vst [vmem:[%s2775_s24 + $0xe0] sm:$0xff] %v2391_v34   ;;  %v1044_v37 = vpop.f32.mrf.mxu2  ;;  %v1124_v39 = vpop.f32.mrf.mxu3 }
 0x164   : > { %vm1231_vm10 = vcmp.gt.f32.partialorder %v1044_v37, 0.0  ;;  %v1359_v38 = vmul.f32 0.2, %v1044_v37  ;;  %v887_v40 = vpop.f32.mrf.mxu0  ;;  %vm1263_vm11 = vcmp.gt.f32.partialorder %v1124_v39, 0.0  ;;  %v1391_v41 = vmul.f32 0.2, %v1124_v39  ;;  %v967_v42 = vpop.f32.mrf.mxu1 }
 0x165   : > { %v1296_v49 = vmul.f32 0.2, %v887_v40  ;;  %vm1168_vm12 = vcmp.gt.f32.partialorder %v887_v40, 0.0  ;;  %v1328_v51 = vmul.f32 0.2, %v967_v42  ;;  %vm1200_vm13 = vcmp.gt.f32.partialorder %v967_v42, 0.0 }
 0x166   : > { %v1487_v44 = vsel %vm1231_vm10, %v1044_v37, %v1359_v38  ;;  %v1519_v47 = vsel %vm1263_vm11, %v1124_v39, %v1391_v41 }
 0x167   : > { %v2471_v46 = vpack.c.bf16 %v1487_v44, %v1486_v43  ;;  %v2551_v48 = vpack.c.bf16 %v1519_v47, %v1518_v45  ;;  %v1424_v57 = vsel %vm1168_vm12, %v887_v40, %v1296_v49  ;;  %v1456_v59 = vsel %vm1200_vm13, %v967_v42, %v1328_v51 }
 0x169   : > { %2611 = vst [vmem:[%s2775_s24 + $0x160] sm:$0xff] %v2471_v46  }
 0x16a   : > { %2627 = vst [vmem:[%s2775_s24 + $0x1e0] sm:$0xff] %v2551_v48  }
 0x16b   : > { %v1047_v50 = vpop.f32.mrf.mxu2  ;;  %v1127_v52 = vpop.f32.mrf.mxu3 }
 0x16c   : > { %v889_v53 = vpop.f32.mrf.mxu0  ;;  %v969_v55 = vpop.f32.mrf.mxu1  ;;  %v1360_v63 = vmul.f32 0.2, %v1047_v50  ;;  %vm1232_vm0 = vcmp.gt.f32.partialorder %v1047_v50, 0.0  ;;  %v1392_v0 = vmul.f32 0.2, %v1127_v52  ;;  %vm1264_vm1 = vcmp.gt.f32.partialorder %v1127_v52, 0.0 }
 0x16d   : > { %vm1169_vm14 = vcmp.gt.f32.partialorder %v889_v53, 0.0  ;;  %v1297_v54 = vmul.f32 0.2, %v889_v53  ;;  %vm1201_vm15 = vcmp.gt.f32.partialorder %v969_v55, 0.0  ;;  %v1329_v56 = vmul.f32 0.2, %v969_v55 }
 0x16e   : > { %v1488_v7 = vsel %vm1232_vm0, %v1047_v50, %v1360_v63  ;;  %v1520_v9 = vsel %vm1264_vm1, %v1127_v52, %v1392_v0 }
 0x16f   : > { %v1425_v58 = vsel %vm1169_vm14, %v889_v53, %v1297_v54  ;;  %v1457_v61 = vsel %vm1201_vm15, %v969_v55, %v1329_v56 }
 0x170   : > { %v2316_v60 = vpack.c.bf16 %v1425_v58, %v1424_v57  ;;  %v2396_v62 = vpack.c.bf16 %v1457_v61, %v1456_v59 }
 0x172   : > { %2580 = vst [vmem:[%s2775_s24 + $0x68] sm:$0xff] %v2316_v60  }
 0x173   : > { %2596 = vst [vmem:[%s2775_s24 + $0xe8] sm:$0xff] %v2396_v62   ;;  %v1049_v1 = vpop.f32.mrf.mxu2  ;;  %v1129_v3 = vpop.f32.mrf.mxu3 }
 0x174   : > { %vm1233_vm2 = vcmp.gt.f32.partialorder %v1049_v1, 0.0  ;;  %v1361_v2 = vmul.f32 0.2, %v1049_v1  ;;  %v892_v4 = vpop.f32.mrf.mxu0  ;;  %vm1265_vm3 = vcmp.gt.f32.partialorder %v1129_v3, 0.0  ;;  %v1393_v5 = vmul.f32 0.2, %v1129_v3  ;;  %v972_v6 = vpop.f32.mrf.mxu1 }
 0x175   : > { %v1298_v13 = vmul.f32 0.2, %v892_v4  ;;  %vm1170_vm4 = vcmp.gt.f32.partialorder %v892_v4, 0.0  ;;  %v1330_v15 = vmul.f32 0.2, %v972_v6  ;;  %vm1202_vm5 = vcmp.gt.f32.partialorder %v972_v6, 0.0 }
 0x176   : > { %v1489_v8 = vsel %vm1233_vm2, %v1049_v1, %v1361_v2  ;;  %v1521_v11 = vsel %vm1265_vm3, %v1129_v3, %v1393_v5 }
 0x177   : > { %v2476_v10 = vpack.c.bf16 %v1489_v8, %v1488_v7  ;;  %v2556_v12 = vpack.c.bf16 %v1521_v11, %v1520_v9  ;;  %v1426_v21 = vsel %vm1170_vm4, %v892_v4, %v1298_v13  ;;  %v1458_v23 = vsel %vm1202_vm5, %v972_v6, %v1330_v15 }
 0x179   : > { %2612 = vst [vmem:[%s2775_s24 + $0x168] sm:$0xff] %v2476_v10  }
 0x17a   : > { %2628 = vst [vmem:[%s2775_s24 + $0x1e8] sm:$0xff] %v2556_v12  }
 0x17b   : > { %v1052_v14 = vpop.f32.mrf.mxu2  ;;  %v1132_v16 = vpop.f32.mrf.mxu3 }
 0x17c   : > { %v894_v17 = vpop.f32.mrf.mxu0  ;;  %v974_v19 = vpop.f32.mrf.mxu1  ;;  %v1362_v27 = vmul.f32 0.2, %v1052_v14  ;;  %vm1234_vm8 = vcmp.gt.f32.partialorder %v1052_v14, 0.0  ;;  %v1394_v28 = vmul.f32 0.2, %v1132_v16  ;;  %vm1266_vm9 = vcmp.gt.f32.partialorder %v1132_v16, 0.0 }
 0x17d   : > { %vm1171_vm6 = vcmp.gt.f32.partialorder %v894_v17, 0.0  ;;  %v1299_v18 = vmul.f32 0.2, %v894_v17  ;;  %vm1203_vm7 = vcmp.gt.f32.partialorder %v974_v19, 0.0  ;;  %v1331_v20 = vmul.f32 0.2, %v974_v19 }
 0x17e   : > { %v1490_v35 = vsel %vm1234_vm8, %v1052_v14, %v1362_v27  ;;  %v1522_v37 = vsel %vm1266_vm9, %v1132_v16, %v1394_v28 }
 0x17f   : > { %v1427_v22 = vsel %vm1171_vm6, %v894_v17, %v1299_v18  ;;  %v1459_v25 = vsel %vm1203_vm7, %v974_v19, %v1331_v20 }
 0x180   : > { %v2321_v24 = vpack.c.bf16 %v1427_v22, %v1426_v21  ;;  %v2401_v26 = vpack.c.bf16 %v1459_v25, %v1458_v23 }
 0x182   : > { %2581 = vst [vmem:[%s2775_s24 + $0x70] sm:$0xff] %v2321_v24  }
 0x183   : > { %2597 = vst [vmem:[%s2775_s24 + $0xf0] sm:$0xff] %v2401_v26   ;;  %v1054_v29 = vpop.f32.mrf.mxu2  ;;  %v1134_v31 = vpop.f32.mrf.mxu3 }
 0x184   : > { %vm1235_vm10 = vcmp.gt.f32.partialorder %v1054_v29, 0.0  ;;  %v1363_v30 = vmul.f32 0.2, %v1054_v29  ;;  %v897_v32 = vpop.f32.mrf.mxu0  ;;  %vm1267_vm11 = vcmp.gt.f32.partialorder %v1134_v31, 0.0  ;;  %v1395_v33 = vmul.f32 0.2, %v1134_v31  ;;  %v977_v34 = vpop.f32.mrf.mxu1 }
 0x185   : > { %v1300_v41 = vmul.f32 0.2, %v897_v32  ;;  %vm1172_vm12 = vcmp.gt.f32.partialorder %v897_v32, 0.0  ;;  %v1332_v43 = vmul.f32 0.2, %v977_v34  ;;  %vm1204_vm13 = vcmp.gt.f32.partialorder %v977_v34, 0.0 }
 0x186   : > { %v1491_v36 = vsel %vm1235_vm10, %v1054_v29, %v1363_v30  ;;  %v1523_v39 = vsel %vm1267_vm11, %v1134_v31, %v1395_v33 }
 0x187   : > { %v2481_v38 = vpack.c.bf16 %v1491_v36, %v1490_v35  ;;  %v2561_v40 = vpack.c.bf16 %v1523_v39, %v1522_v37  ;;  %v1428_v49 = vsel %vm1172_vm12, %v897_v32, %v1300_v41  ;;  %v1460_v51 = vsel %vm1204_vm13, %v977_v34, %v1332_v43 }
 0x189   : > { %2613 = vst [vmem:[%s2775_s24 + $0x170] sm:$0xff] %v2481_v38  }
 0x18a   : > { %2629 = vst [vmem:[%s2775_s24 + $0x1f0] sm:$0xff] %v2561_v40  }
 0x18b   : > { %v1057_v42 = vpop.f32.mrf.mxu2  ;;  %v1137_v44 = vpop.f32.mrf.mxu3 }
 0x18c   : > { %v899_v45 = vpop.f32.mrf.mxu0  ;;  %v979_v47 = vpop.f32.mrf.mxu1  ;;  %v1364_v55 = vmul.f32 0.2, %v1057_v42  ;;  %vm1236_vm0 = vcmp.gt.f32.partialorder %v1057_v42, 0.0  ;;  %v1396_v56 = vmul.f32 0.2, %v1137_v44  ;;  %vm1268_vm1 = vcmp.gt.f32.partialorder %v1137_v44, 0.0 }
 0x18d   : > { %vm1173_vm14 = vcmp.gt.f32.partialorder %v899_v45, 0.0  ;;  %v1301_v46 = vmul.f32 0.2, %v899_v45  ;;  %vm1205_vm15 = vcmp.gt.f32.partialorder %v979_v47, 0.0  ;;  %v1333_v48 = vmul.f32 0.2, %v979_v47 }
 0x18e   : > { %v1492_v61 = vsel %vm1236_vm0, %v1057_v42, %v1364_v55  ;;  %v1524_v63 = vsel %vm1268_vm1, %v1137_v44, %v1396_v56 }
 0x18f   : > { %v1429_v50 = vsel %vm1173_vm14, %v899_v45, %v1301_v46  ;;  %v1461_v53 = vsel %vm1205_vm15, %v979_v47, %v1333_v48 }
 0x190   : > { %v2326_v52 = vpack.c.bf16 %v1429_v50, %v1428_v49  ;;  %v2406_v54 = vpack.c.bf16 %v1461_v53, %v1460_v51 }
 0x192   : > { %2582 = vst [vmem:[%s2775_s24 + $0x78] sm:$0xff] %v2326_v52  }
 0x193   : > { %2598 = vst [vmem:[%s2775_s24 + $0xf8] sm:$0xff] %v2406_v54   ;;  %v1059_v57 = vpop.f32.mrf.mxu2  ;;  %v1139_v59 = vpop.f32.mrf.mxu3 }
 0x194   : > { %vm1237_vm2 = vcmp.gt.f32.partialorder %v1059_v57, 0.0  ;;  %v1365_v58 = vmul.f32 0.2, %v1059_v57  ;;  %vm1269_vm3 = vcmp.gt.f32.partialorder %v1139_v59, 0.0  ;;  %v1397_v60 = vmul.f32 0.2, %v1139_v59 }
 0x196   : > { %v1493_v62 = vsel %vm1237_vm2, %v1059_v57, %v1365_v58  ;;  %v1525_v1 = vsel %vm1269_vm3, %v1139_v59, %v1397_v60 }
 0x197   : > { %v2486_v0 = vpack.c.bf16 %v1493_v62, %v1492_v61  ;;  %v2566_v2 = vpack.c.bf16 %v1525_v1, %v1524_v63 }
 0x199   : > { %2614 = vst [vmem:[%s2775_s24 + $0x178] sm:$0xff] %v2486_v0  }
 0x19a   : > { %2630 = vst [vmem:[%s2775_s24 + $0x1f8] sm:$0xff] %v2566_v2  }
 0x19b PF: > { %s12_s9 = sadd.s32 1, %s2654_s9  }
 0x19c   : > { %p9_p4 = scmp.ge.s32.totalorder %s12_s9, 4  }
 0x19e   :  { %11 = sbr.rel (!%p9_p4) target bundleno = 1 (0x1), region = 58 }

// kernel: netlocalD_forward.6
= control target key start
LH: loop header
LB: loop body
LE: loop exit
PB: predicated region body
PF: predicated region fallthrough
CT: control target
= control target key end

     0   :  { %s3796_s1 = inlined_call_operand.vmem [shape: bf16[128,128], index: 1, kind: input, shape index: {}]   ;;  %s3797_s0 = inlined_call_operand.vmem [shape: bf16[512,128], index: 0, kind: input, shape index: {}]   ;;  %s3798_s2 = inlined_call_operand.vmem [shape: f32[1,128], index: 2, kind: input, shape index: {}]   ;;  %s3799_s3 = inlined_call_operand.vmem [shape: f32[1,128], index: 3, kind: input, shape index: {}]   ;;  %s3800_s4 = inlined_call_operand.vmem [shape: bf16[512,128], index: 4, kind: output, shape index: {}]  }
   0x1   :  { %v1515_v0 = vld [vmem:[%s3796_s1 + $0x38] sm:$0xff]  ;;  %v1514_v1 = vld [vmem:[%s3796_s1 + $0x30] sm:$0xff]  ;;  %v1513_v2 = vld [vmem:[%s3796_s1 + $0x28] sm:$0xff] }
   0x2   :  { %337 = vmatpush.bf16.msra.mxu0 %v1515_v0  ;;  %1707 = vmatpush.bf16.msra.mxu1 %v1515_v0  ;;  %v1512_v3 = vld [vmem:[%s3796_s1 + $0x20] sm:$0xff]  ;;  %v1511_v4 = vld [vmem:[%s3796_s1 + $0x18] sm:$0xff]  ;;  %v1510_v5 = vld [vmem:[%s3796_s1 + $0x10] sm:$0xff] }
   0x3   :  { %1708 = vmatpush.bf16.msra.mxu2 %v1515_v0  ;;  %1709 = vmatpush.bf16.msra.mxu3 %v1515_v0  ;;  %v1509_v6 = vld [vmem:[%s3796_s1 + $0x8] sm:$0xff]  ;;  %v1508_v7 = vld [vmem:[%s3796_s1] sm:$0xff]  ;;  %v1478_v13 = vld [vmem:[%s3797_s0 + $0x10] sm:$0xff] }
   0x4   :  { %v1476_v8 = vld [vmem:[%s3797_s0] sm:$0xff]  ;;  %v1477_v10 = vld [vmem:[%s3797_s0 + $0x8] sm:$0xff]  ;;  %v1486_v14 = vld [vmem:[%s3797_s0 + $0x50] sm:$0xff] }
   0x5   :  { %v1484_v9 = vld [vmem:[%s3797_s0 + $0x40] sm:$0xff]  ;;  %v1485_v11 = vld [vmem:[%s3797_s0 + $0x48] sm:$0xff]  ;;  %v1479_v16 = vld [vmem:[%s3797_s0 + $0x18] sm:$0xff] }
   0x6   :  { %338 = vmatpush.bf16.msra.mxu0 %v1514_v1  ;;  %1710 = vmatpush.bf16.msra.mxu1 %v1514_v1  ;;  %v1492_v12 = vld [vmem:[%s3797_s0 + $0x80] sm:$0xff]  ;;  %v1493_v15 = vld [vmem:[%s3797_s0 + $0x88] sm:$0xff]  ;;  %v1487_v17 = vld [vmem:[%s3797_s0 + $0x58] sm:$0xff] }
   0x7   :  { %1711 = vmatpush.bf16.msra.mxu2 %v1514_v1  ;;  %1712 = vmatpush.bf16.msra.mxu3 %v1514_v1  ;;  %v1494_v18 = vld [vmem:[%s3797_s0 + $0x90] sm:$0xff]  ;;  %v1500_v19 = vld [vmem:[%s3797_s0 + $0xc0] sm:$0xff]  ;;  %v1495_v22 = vld [vmem:[%s3797_s0 + $0x98] sm:$0xff] }
   0x8   :  { %v1480_v20 = vld [vmem:[%s3797_s0 + $0x20] sm:$0xff]  ;;  %v1501_v23 = vld [vmem:[%s3797_s0 + $0xc8] sm:$0xff]  ;;  %v1502_v27 = vld [vmem:[%s3797_s0 + $0xd0] sm:$0xff] }
   0x9   :  { %v1488_v21 = vld [vmem:[%s3797_s0 + $0x60] sm:$0xff]  ;;  %v1481_v24 = vld [vmem:[%s3797_s0 + $0x28] sm:$0xff]  ;;  %v1482_v28 = vld [vmem:[%s3797_s0 + $0x30] sm:$0xff] }
   0xa   :  { %339 = vmatpush.bf16.msra.mxu0 %v1513_v2  ;;  %1713 = vmatpush.bf16.msra.mxu1 %v1513_v2  ;;  %v1489_v25 = vld [vmem:[%s3797_s0 + $0x68] sm:$0xff]  ;;  %v1496_v26 = vld [vmem:[%s3797_s0 + $0xa0] sm:$0xff]  ;;  %v1490_v29 = vld [vmem:[%s3797_s0 + $0x70] sm:$0xff] }
   0xb   :  { %1714 = vmatpush.bf16.msra.mxu2 %v1513_v2  ;;  %1715 = vmatpush.bf16.msra.mxu3 %v1513_v2  ;;  %v1497_v30 = vld [vmem:[%s3797_s0 + $0xa8] sm:$0xff]  ;;  %v1503_v31 = vld [vmem:[%s3797_s0 + $0xd8] sm:$0xff]  ;;  %v1498_v34 = vld [vmem:[%s3797_s0 + $0xb0] sm:$0xff] }
   0xc   :  { %v1483_v32 = vld [vmem:[%s3797_s0 + $0x38] sm:$0xff]  ;;  %v1504_v35 = vld [vmem:[%s3797_s0 + $0xe0] sm:$0xff]  ;;  %v1505_v38 = vld [vmem:[%s3797_s0 + $0xe8] sm:$0xff] }
   0xd   :  { %v1491_v33 = vld [vmem:[%s3797_s0 + $0x78] sm:$0xff]  ;;  %v1506_v43 = vld [vmem:[%s3797_s0 + $0xf0] sm:$0xff] }
   0xe   :  { %340 = vmatpush.bf16.msra.mxu0 %v1512_v3  ;;  %1716 = vmatpush.bf16.msra.mxu1 %v1512_v3  ;;  %v1499_v37 = vld [vmem:[%s3797_s0 + $0xb8] sm:$0xff] }
   0xf   :  { %1717 = vmatpush.bf16.msra.mxu2 %v1512_v3  ;;  %1718 = vmatpush.bf16.msra.mxu3 %v1512_v3  ;;  %v1507_v48 = vld [vmem:[%s3797_s0 + $0xf8] sm:$0xff] }
  0x12   :  { %341 = vmatpush.bf16.msra.mxu0 %v1511_v4  ;;  %1719 = vmatpush.bf16.msra.mxu1 %v1511_v4 }
  0x13   :  { %1720 = vmatpush.bf16.msra.mxu2 %v1511_v4  ;;  %1721 = vmatpush.bf16.msra.mxu3 %v1511_v4 }
  0x16   :  { %342 = vmatpush.bf16.msra.mxu0 %v1510_v5  ;;  %1722 = vmatpush.bf16.msra.mxu1 %v1510_v5 }
  0x17   :  { %1723 = vmatpush.bf16.msra.mxu2 %v1510_v5  ;;  %1724 = vmatpush.bf16.msra.mxu3 %v1510_v5 }
  0x1a   :  { %343 = vmatpush.bf16.msra.mxu0 %v1509_v6  ;;  %1725 = vmatpush.bf16.msra.mxu1 %v1509_v6 }
  0x1b   :  { %1726 = vmatpush.bf16.msra.mxu2 %v1509_v6  ;;  %1727 = vmatpush.bf16.msra.mxu3 %v1509_v6 }
  0x1e   :  { %344 = vmatpush.bf16.msra.mxu0 %v1508_v7  ;;  %1728 = vmatpush.bf16.msra.mxu1 %v1508_v7 }
  0x1f   :  { %1729 = vmatpush.bf16.msra.mxu2 %v1508_v7  ;;  %1730 = vmatpush.bf16.msra.mxu3 %v1508_v7 }
  0x21   :  { %345 = vmatmul.bf16.vlgmr.msra.gmra.mxu0 %v1476_v8  ;;  %385 = vmatmul.bf16.vlgmr.msra.gmra.mxu1 %v1484_v9 }
  0x22   :  { %425 = vmatmul.bf16.vlgmr.msra.gmra.mxu2 %v1492_v12  ;;  %465 = vmatmul.bf16.vlgmr.msra.gmra.mxu3 %v1500_v19 }
  0x31   :  { %350 = vmatmul.bf16.gmra.mxu0 %v1477_v10  ;;  %390 = vmatmul.bf16.gmra.mxu1 %v1485_v11 }
  0x32   :  { %430 = vmatmul.bf16.gmra.mxu2 %v1493_v15  ;;  %470 = vmatmul.bf16.gmra.mxu3 %v1501_v23 }
  0x41   :  { %355 = vmatmul.bf16.gmra.mxu0 %v1478_v13  ;;  %395 = vmatmul.bf16.gmra.mxu1 %v1486_v14 }
  0x42   :  { %435 = vmatmul.bf16.gmra.mxu2 %v1494_v18  ;;  %475 = vmatmul.bf16.gmra.mxu3 %v1502_v27 }
  0x51   :  { %360 = vmatmul.bf16.gmra.mxu0 %v1479_v16  ;;  %400 = vmatmul.bf16.gmra.mxu1 %v1487_v17 }
  0x52   :  { %440 = vmatmul.bf16.gmra.mxu2 %v1495_v22  ;;  %480 = vmatmul.bf16.gmra.mxu3 %v1503_v31 }
  0x61   :  { %365 = vmatmul.bf16.gmra.mxu0 %v1480_v20  ;;  %405 = vmatmul.bf16.gmra.mxu1 %v1488_v21 }
  0x62   :  { %445 = vmatmul.bf16.gmra.mxu2 %v1496_v26  ;;  %485 = vmatmul.bf16.gmra.mxu3 %v1504_v35 }
  0x71   :  { %370 = vmatmul.bf16.gmra.mxu0 %v1481_v24  ;;  %410 = vmatmul.bf16.gmra.mxu1 %v1489_v25 }
  0x72   :  { %450 = vmatmul.bf16.gmra.mxu2 %v1497_v30  ;;  %490 = vmatmul.bf16.gmra.mxu3 %v1505_v38 }
  0x81   :  { %375 = vmatmul.bf16.gmra.mxu0 %v1482_v28  ;;  %415 = vmatmul.bf16.gmra.mxu1 %v1490_v29 }
  0x82   :  { %455 = vmatmul.bf16.gmra.mxu2 %v1498_v34  ;;  %495 = vmatmul.bf16.gmra.mxu3 %v1506_v43 }
  0x91   :  { %380 = vmatmul.bf16.gmra.mxu0 %v1483_v32  ;;  %420 = vmatmul.bf16.gmra.mxu1 %v1491_v33 }
  0x92   :  { %460 = vmatmul.bf16.gmra.mxu2 %v1499_v37  ;;  %500 = vmatmul.bf16.gmra.mxu3 %v1507_v48 }
  0x9e   :  { %v1872_v36 = vpop.f32.mrf.mxu0  ;;  %v1880_v39 = vpop.f32.mrf.mxu1 }
  0xa5   :  { %v1902_v49 = vpop.f32.mrf.mxu2  ;;  %v1924_v60 = vpop.f32.mrf.mxu3 }
  0xa6   :  { %v1882_v40 = vpop.f32.mrf.mxu0  ;;  %v1884_v41 = vpop.f32.mrf.mxu1  ;;  %3863 = vst [vmem:[#allocation2_spill] sm:$0xff] %v1902_v49 }
  0xa7   :  { %3865 = vst [vmem:[#allocation4_spill] sm:$0xff] %v1924_v60  ;;  %v506_v7 = vadd.f32 %v1882_v40, %v1872_v36 }
  0xad   :  { %v1908_v52 = vpop.f32.mrf.mxu2  ;;  %v1932_v0 = vpop.f32.mrf.mxu3 }
  0xae   :  { %v1886_v42 = vpop.f32.mrf.mxu0  ;;  %v1891_v44 = vpop.f32.mrf.mxu1  ;;  %3864 = vst [vmem:[#allocation3_spill] sm:$0xff] %v1908_v52 }
  0xaf   :  { %v507_v9 = vadd.f32 %v506_v7, %v1886_v42 }
  0xb5   :  { %v1914_v55 = vpop.f32.mrf.mxu2  ;;  %v1940_v4 = vpop.f32.mrf.mxu3 }
  0xb6   :  { %v1893_v45 = vpop.f32.mrf.mxu0  ;;  %v1897_v47 = vpop.f32.mrf.mxu1 }
  0xb7   :  { %v508_v12 = vadd.f32 %v507_v9, %v1893_v45 }
  0xbd   :  { %v1922_v59 = vpop.f32.mrf.mxu2  ;;  %v1953_v11 = vpop.f32.mrf.mxu3 }
  0xbe   :  { %v1895_v46 = vpop.f32.mrf.mxu0  ;;  %v1906_v51 = vpop.f32.mrf.mxu1 }
  0xbf   :  { %v509_v13 = vadd.f32 %v508_v12, %v1895_v46 }
  0xc5   :  { %v1930_v63 = vpop.f32.mrf.mxu2  ;;  %v1966_v20 = vpop.f32.mrf.mxu3 }
  0xc6   :  { %v1904_v50 = vpop.f32.mrf.mxu0  ;;  %v1912_v54 = vpop.f32.mrf.mxu1  ;;  %3869 = vst [vmem:[#allocation8_spill] sm:$0xff] %v1966_v20 }
  0xc7   :  { %v510_v14 = vadd.f32 %v509_v13, %v1904_v50 }
  0xcd   :  { %v1938_v3 = vpop.f32.mrf.mxu2  ;;  %v1979_v29 = vpop.f32.mrf.mxu3 }
  0xce   :  { %v1910_v53 = vpop.f32.mrf.mxu0  ;;  %v1918_v57 = vpop.f32.mrf.mxu1  ;;  %3866 = vst [vmem:[#allocation5_spill] sm:$0xff] %v1938_v3 }
  0xcf   :  { %v511_v16 = vadd.f32 %v510_v14, %v1910_v53  ;;  %3870 = vst [vmem:[#allocation9_spill] sm:$0xff] %v1979_v29 }
  0xd5   :  { %v1948_v8 = vpop.f32.mrf.mxu2  ;;  %v1992_v43 = vpop.f32.mrf.mxu3 }
  0xd6   :  { %v1916_v56 = vpop.f32.mrf.mxu0  ;;  %v1928_v62 = vpop.f32.mrf.mxu1  ;;  %3867 = vst [vmem:[#allocation6_spill] sm:$0xff] %v1948_v8 }
  0xd7   :  { %v512_v19 = vadd.f32 %v511_v16, %v1916_v56  ;;  %3871 = vst [vmem:[#allocation10_spill] sm:$0xff] %v1992_v43 }
  0xdd   :  { %v1963_v18 = vpop.f32.mrf.mxu2 }
  0xde   :  { %v1920_v58 = vpop.f32.mrf.mxu0  ;;  %v1936_v2 = vpop.f32.mrf.mxu1  ;;  %3868 = vst [vmem:[#allocation7_spill] sm:$0xff] %v1963_v18 }
  0xdf   :  { %v513_v21 = vadd.f32 %v512_v19, %v1920_v58  ;;  %v2003_v19 = vpop.f32.mrf.mxu3 }
  0xe0   :  { %3873 = vst [vmem:[#allocation12_spill] sm:$0xff] %v2003_v19 }
  0xe5   :  { %v1976_v27 = vpop.f32.mrf.mxu2 }
  0xe6   :  { %v1926_v61 = vpop.f32.mrf.mxu0  ;;  %v1944_v6 = vpop.f32.mrf.mxu1 }
  0xe7   :  { %v514_v22 = vadd.f32 %v513_v21, %v1926_v61 }
  0xed   :  { %v1989_v37 = vpop.f32.mrf.mxu2 }
  0xee   :  { %v1934_v1 = vpop.f32.mrf.mxu0  ;;  %v1958_v15 = vpop.f32.mrf.mxu1 }
  0xef   :  { %v515_v23 = vadd.f32 %v514_v22, %v1934_v1 }
  0xf5   :  { %v2000_v14 = vpop.f32.mrf.mxu2 }
  0xf6   :  { %v1942_v5 = vpop.f32.mrf.mxu0  ;;  %v1973_v25 = vpop.f32.mrf.mxu1  ;;  %3872 = vst [vmem:[#allocation11_spill] sm:$0xff] %v2000_v14 }
  0xf7   :  { %v516_v26 = vadd.f32 %v515_v23, %v1942_v5 }
  0xfe   :  { %v1951_v10 = vpop.f32.mrf.mxu0  ;;  %v1986_v34 = vpop.f32.mrf.mxu1 }
  0xff   :  { %v517_v28 = vadd.f32 %v516_v26, %v1951_v10 }
 0x106   :  { %v1961_v17 = vpop.f32.mrf.mxu0  ;;  %v1997_v12 = vpop.f32.mrf.mxu1 }
 0x107   :  { %v518_v30 = vadd.f32 %v517_v28, %v1961_v17 }
 0x10e   :  { %v1971_v24 = vpop.f32.mrf.mxu0  ;;  %v2008_v26 = vpop.f32.mrf.mxu1 }
 0x10f   :  { %v519_v31 = vadd.f32 %v518_v30, %v1971_v24  ;;  %3874 = vst [vmem:[#allocation13_spill] sm:$0xff] %v2008_v26  ;;  %v2011_v30 = vpop.f32.mrf.mxu2 }
 0x110   :  { %3875 = vst [vmem:[#allocation14_spill] sm:$0xff] %v2011_v30 }
 0x116   :  { %v1983_v32 = vpop.f32.mrf.mxu0 }
 0x117   :  { %v520_v33 = vadd.f32 %v519_v31, %v1983_v32 }
 0x119   :  { %v521_v35 = vadd.f32 %v520_v33, %v1880_v39  ;;  %v2014_v33 = vpop.f32.mrf.mxu3 }
 0x11a   :  { %3876 = vst [vmem:[#allocation15_spill] sm:$0xff] %v2014_v33 }
 0x11b   :  { %v522_v38 = vadd.f32 %v521_v35, %v1884_v41 }
 0x11d   :  { %v523_v48 = vadd.f32 %v522_v38, %v1891_v44 }
 0x11f   :  { %v524_v7 = vadd.f32 %v523_v48, %v1897_v47 }
 0x121   :  { %v525_v9 = vadd.f32 %v524_v7, %v1906_v51  ;;  %v2019_v7 = vpop.f32.mrf.mxu1 }
 0x123   :  { %v526_v13 = vadd.f32 %v525_v9, %v1912_v54 }
 0x125   :  { %v527_v16 = vadd.f32 %v526_v13, %v1918_v57  ;;  %v2022_v13 = vpop.f32.mrf.mxu2 }
 0x127   :  { %v528_v21 = vadd.f32 %v527_v16, %v1928_v62 }
 0x129   :  { %v529_v22 = vadd.f32 %v528_v21, %v1936_v2  ;;  %v2025_v21 = vpop.f32.mrf.mxu3 }
 0x12a   :  { %3877 = vst [vmem:[#allocation16_spill] sm:$0xff] %v2025_v21 }
 0x12b   :  { %v530_v23 = vadd.f32 %v529_v22, %v1944_v6 }
 0x12d   :  { %v531_v28 = vadd.f32 %v530_v23, %v1958_v15 }
 0x12f   :  { %v532_v31 = vadd.f32 %v531_v28, %v1973_v25 }
 0x131   :  { %v533_v35 = vadd.f32 %v532_v31, %v1986_v34 }
 0x133   :  { %v534_v38 = vadd.f32 %v533_v35, %v1997_v12  ;;  %v2031_v35 = vpop.f32.mrf.mxu2 }
 0x135   :  { %v535_v48 = vadd.f32 %v534_v38, %v2008_v26  ;;  %v2034_v26 = vpop.f32.mrf.mxu3 }
 0x136   :  { %3878 = vst [vmem:[#allocation17_spill] sm:$0xff] %v2034_v26 }
 0x137   :  { %v536_v9 = vadd.f32 %v535_v48, %v2019_v7 }
 0x139   :  { %v537_v16 = vadd.f32 %v536_v9, %v1902_v49 }
 0x13b   :  { %v538_v22 = vadd.f32 %v537_v16, %v1908_v52  ;;  %v2040_v52 = vpop.f32.mrf.mxu2 }
 0x13d   :  { %v539_v23 = vadd.f32 %v538_v22, %v1914_v55 }
 0x13f   :  { %v540_v28 = vadd.f32 %v539_v23, %v1922_v59  ;;  %v2043_v23 = vpop.f32.mrf.mxu3 }
 0x141   :  { %v541_v31 = vadd.f32 %v540_v28, %v1930_v63 }
 0x143   :  { %v542_v38 = vadd.f32 %v541_v31, %v1938_v3 }
 0x145   :  { %v543_v48 = vadd.f32 %v542_v38, %v1948_v8  ;;  %v463_v8 = vpop.f32.mrf.mxu2 }
 0x147   :  { %v544_v9 = vadd.f32 %v543_v48, %v1963_v18  ;;  %v2049_v18 = vpop.f32.mrf.mxu3 }
 0x148   :  { %3879 = vst [vmem:[#allocation18_spill] sm:$0xff] %v2049_v18 }
 0x149   :  { %v545_v49 = vadd.f32 %v544_v9, %v1976_v27 }
 0x14b   :  { %v546_v16 = vadd.f32 %v545_v49, %v1989_v37 }
 0x14d   :  { %v547_v22 = vadd.f32 %v546_v16, %v2000_v14 }
 0x14f   :  { %v548_v28 = vadd.f32 %v547_v22, %v2011_v30  ;;  %v2056_v30 = vpop.f32.mrf.mxu3 }
 0x151   :  { %v549_v31 = vadd.f32 %v548_v28, %v2022_v13 }
 0x153   :  { %v550_v3 = vadd.f32 %v549_v31, %v2031_v35 }
 0x155   :  { %v551_v38 = vadd.f32 %v550_v3, %v2040_v52 }
 0x157   :  { %v552_v48 = vadd.f32 %v551_v38, %v463_v8 }
 0x159   :  { %v553_v49 = vadd.f32 %v552_v48, %v1924_v60  ;;  %v2063_v60 = vpop.f32.mrf.mxu3 }
 0x15b   :  { %v554_v9 = vadd.f32 %v553_v49, %v1932_v0 }
 0x15d   :  { %v555_v16 = vadd.f32 %v554_v9, %v1940_v4 }
 0x15f   :  { %v556_v14 = vadd.f32 %v555_v16, %v1953_v11  ;;  %v1738_v16 = vmov 512.0  }
 0x160   :  { %1734 = vrcp.f32 %v1738_v16 }
 0x161   :  { %v557_v22 = vadd.f32 %v556_v14, %v1966_v20 }
 0x163   :  { %v558_v28 = vadd.f32 %v557_v22, %v1979_v29 }
 0x165   :  { %v559_v3 = vadd.f32 %v558_v28, %v1992_v43  ;;  %v503_v43 = vpop.f32.mrf.mxu3 }
 0x167   :  { %v560_v31 = vadd.f32 %v559_v3, %v2003_v19  ;;  %v1735_v19 = vpop.eup %1734 }
 0x168   :  { %vm580_vm0 = vweird.f32 %v1735_v19 }
 0x169   :  { %v561_v38 = vadd.f32 %v560_v31, %v2014_v33 }
 0x16b   :  { %v562_v48 = vadd.f32 %v561_v38, %v2025_v21  ;;  %v576_v38 = vmul.f32 512.0, %v1735_v19 }
 0x16d   :  { %v563_v49 = vadd.f32 %v562_v48, %v2034_v26  ;;  %v577_v29 = vsub.f32 1.0, %v576_v38 }
 0x16f   :  { %v564_v9 = vadd.f32 %v563_v49, %v2043_v23  ;;  %v578_v48 = vmul.f32 %v1735_v19, %v577_v29 }
 0x171   :  { %v565_v14 = vadd.f32 %v564_v9, %v2049_v18  ;;  %v579_v49 = vadd.f32 %v1735_v19, %v578_v48 }
 0x173   :  { %v566_v22 = vadd.f32 %v565_v14, %v2056_v30  ;;  %v2070_v18 = vsel %vm580_vm0, %v1735_v19, %v579_v49 }
 0x175   :  { %v567_v28 = vadd.f32 %v566_v22, %v2063_v60 }
 0x177   :  { %v568_v3 = vadd.f32 %v567_v28, %v503_v43 }
 0x179   :  { %v569_v31 = vrot.slane %v568_v3, 4 }
 0x17b   :  { %v570_v33 = vadd.f32 %v569_v31, %v568_v3 }
 0x17d   :  { %v571_v21 = vrot.slane %v570_v33, 2 }
 0x17f   :  { %v572_v20 = vadd.f32 %v571_v21, %v570_v33 }
 0x181   :  { %v573_v26 = vrot.slane %v572_v20, 1 }
 0x183   :  { %v574_v9 = vadd.f32 %v573_v26, %v572_v20 }
 0x185   :  { %v2073_v14 = vmul.f32 %v2070_v18, %v574_v9 }
 0x187   :  { %v2076_v16 = vsub.f32 %v463_v8, %v2073_v14  ;;  %v2079_v22 = vsub.f32 %v503_v43, %v2073_v14  ;;  %v2083_v28 = vsub.f32 %v1872_v36, %v2073_v14  ;;  %v2087_v29 = vsub.f32 %v1882_v40, %v2073_v14 }
 0x188   :  { %v2091_v20 = vsub.f32 %v1886_v42, %v2073_v14  ;;  %v2099_v43 = vsub.f32 %v1893_v45, %v2073_v14  ;;  %v2103_v36 = vsub.f32 %v1895_v46, %v2073_v14  ;;  %v2109_v42 = vsub.f32 %v1904_v50, %v2073_v14 }
 0x189   :  { %3880 = vst [vmem:[#allocation19_spill] sm:$0xff] %v2076_v16  ;;  %v647_v19 = vmul.f32 %v2083_v28, %v2083_v28  ;;  %v648_v8 = vmul.f32 %v2087_v29, %v2087_v29  ;;  %v2115_v45 = vsub.f32 %v1910_v53, %v2073_v14  ;;  %v2121_v31 = vsub.f32 %v1916_v56, %v2073_v14 }
 0x18a   :  { %v649_v40 = vmul.f32 %v2091_v20, %v2091_v20  ;;  %v650_v33 = vmul.f32 %v2099_v43, %v2099_v43  ;;  %v651_v46 = vmul.f32 %v2103_v36, %v2103_v36  ;;  %v652_v50 = vmul.f32 %v2109_v42, %v2109_v42 }
 0x18b   :  { %v711_v26 = vadd.f32 %v648_v8, %v647_v19  ;;  %v2127_v48 = vsub.f32 %v1920_v58, %v2073_v14  ;;  %v653_v53 = vmul.f32 %v2115_v45, %v2115_v45  ;;  %v2133_v9 = vsub.f32 %v1926_v61, %v2073_v14 }
 0x18c   :  { %v654_v56 = vmul.f32 %v2121_v31, %v2121_v31  ;;  %v2139_v8 = vsub.f32 %v1934_v1, %v2073_v14 }
 0x18d   :  { %v712_v21 = vadd.f32 %v711_v26, %v649_v40  ;;  %v655_v58 = vmul.f32 %v2127_v48, %v2127_v48  ;;  %v2145_v26 = vsub.f32 %v1942_v5, %v2073_v14  ;;  %v656_v61 = vmul.f32 %v2133_v9, %v2133_v9 }
 0x18e   :  { %v657_v1 = vmul.f32 %v2139_v8, %v2139_v8 }
 0x18f   :  { %v713_v3 = vadd.f32 %v712_v21, %v650_v33  ;;  %v2151_v21 = vsub.f32 %v1951_v10, %v2073_v14  ;;  %v658_v5 = vmul.f32 %v2145_v26, %v2145_v26 }
 0x191   :  { %v714_v38 = vadd.f32 %v713_v3, %v651_v46  ;;  %v2157_v3 = vsub.f32 %v1961_v17, %v2073_v14  ;;  %v659_v10 = vmul.f32 %v2151_v21, %v2151_v21 }
 0x193   :  { %v715_v49 = vadd.f32 %v714_v38, %v652_v50  ;;  %v2163_v38 = vsub.f32 %v1971_v24, %v2073_v14  ;;  %v660_v17 = vmul.f32 %v2157_v3, %v2157_v3 }
 0x195   :  { %v716_v19 = vadd.f32 %v715_v49, %v653_v53  ;;  %v2169_v49 = vsub.f32 %v1983_v32, %v2073_v14  ;;  %v661_v24 = vmul.f32 %v2163_v38, %v2163_v38 }
 0x197   :  { %v717_v40 = vadd.f32 %v716_v19, %v654_v56  ;;  %v2175_v19 = vsub.f32 %v1880_v39, %v2073_v14  ;;  %v662_v32 = vmul.f32 %v2169_v49, %v2169_v49 }
 0x199   :  { %v718_v33 = vadd.f32 %v717_v40, %v655_v58  ;;  %v2181_v40 = vsub.f32 %v1884_v41, %v2073_v14  ;;  %v663_v39 = vmul.f32 %v2175_v19, %v2175_v19 }
 0x19b   :  { %v719_v46 = vadd.f32 %v718_v33, %v656_v61  ;;  %v2187_v33 = vsub.f32 %v1891_v44, %v2073_v14  ;;  %v664_v41 = vmul.f32 %v2181_v40, %v2181_v40 }
 0x19d   :  { %v720_v50 = vadd.f32 %v719_v46, %v657_v1  ;;  %v2193_v46 = vsub.f32 %v1897_v47, %v2073_v14  ;;  %v665_v44 = vmul.f32 %v2187_v33, %v2187_v33 }
 0x19f   :  { %v721_v53 = vadd.f32 %v720_v50, %v658_v5  ;;  %v2199_v50 = vsub.f32 %v1906_v51, %v2073_v14  ;;  %v666_v47 = vmul.f32 %v2193_v46, %v2193_v46 }
 0x1a1   :  { %v722_v56 = vadd.f32 %v721_v53, %v659_v10  ;;  %v2205_v53 = vsub.f32 %v1912_v54, %v2073_v14  ;;  %v667_v51 = vmul.f32 %v2199_v50, %v2199_v50 }
 0x1a3   :  { %v723_v58 = vadd.f32 %v722_v56, %v660_v17  ;;  %v2211_v56 = vsub.f32 %v1918_v57, %v2073_v14  ;;  %v668_v54 = vmul.f32 %v2205_v53, %v2205_v53 }
 0x1a5   :  { %v724_v61 = vadd.f32 %v723_v58, %v661_v24  ;;  %v2217_v58 = vsub.f32 %v1928_v62, %v2073_v14  ;;  %v669_v57 = vmul.f32 %v2211_v56, %v2211_v56 }
 0x1a7   :  { %v725_v1 = vadd.f32 %v724_v61, %v662_v32  ;;  %v2223_v61 = vsub.f32 %v1936_v2, %v2073_v14  ;;  %v670_v62 = vmul.f32 %v2217_v58, %v2217_v58 }
 0x1a9   :  { %v726_v5 = vadd.f32 %v725_v1, %v663_v39  ;;  %v2229_v1 = vsub.f32 %v1944_v6, %v2073_v14  ;;  %v671_v2 = vmul.f32 %v2223_v61, %v2223_v61 }
 0x1ab   :  { %v727_v10 = vadd.f32 %v726_v5, %v664_v41  ;;  %v2235_v5 = vsub.f32 %v1958_v15, %v2073_v14  ;;  %v672_v6 = vmul.f32 %v2229_v1, %v2229_v1 }
 0x1ad   :  { %v728_v17 = vadd.f32 %v727_v10, %v665_v44  ;;  %v2241_v10 = vsub.f32 %v1973_v25, %v2073_v14  ;;  %v673_v15 = vmul.f32 %v2235_v5, %v2235_v5 }
 0x1af   :  { %v729_v24 = vadd.f32 %v728_v17, %v666_v47  ;;  %v2247_v17 = vsub.f32 %v1986_v34, %v2073_v14  ;;  %v674_v25 = vmul.f32 %v2241_v10, %v2241_v10 }
 0x1b1   :  { %v730_v32 = vadd.f32 %v729_v24, %v667_v51  ;;  %v2253_v24 = vsub.f32 %v1997_v12, %v2073_v14  ;;  %v675_v34 = vmul.f32 %v2247_v17, %v2247_v17 }
 0x1b3   :  { %v731_v39 = vadd.f32 %v730_v32, %v668_v54  ;;  %v3881_v32 = vld [vmem:[#allocation13_spill] sm:$0xff]  ;;  %v676_v12 = vmul.f32 %v2253_v24, %v2253_v24 }
 0x1b5   :  { %v732_v41 = vadd.f32 %v731_v39, %v669_v57  ;;  %v2259_v57 = vsub.f32 %v3881_v32, %v2073_v14 }
 0x1b7   :  { %v733_v44 = vadd.f32 %v732_v41, %v670_v62  ;;  %v2265_v62 = vsub.f32 %v2019_v7, %v2073_v14 }
 0x1b9   :  { %v734_v47 = vadd.f32 %v733_v44, %v671_v2  ;;  %v3882_v2 = vld [vmem:[#allocation2_spill] sm:$0xff]  ;;  %v678_v7 = vmul.f32 %v2265_v62, %v2265_v62 }
 0x1ba   :  { %v2271_v44 = vsub.f32 %v3882_v2, %v2073_v14  ;;  %v2295_v2 = vsub.f32 %v1930_v63, %v2073_v14 }
 0x1bb   :  { %v735_v51 = vadd.f32 %v734_v47, %v672_v6  ;;  %v677_v6 = vmul.f32 %v2259_v57, %v2259_v57 }
 0x1bc   :  { %v679_v32 = vmul.f32 %v2271_v44, %v2271_v44  ;;  %v683_v63 = vmul.f32 %v2295_v2, %v2295_v2 }
 0x1bd   :  { %v736_v54 = vadd.f32 %v735_v51, %v673_v15  ;;  %v3883_v15 = vld [vmem:[#allocation3_spill] sm:$0xff] }
 0x1be   :  { %v2277_v51 = vsub.f32 %v3883_v15, %v2073_v14 }
 0x1bf   :  { %v737_v39 = vadd.f32 %v736_v54, %v674_v25  ;;  %v2283_v54 = vsub.f32 %v1914_v55, %v2073_v14 }
 0x1c0   :  { %3884 = vst [vmem:[#allocation13_spill] sm:$0xff] %v2277_v51 }
 0x1c1   :  { %v738_v41 = vadd.f32 %v737_v39, %v675_v34  ;;  %3885 = vst [vmem:[#allocation2_spill] sm:$0xff] %v2283_v54  ;;  %v2289_v39 = vsub.f32 %v1922_v59, %v2073_v14  ;;  %v681_v55 = vmul.f32 %v2283_v54, %v2283_v54 }
 0x1c3   :  { %v739_v47 = vadd.f32 %v738_v41, %v676_v12  ;;  %v680_v12 = vmul.f32 %v2277_v51, %v2277_v51  ;;  %v682_v59 = vmul.f32 %v2289_v39, %v2289_v39 }
 0x1c5   :  { %v740_v25 = vadd.f32 %v739_v47, %v677_v6  ;;  %v3886_v47 = vld [vmem:[#allocation5_spill] sm:$0xff] }
 0x1c6   :  { %v2301_v15 = vsub.f32 %v3886_v47, %v2073_v14  ;;  %v2319_v47 = vsub.f32 %v1976_v27, %v2073_v14 }
 0x1c7   :  { %v741_v34 = vadd.f32 %v740_v25, %v678_v7  ;;  %v3888_v25 = vld [vmem:[#allocation6_spill] sm:$0xff] }
 0x1c8   :  { %3887 = vst [vmem:[#allocation3_spill] sm:$0xff] %v2301_v15  ;;  %v2307_v51 = vsub.f32 %v3888_v25, %v2073_v14  ;;  %v2325_v25 = vsub.f32 %v1989_v37, %v2073_v14  ;;  %v687_v27 = vmul.f32 %v2319_v47, %v2319_v47 }
 0x1c9   :  { %v742_v41 = vadd.f32 %v741_v34, %v679_v32  ;;  %v3890_v34 = vld [vmem:[#allocation7_spill] sm:$0xff] }
 0x1ca   :  { %3889 = vst [vmem:[#allocation5_spill] sm:$0xff] %v2307_v51  ;;  %v2313_v54 = vsub.f32 %v3890_v34, %v2073_v14  ;;  %v3891_v34 = vld [vmem:[#allocation11_spill] sm:$0xff]  ;;  %v688_v37 = vmul.f32 %v2325_v25, %v2325_v25 }
 0x1cb   :  { %v743_v6 = vadd.f32 %v742_v41, %v680_v12  ;;  %v684_v12 = vmul.f32 %v2301_v15, %v2301_v15  ;;  %v2331_v15 = vsub.f32 %v3891_v34, %v2073_v14  ;;  %v2349_v34 = vsub.f32 %v2031_v35, %v2073_v14 }
 0x1cd   :  { %v744_v7 = vadd.f32 %v743_v6, %v681_v55  ;;  %v685_v55 = vmul.f32 %v2307_v51, %v2307_v51 }
 0x1cf   :  { %v745_v32 = vadd.f32 %v744_v7, %v682_v59  ;;  %v686_v59 = vmul.f32 %v2313_v54, %v2313_v54 }
 0x1d1   :  { %v746_v41 = vadd.f32 %v745_v32, %v683_v63  ;;  %v3892_v32 = vld [vmem:[#allocation14_spill] sm:$0xff] }
 0x1d2   :  { %v2337_v51 = vsub.f32 %v3892_v32, %v2073_v14  ;;  %v2355_v32 = vsub.f32 %v2040_v52, %v2073_v14  ;;  %v2369_v52 = vsub.f32 %v1932_v0, %v2073_v14 }
 0x1d3   :  { %v747_v6 = vadd.f32 %v746_v41, %v684_v12  ;;  %v2343_v41 = vsub.f32 %v2022_v13, %v2073_v14 }
 0x1d4   :  { %3893 = vst [vmem:[#allocation6_spill] sm:$0xff] %v2337_v51  ;;  %v696_v0 = vmul.f32 %v2369_v52, %v2369_v52 }
 0x1d5   :  { %v748_v7 = vadd.f32 %v747_v6, %v685_v55  ;;  %v689_v55 = vmul.f32 %v2331_v15, %v2331_v15  ;;  %v691_v13 = vmul.f32 %v2343_v41, %v2343_v41  ;;  %3896 = vst [vmem:[#allocation11_spill] sm:$0xff] %v2369_v52 }
 0x1d7   :  { %v749_v63 = vadd.f32 %v748_v7, %v686_v59  ;;  %v690_v59 = vmul.f32 %v2337_v51, %v2337_v51  ;;  %v693_v51 = vmul.f32 %v2355_v32, %v2355_v32 }
 0x1d9   :  { %v750_v12 = vadd.f32 %v749_v63, %v687_v27  ;;  %v692_v63 = vmul.f32 %v2349_v34, %v2349_v34 }
 0x1db   :  { %v751_v6 = vadd.f32 %v750_v12, %v688_v37  ;;  %v3894_v12 = vld [vmem:[#allocation4_spill] sm:$0xff] }
 0x1dc   :  { %v2363_v35 = vsub.f32 %v3894_v12, %v2073_v14  ;;  %v2381_v12 = vsub.f32 %v1953_v11, %v2073_v14 }
 0x1dd   :  { %v752_v7 = vadd.f32 %v751_v6, %v689_v55  ;;  %v694_v6 = vmul.f32 %v2076_v16, %v2076_v16 }
 0x1de   :  { %3895 = vst [vmem:[#allocation7_spill] sm:$0xff] %v2363_v35  ;;  %v698_v11 = vmul.f32 %v2381_v12, %v2381_v12 }
 0x1df   :  { %v753_v27 = vadd.f32 %v752_v7, %v690_v59  ;;  %v2375_v7 = vsub.f32 %v1940_v4, %v2073_v14  ;;  %3898 = vst [vmem:[#allocation4_spill] sm:$0xff] %v2381_v12 }
 0x1e1   :  { %v754_v37 = vadd.f32 %v753_v27, %v691_v13  ;;  %3897 = vst [vmem:[#allocation14_spill] sm:$0xff] %v2375_v7  ;;  %v695_v13 = vmul.f32 %v2363_v35, %v2363_v35  ;;  %v697_v4 = vmul.f32 %v2375_v7, %v2375_v7 }
 0x1e3   :  { %v755_v55 = vadd.f32 %v754_v37, %v692_v63  ;;  %v3899_v37 = vld [vmem:[#allocation8_spill] sm:$0xff] }
 0x1e4   :  { %v2387_v16 = vsub.f32 %v3899_v37, %v2073_v14  ;;  %v3904_v37 = vld [vmem:[#allocation12_spill] sm:$0xff] }
 0x1e5   :  { %v756_v59 = vadd.f32 %v755_v55, %v693_v51  ;;  %v3901_v55 = vld [vmem:[#allocation9_spill] sm:$0xff]  ;;  %v2405_v7 = vsub.f32 %v3904_v37, %v2073_v14 }
 0x1e6   :  { %3900 = vst [vmem:[#allocation8_spill] sm:$0xff] %v2387_v16  ;;  %v2393_v35 = vsub.f32 %v3901_v55, %v2073_v14  ;;  %v3906_v55 = vld [vmem:[#allocation15_spill] sm:$0xff]  ;;  %v3910_v37 = vld [vmem:[#allocation17_spill] sm:$0xff] }
 0x1e7   :  { %v757_v27 = vadd.f32 %v756_v59, %v694_v6  ;;  %v3903_v59 = vld [vmem:[#allocation10_spill] sm:$0xff]  ;;  %v2411_v12 = vsub.f32 %v3906_v55, %v2073_v14  ;;  %v2429_v55 = vsub.f32 %v2043_v23, %v2073_v14 }
 0x1e8   :  { %3902 = vst [vmem:[#allocation9_spill] sm:$0xff] %v2393_v35  ;;  %v2399_v52 = vsub.f32 %v3903_v59, %v2073_v14  ;;  %v3908_v59 = vld [vmem:[#allocation16_spill] sm:$0xff] }
 0x1e9   :  { %v758_v63 = vadd.f32 %v757_v27, %v695_v13  ;;  %v699_v13 = vmul.f32 %v2387_v16, %v2387_v16  ;;  %3905 = vst [vmem:[#allocation10_spill] sm:$0xff] %v2405_v7  ;;  %v2417_v16 = vsub.f32 %v3908_v59, %v2073_v14  ;;  %v3913_v59 = vld [vmem:[#allocation18_spill] sm:$0xff]  ;;  %v706_v23 = vmul.f32 %v2429_v55, %v2429_v55 }
 0x1ea   :  { %3907 = vst [vmem:[#allocation12_spill] sm:$0xff] %v2411_v12 }
 0x1eb   :  { %v759_v51 = vadd.f32 %v758_v63, %v696_v0  ;;  %v700_v0 = vmul.f32 %v2393_v35, %v2393_v35  ;;  %3909 = vst [vmem:[#allocation15_spill] sm:$0xff] %v2417_v16  ;;  %v2423_v35 = vsub.f32 %v3910_v37, %v2073_v14  ;;  %v2441_v37 = vsub.f32 %v2056_v30, %v2073_v14 }
 0x1ec   :  { %3912 = vst [vmem:[#allocation17_spill] sm:$0xff] %v2429_v55  ;;  %v710_v55 = vmul.f32 %v2079_v22, %v2079_v22 }
 0x1ed   :  { %v760_v6 = vadd.f32 %v759_v51, %v697_v4  ;;  %v701_v4 = vmul.f32 %v2399_v52, %v2399_v52  ;;  %3911 = vst [vmem:[#allocation16_spill] sm:$0xff] %v2423_v35 }
 0x1ee   :  { %3915 = vst [vmem:[#allocation20_spill] sm:$0xff] %v2441_v37 }
 0x1ef   :  { %v761_v27 = vadd.f32 %v760_v6, %v698_v11  ;;  %v702_v11 = vmul.f32 %v2405_v7, %v2405_v7  ;;  %v2435_v7 = vsub.f32 %v3913_v59, %v2073_v14  ;;  %v708_v59 = vmul.f32 %v2441_v37, %v2441_v37 }
 0x1f1   :  { %v762_v63 = vadd.f32 %v761_v27, %v699_v13  ;;  %v703_v13 = vmul.f32 %v2411_v12, %v2411_v12  ;;  %3914 = vst [vmem:[#allocation18_spill] sm:$0xff] %v2435_v7 }
 0x1f3   :  { %v763_v51 = vadd.f32 %v762_v63, %v700_v0  ;;  %v704_v0 = vmul.f32 %v2417_v16, %v2417_v16 }
 0x1f5   :  { %v764_v6 = vadd.f32 %v763_v51, %v701_v4  ;;  %v705_v4 = vmul.f32 %v2423_v35, %v2423_v35 }
 0x1f7   :  { %v765_v27 = vadd.f32 %v764_v6, %v702_v11  ;;  %v2447_v6 = vsub.f32 %v2063_v60, %v2073_v14 }
 0x1f9   :  { %v766_v63 = vadd.f32 %v765_v27, %v703_v13  ;;  %3916 = vst [vmem:[#allocation21_spill] sm:$0xff] %v2447_v6  ;;  %v707_v13 = vmul.f32 %v2435_v7, %v2435_v7  ;;  %v709_v30 = vmul.f32 %v2447_v6, %v2447_v6 }
 0x1fb   :  { %v767_v51 = vadd.f32 %v766_v63, %v704_v0 }
 0x1fd   :  { %v768_v11 = vadd.f32 %v767_v51, %v705_v4 }
 0x1ff   :  { %v769_v27 = vadd.f32 %v768_v11, %v706_v23 }
 0x201   :  { %v770_v0 = vadd.f32 %v769_v27, %v707_v13 }
 0x203   :  { %v771_v63 = vadd.f32 %v770_v0, %v708_v59 }
 0x205   :  { %v772_v4 = vadd.f32 %v771_v63, %v709_v30  ;;  %v3919_v30 = vld [vmem:[#allocation3_spill] sm:$0xff]  ;;  %v3920_v63 = vld [vmem:[#allocation5_spill] sm:$0xff] }
 0x207   :  { %v773_v51 = vadd.f32 %v772_v4, %v710_v55 }
 0x209   :  { %v774_v35 = vrot.slane %v773_v51, 4 }
 0x20b   :  { %v775_v60 = vadd.f32 %v774_v35, %v773_v51 }
 0x20d   :  { %v776_v14 = vrot.slane %v775_v60, 2 }
 0x20f   :  { %v777_v16 = vadd.f32 %v776_v14, %v775_v60  ;;  %v3921_v14 = vld [vmem:[#allocation6_spill] sm:$0xff] }
 0x211   :  { %v778_v12 = vrot.slane %v777_v16, 1 }
 0x213   :  { %v779_v7 = vadd.f32 %v778_v12, %v777_v16 }
 0x215   :  { %v780_v23 = vmul.f32 %v779_v7, %v2070_v18 }
 0x217   :  { %v781_v11 = vadd.f32 1e-05, %v780_v23 }
 0x219   :  { %1736 = vrsqrt.f32 %v781_v11  ;;  %vm788_vm2 = vweird.f32 %v781_v11 }
 0x21f   :  { %v1737_v13 = vpop.eup %1736 }
 0x220   :  { %v783_v27 = vmul.f32 %v1737_v13, %v781_v11  ;;  %vm789_vm1 = vweird.f32 %v1737_v13  ;;  %v3922_v11 = vld [vmem:[#allocation19_spill] sm:$0xff] }
 0x221   :  { %vm790_vm3 = vmor %vm788_vm2, %vm789_vm1 }
 0x222   :  { %v784_v37 = vmul.f32 %v1737_v13, %v783_v27 }
 0x224   :  { %v785_v6 = vmul.f32 0.5, %v784_v37  ;;  %v3917_v37 = vld [vmem:[#allocation13_spill] sm:$0xff] }
 0x226   :  { %v786_v59 = vsub.f32 1.5, %v785_v6  ;;  %v3918_v6 = vld [vmem:[#allocation2_spill] sm:$0xff] }
 0x228   :  { %v787_v0 = vmul.f32 %v1737_v13, %v786_v59  ;;  %v3924_v59 = vld [vmem:[#allocation11_spill] sm:$0xff] }
 0x22a   :  { %v2458_v55 = vsel %vm790_vm3, %v1737_v13, %v787_v0  ;;  %v3923_v13 = vld [vmem:[#allocation7_spill] sm:$0xff]  ;;  %v3925_v0 = vld [vmem:[#allocation14_spill] sm:$0xff] }
 0x22b   :  { %v2462_v35 = vmul.f32 %v2458_v55, %v2083_v28  ;;  %v2466_v18 = vmul.f32 %v2458_v55, %v2087_v29  ;;  %v2470_v16 = vmul.f32 %v2458_v55, %v2091_v20  ;;  %v2474_v7 = vmul.f32 %v2458_v55, %v2099_v43 }
 0x22c   :  { %v2478_v12 = vmul.f32 %v2458_v55, %v2103_v36  ;;  %v2482_v28 = vmul.f32 %v2458_v55, %v2109_v42  ;;  %v2486_v29 = vmul.f32 %v2458_v55, %v2115_v45  ;;  %v2490_v20 = vmul.f32 %v2458_v55, %v2121_v31 }
 0x22d   :  { %v2494_v43 = vmul.f32 %v2458_v55, %v2127_v48  ;;  %v2498_v36 = vmul.f32 %v2458_v55, %v2133_v9  ;;  %v2502_v42 = vmul.f32 %v2458_v55, %v2139_v8  ;;  %v2506_v45 = vmul.f32 %v2458_v55, %v2145_v26 }
 0x22e   :  { %v2510_v31 = vmul.f32 %v2458_v55, %v2151_v21  ;;  %v2514_v48 = vmul.f32 %v2458_v55, %v2157_v3  ;;  %v2518_v9 = vmul.f32 %v2458_v55, %v2163_v38  ;;  %v2522_v8 = vmul.f32 %v2458_v55, %v2169_v49 }
 0x22f   :  { %v2526_v26 = vmul.f32 %v2458_v55, %v2175_v19  ;;  %v2530_v21 = vmul.f32 %v2458_v55, %v2181_v40  ;;  %v2534_v3 = vmul.f32 %v2458_v55, %v2187_v33  ;;  %v2538_v38 = vmul.f32 %v2458_v55, %v2193_v46 }
 0x230   :  { %v2542_v49 = vmul.f32 %v2458_v55, %v2199_v50  ;;  %v2546_v19 = vmul.f32 %v2458_v55, %v2205_v53  ;;  %v2550_v40 = vmul.f32 %v2458_v55, %v2211_v56  ;;  %v2554_v33 = vmul.f32 %v2458_v55, %v2217_v58 }
 0x231   :  { %v2558_v46 = vmul.f32 %v2458_v55, %v2223_v61  ;;  %v2562_v50 = vmul.f32 %v2458_v55, %v2229_v1  ;;  %v2566_v53 = vmul.f32 %v2458_v55, %v2235_v5  ;;  %v2570_v56 = vmul.f32 %v2458_v55, %v2241_v10 }
 0x232   :  { %v2574_v58 = vmul.f32 %v2458_v55, %v2247_v17  ;;  %v2578_v61 = vmul.f32 %v2458_v55, %v2253_v24  ;;  %v2582_v1 = vmul.f32 %v2458_v55, %v2259_v57  ;;  %v2586_v5 = vmul.f32 %v2458_v55, %v2265_v62 }
 0x233   :  { %v2590_v10 = vmul.f32 %v2458_v55, %v2271_v44  ;;  %v2594_v17 = vmul.f32 %v2458_v55, %v3917_v37  ;;  %v2598_v24 = vmul.f32 %v2458_v55, %v3918_v6  ;;  %v2602_v57 = vmul.f32 %v2458_v55, %v2289_v39  ;;  %v3927_v37 = vld [vmem:[#allocation4_spill] sm:$0xff] }
 0x234   :  { %v2606_v62 = vmul.f32 %v2458_v55, %v2295_v2  ;;  %v2610_v44 = vmul.f32 %v2458_v55, %v3919_v30  ;;  %v2614_v4 = vmul.f32 %v2458_v55, %v3920_v63  ;;  %v2618_v51 = vmul.f32 %v2458_v55, %v2313_v54  ;;  %v3929_v30 = vld [vmem:[#allocation8_spill] sm:$0xff] }
 0x235   :  { %v2622_v39 = vmul.f32 %v2458_v55, %v2319_v47  ;;  %v2626_v2 = vmul.f32 %v2458_v55, %v2325_v25  ;;  %v2630_v60 = vmul.f32 %v2458_v55, %v2331_v15  ;;  %v2634_v23 = vmul.f32 %v2458_v55, %v3921_v14  ;;  %v3931_v14 = vld [vmem:[#allocation9_spill] sm:$0xff] }
 0x236   :  { %v2638_v54 = vmul.f32 %v2458_v55, %v2343_v41  ;;  %v2642_v47 = vmul.f32 %v2458_v55, %v2349_v34  ;;  %v2646_v25 = vmul.f32 %v2458_v55, %v2355_v32  ;;  %v2650_v15 = vmul.f32 %v2458_v55, %v3922_v11  ;;  %v2663_v34 = vld [vmem:[%s3798_s2] ss:$0 sm:$0xff] }
 0x237   :  { %v2654_v27 = vmul.f32 %v2458_v55, %v3923_v13  ;;  %v2658_v41 = vmul.f32 %v2458_v55, %v3924_v59  ;;  %v2667_v32 = vmul.f32 %v2458_v55, %v3925_v0  ;;  %v2671_v6 = vmul.f32 %v2458_v55, %v3927_v37  ;;  %v3934_v59 = vld [vmem:[#allocation10_spill] sm:$0xff] }
 0x238   :  { %v2675_v63 = vmul.f32 %v2458_v55, %v3929_v30  ;;  %v2679_v11 = vmul.f32 %v2458_v55, %v3931_v14  ;;  %v2683_v13 = vmul.f32 %v2458_v55, %v2399_v52  ;;  %v2687_v0 = vmul.f32 %v2458_v55, %v3934_v59 }
 0x239   :  { %3926 = vst [vmem:[#allocation13_spill] sm:$0xff] %v2667_v32  ;;  %v3936_v32 = vld [vmem:[#allocation12_spill] sm:$0xff] }
 0x23a   :  { %3928 = vst [vmem:[#allocation2_spill] sm:$0xff] %v2671_v6  ;;  %v2691_v37 = vmul.f32 %v2458_v55, %v3936_v32  ;;  %v3938_v6 = vld [vmem:[#allocation15_spill] sm:$0xff] }
 0x23b   :  { %3930 = vst [vmem:[#allocation3_spill] sm:$0xff] %v2675_v63  ;;  %v2695_v30 = vmul.f32 %v2458_v55, %v3938_v6  ;;  %v3939_v63 = vld [vmem:[#allocation16_spill] sm:$0xff] }
 0x23c   :  { %3932 = vst [vmem:[#allocation5_spill] sm:$0xff] %v2679_v11  ;;  %v2699_v14 = vmul.f32 %v2458_v55, %v3939_v63  ;;  %v3940_v11 = vld [vmem:[#allocation17_spill] sm:$0xff]  ;;  %v2719_v63 = vmul.f32 %v2458_v55, %v2079_v22  ;;  %v2739_v22 = vmul.f32 %v2663_v34, %v2478_v12  ;;  %v2763_v12 = vmul.f32 %v2663_v34, %v2502_v42 }
 0x23d   :  { %3933 = vst [vmem:[#allocation6_spill] sm:$0xff] %v2683_v13  ;;  %v2703_v52 = vmul.f32 %v2458_v55, %v3940_v11  ;;  %v3941_v13 = vld [vmem:[#allocation18_spill] sm:$0xff]  ;;  %v2723_v11 = vmul.f32 %v2663_v34, %v2462_v35  ;;  %v2747_v35 = vmul.f32 %v2663_v34, %v2486_v29  ;;  %v2771_v29 = vmul.f32 %v2663_v34, %v2510_v31 }
 0x23e   :  { %3935 = vst [vmem:[#allocation19_spill] sm:$0xff] %v2687_v0  ;;  %v2707_v59 = vmul.f32 %v2458_v55, %v3941_v13  ;;  %v3942_v0 = vld [vmem:[#allocation20_spill] sm:$0xff]  ;;  %v2727_v13 = vmul.f32 %v2663_v34, %v2466_v18  ;;  %v2751_v18 = vmul.f32 %v2663_v34, %v2490_v20  ;;  %v2775_v20 = vmul.f32 %v2663_v34, %v2514_v48 }
 0x23f   :  { %3937 = vst [vmem:[#allocation7_spill] sm:$0xff] %v2691_v37  ;;  %v2711_v32 = vmul.f32 %v2458_v55, %v3942_v0  ;;  %v3943_v37 = vld [vmem:[#allocation21_spill] sm:$0xff]  ;;  %v2731_v0 = vmul.f32 %v2663_v34, %v2470_v16  ;;  %v2755_v16 = vmul.f32 %v2663_v34, %v2494_v43  ;;  %v2779_v43 = vmul.f32 %v2663_v34, %v2518_v9 }
 0x240   :  { %v2715_v6 = vmul.f32 %v2458_v55, %v3943_v37  ;;  %v2735_v37 = vmul.f32 %v2663_v34, %v2474_v7  ;;  %v2743_v55 = vmul.f32 %v2663_v34, %v2482_v28  ;;  %v2759_v7 = vmul.f32 %v2663_v34, %v2498_v36 }
 0x241   :  { %v2767_v28 = vmul.f32 %v2663_v34, %v2506_v45  ;;  %v2783_v36 = vmul.f32 %v2663_v34, %v2522_v8  ;;  %v2787_v42 = vmul.f32 %v2663_v34, %v2526_v26  ;;  %v2791_v45 = vmul.f32 %v2663_v34, %v2530_v21 }
 0x242   :  { %v2795_v31 = vmul.f32 %v2663_v34, %v2534_v3  ;;  %v2799_v48 = vmul.f32 %v2663_v34, %v2538_v38  ;;  %v2803_v9 = vmul.f32 %v2663_v34, %v2542_v49  ;;  %v2807_v8 = vmul.f32 %v2663_v34, %v2546_v19 }
 0x243   :  { %v2811_v26 = vmul.f32 %v2663_v34, %v2550_v40  ;;  %v2815_v21 = vmul.f32 %v2663_v34, %v2554_v33  ;;  %v2819_v3 = vmul.f32 %v2663_v34, %v2558_v46  ;;  %v2823_v38 = vmul.f32 %v2663_v34, %v2562_v50 }
 0x244   :  { %v2827_v49 = vmul.f32 %v2663_v34, %v2566_v53  ;;  %v2831_v19 = vmul.f32 %v2663_v34, %v2570_v56  ;;  %v2835_v40 = vmul.f32 %v2663_v34, %v2574_v58  ;;  %v2839_v33 = vmul.f32 %v2663_v34, %v2578_v61 }
 0x245   :  { %v2843_v46 = vmul.f32 %v2663_v34, %v2582_v1  ;;  %v2847_v50 = vmul.f32 %v2663_v34, %v2586_v5  ;;  %v2851_v53 = vmul.f32 %v2663_v34, %v2590_v10  ;;  %v2855_v56 = vmul.f32 %v2663_v34, %v2594_v17 }
 0x246   :  { %v2859_v58 = vmul.f32 %v2663_v34, %v2598_v24  ;;  %v2863_v61 = vmul.f32 %v2663_v34, %v2602_v57  ;;  %v2867_v1 = vmul.f32 %v2663_v34, %v2606_v62  ;;  %v2871_v5 = vmul.f32 %v2663_v34, %v2610_v44 }
 0x247   :  { %v2875_v10 = vmul.f32 %v2663_v34, %v2614_v4  ;;  %v2879_v17 = vmul.f32 %v2663_v34, %v2618_v51  ;;  %v2883_v24 = vmul.f32 %v2663_v34, %v2622_v39  ;;  %v2887_v57 = vmul.f32 %v2663_v34, %v2626_v2 }
 0x248   :  { %v2891_v62 = vmul.f32 %v2663_v34, %v2630_v60  ;;  %v2895_v44 = vmul.f32 %v2663_v34, %v2634_v23  ;;  %v2899_v4 = vmul.f32 %v2663_v34, %v2638_v54  ;;  %v2903_v51 = vmul.f32 %v2663_v34, %v2642_v47  ;;  %v2924_v54 = vld [vmem:[%s3799_s3] ss:$0 sm:$0xff]  ;;  %v3950_v47 = vld [vmem:[#allocation13_spill] sm:$0xff] }
 0x249   :  { %v2907_v39 = vmul.f32 %v2663_v34, %v2646_v25  ;;  %v2911_v2 = vmul.f32 %v2663_v34, %v2650_v15  ;;  %v2915_v60 = vmul.f32 %v2663_v34, %v2654_v27  ;;  %v2919_v23 = vmul.f32 %v2663_v34, %v2658_v41 }
 0x24a   :  { %3944 = vst [vmem:[#allocation11_spill] sm:$0xff] %v2899_v4  ;;  %v2928_v25 = vmul.f32 %v2663_v34, %v3950_v47  ;;  %v3956_v4 = vld [vmem:[#allocation19_spill] sm:$0xff] }
 0x24b   :  { %3945 = vst [vmem:[#allocation14_spill] sm:$0xff] %v2903_v51  ;;  %v2948_v47 = vmul.f32 %v2663_v34, %v3956_v4  ;;  %v2968_v4 = vmul.f32 %v2663_v34, %v2707_v59  ;;  %v2988_v59 = vadd.f32 %v2924_v54, %v2727_v13  ;;  %v3012_v13 = vadd.f32 %v2924_v54, %v2751_v18 }
 0x24c   :  { %3946 = vst [vmem:[#allocation4_spill] sm:$0xff] %v2907_v39  ;;  %v3952_v39 = vld [vmem:[#allocation2_spill] sm:$0xff]  ;;  %v3036_v18 = vadd.f32 %v2924_v54, %v2775_v20  ;;  %v3060_v20 = vadd.f32 %v2924_v54, %v2799_v48  ;;  %v3084_v48 = vadd.f32 %v2924_v54, %v2823_v38  ;;  %v3108_v38 = vadd.f32 %v2924_v54, %v2847_v50 }
 0x24d   :  { %3947 = vst [vmem:[#allocation8_spill] sm:$0xff] %v2911_v2  ;;  %v2932_v15 = vmul.f32 %v2663_v34, %v3952_v39  ;;  %v3953_v2 = vld [vmem:[#allocation3_spill] sm:$0xff]  ;;  %v3132_v50 = vadd.f32 %v2924_v54, %v2871_v5  ;;  %v3156_v5 = vadd.f32 %v2924_v54, %v2895_v44  ;;  %vm993_vm5 = vcmp.gt.f32.partialorder %v2988_v59, 0.0 }
 0x24e   :  { %3948 = vst [vmem:[#allocation9_spill] sm:$0xff] %v2915_v60  ;;  %v2936_v27 = vmul.f32 %v2663_v34, %v3953_v2  ;;  %v3954_v60 = vld [vmem:[#allocation5_spill] sm:$0xff]  ;;  %v2956_v2 = vmul.f32 %v2663_v34, %v2695_v30  ;;  %v2976_v30 = vmul.f32 %v2663_v34, %v2715_v6  ;;  %v2996_v6 = vadd.f32 %v2924_v54, %v2735_v37 }
 0x24f   :  { %3949 = vst [vmem:[#allocation10_spill] sm:$0xff] %v2919_v23  ;;  %v2940_v41 = vmul.f32 %v2663_v34, %v3954_v60  ;;  %v3955_v23 = vld [vmem:[#allocation6_spill] sm:$0xff]  ;;  %v2960_v60 = vmul.f32 %v2663_v34, %v2699_v14  ;;  %v2980_v14 = vmul.f32 %v2663_v34, %v2719_v63  ;;  %v3004_v63 = vadd.f32 %v2924_v54, %v2743_v55 }
 0x250   :  { %3951 = vst [vmem:[#allocation12_spill] sm:$0xff] %v2928_v25  ;;  %v2944_v51 = vmul.f32 %v2663_v34, %v3955_v23  ;;  %v3957_v25 = vld [vmem:[#allocation7_spill] sm:$0xff]  ;;  %v2964_v23 = vmul.f32 %v2663_v34, %v2703_v52  ;;  %v2984_v52 = vadd.f32 %v2924_v54, %v2723_v11  ;;  %v3008_v11 = vadd.f32 %v2924_v54, %v2747_v35 }
 0x251   :  { %v2952_v39 = vmul.f32 %v2663_v34, %v3957_v25  ;;  %v2972_v25 = vmul.f32 %v2663_v34, %v2711_v32  ;;  %v2992_v32 = vadd.f32 %v2924_v54, %v2731_v0  ;;  %v3000_v34 = vadd.f32 %v2924_v54, %v2739_v22  ;;  %3963 = vst [vmem:[#allocation21_spill] sm:$0xff] %v3156_v5 }
 0x252   :  { %v3016_v0 = vadd.f32 %v2924_v54, %v2755_v16  ;;  %v3020_v37 = vadd.f32 %v2924_v54, %v2759_v7  ;;  %v3024_v22 = vadd.f32 %v2924_v54, %v2763_v12  ;;  %v3028_v55 = vadd.f32 %v2924_v54, %v2767_v28 }
 0x253   :  { %v3032_v35 = vadd.f32 %v2924_v54, %v2771_v29  ;;  %v3040_v16 = vadd.f32 %v2924_v54, %v2779_v43  ;;  %v3044_v7 = vadd.f32 %v2924_v54, %v2783_v36  ;;  %v3048_v12 = vadd.f32 %v2924_v54, %v2787_v42 }
 0x254   :  { %v3052_v28 = vadd.f32 %v2924_v54, %v2791_v45  ;;  %v3056_v29 = vadd.f32 %v2924_v54, %v2795_v31  ;;  %v3064_v43 = vadd.f32 %v2924_v54, %v2803_v9  ;;  %v3068_v36 = vadd.f32 %v2924_v54, %v2807_v8 }
 0x255   :  { %v3072_v42 = vadd.f32 %v2924_v54, %v2811_v26  ;;  %v3076_v45 = vadd.f32 %v2924_v54, %v2815_v21  ;;  %v3080_v31 = vadd.f32 %v2924_v54, %v2819_v3  ;;  %v3088_v9 = vadd.f32 %v2924_v54, %v2827_v49 }
 0x256   :  { %v3092_v8 = vadd.f32 %v2924_v54, %v2831_v19  ;;  %v3096_v26 = vadd.f32 %v2924_v54, %v2835_v40  ;;  %v3100_v21 = vadd.f32 %v2924_v54, %v2839_v33  ;;  %v3104_v3 = vadd.f32 %v2924_v54, %v2843_v46  ;;  %v3972_v5 = vld [vmem:[#allocation10_spill] sm:$0xff] }
 0x257   :  { %v3112_v49 = vadd.f32 %v2924_v54, %v2851_v53  ;;  %v3116_v19 = vadd.f32 %v2924_v54, %v2855_v56  ;;  %v3120_v40 = vadd.f32 %v2924_v54, %v2859_v58  ;;  %v3124_v33 = vadd.f32 %v2924_v54, %v2863_v61 }
 0x258   :  { %3958 = vst [vmem:[#allocation15_spill] sm:$0xff] %v3100_v21  ;;  %v3128_v46 = vadd.f32 %v2924_v54, %v2867_v1  ;;  %v3136_v53 = vadd.f32 %v2924_v54, %v2875_v10  ;;  %v3140_v56 = vadd.f32 %v2924_v54, %v2879_v17  ;;  %v3144_v58 = vadd.f32 %v2924_v54, %v2883_v24  ;;  %v3964_v10 = vld [vmem:[#allocation11_spill] sm:$0xff] }
 0x259   :  { %v3148_v61 = vadd.f32 %v2924_v54, %v2887_v57  ;;  %v3152_v1 = vadd.f32 %v2924_v54, %v2891_v62  ;;  %v3160_v17 = vadd.f32 %v2924_v54, %v3964_v10  ;;  %v3180_v10 = vadd.f32 %v2924_v54, %v3972_v5 }
 0x25a   :  { %3959 = vst [vmem:[#allocation16_spill] sm:$0xff] %v3140_v56  ;;  %v3966_v56 = vld [vmem:[#allocation14_spill] sm:$0xff]  ;;  %v3200_v5 = vadd.f32 %v2924_v54, %v2944_v51  ;;  %v3220_v51 = vadd.f32 %v2924_v54, %v2964_v23  ;;  %vm992_vm4 = vcmp.gt.f32.partialorder %v2984_v52, 0.0  ;;  %vm994_vm6 = vcmp.gt.f32.partialorder %v2992_v32, 0.0 }
 0x25b   :  { %3960 = vst [vmem:[#allocation17_spill] sm:$0xff] %v3144_v58  ;;  %v3164_v24 = vadd.f32 %v2924_v54, %v3966_v56  ;;  %v3967_v58 = vld [vmem:[#allocation4_spill] sm:$0xff]  ;;  %vm995_vm7 = vcmp.gt.f32.partialorder %v2996_v6, 0.0  ;;  %vm996_vm8 = vcmp.gt.f32.partialorder %v3000_v34, 0.0  ;;  %vm997_vm9 = vcmp.gt.f32.partialorder %v3004_v63, 0.0 }
 0x25c   :  { %3961 = vst [vmem:[#allocation18_spill] sm:$0xff] %v3148_v61  ;;  %v3168_v57 = vadd.f32 %v2924_v54, %v3967_v58  ;;  %v3968_v61 = vld [vmem:[#allocation8_spill] sm:$0xff]  ;;  %v3188_v58 = vadd.f32 %v2924_v54, %v2932_v15  ;;  %v3208_v15 = vadd.f32 %v2924_v54, %v2952_v39  ;;  %v3228_v39 = vadd.f32 %v2924_v54, %v2972_v25 }
 0x25d   :  { %3962 = vst [vmem:[#allocation20_spill] sm:$0xff] %v3152_v1  ;;  %v3172_v62 = vadd.f32 %v2924_v54, %v3968_v61  ;;  %v3970_v1 = vld [vmem:[#allocation9_spill] sm:$0xff]  ;;  %v3192_v61 = vadd.f32 %v2924_v54, %v2936_v27  ;;  %v3212_v27 = vadd.f32 %v2924_v54, %v2956_v2  ;;  %vm998_vm10 = vcmp.gt.f32.partialorder %v3008_v11, 0.0 }
 0x25e   :  { %3965 = vst [vmem:[#allocation13_spill] sm:$0xff] %v3160_v17  ;;  %v3176_v44 = vadd.f32 %v2924_v54, %v3970_v1  ;;  %v3974_v17 = vld [vmem:[#allocation12_spill] sm:$0xff]  ;;  %v3196_v1 = vadd.f32 %v2924_v54, %v2940_v41  ;;  %v3216_v41 = vadd.f32 %v2924_v54, %v2960_v60  ;;  %v1056_v2 = vmul.f32 0.2, %v2984_v52 }
 0x25f   :  { %3969 = vst [vmem:[#allocation2_spill] sm:$0xff] %v3172_v62  ;;  %v3184_v56 = vadd.f32 %v2924_v54, %v3974_v17  ;;  %v3204_v17 = vadd.f32 %v2924_v54, %v2948_v47  ;;  %v3224_v47 = vadd.f32 %v2924_v54, %v2968_v4  ;;  %vm999_vm11 = vcmp.gt.f32.partialorder %v3012_v13, 0.0 }
 0x260   :  { %3971 = vst [vmem:[#allocation3_spill] sm:$0xff] %v3176_v44  ;;  %vm1000_vm12 = vcmp.gt.f32.partialorder %v3016_v0, 0.0  ;;  %v1057_v60 = vmul.f32 0.2, %v2988_v59  ;;  %v1058_v23 = vmul.f32 0.2, %v2992_v32  ;;  %v3244_v4 = vadd.f32 %v2924_v54, %v2976_v30 }
 0x261   :  { %3973 = vst [vmem:[#allocation5_spill] sm:$0xff] %v3180_v10  ;;  %vm1001_vm13 = vcmp.gt.f32.partialorder %v3020_v37, 0.0  ;;  %v1059_v25 = vmul.f32 0.2, %v2996_v6  ;;  %vm1002_vm14 = vcmp.gt.f32.partialorder %v3024_v22, 0.0  ;;  %vm1003_vm15 = vcmp.gt.f32.partialorder %v3028_v55, 0.0 }
 0x262   :  { %3975 = vst [vmem:[#allocation6_spill] sm:$0xff] %v3184_v56  ;;  %v1064_v30 = vmul.f32 0.2, %v3016_v0  ;;  %vm1004_vm0 = vcmp.gt.f32.partialorder %v3032_v35, 0.0  ;;  %vm1005_vm1 = vcmp.gt.f32.partialorder %v3036_v18, 0.0  ;;  %vm1006_vm2 = vcmp.gt.f32.partialorder %v3040_v16, 0.0 }
 0x263   :  { %3976 = vst [vmem:[#allocation19_spill] sm:$0xff] %v3188_v58  ;;  %vm1007_vm3 = vcmp.gt.f32.partialorder %v3044_v7, 0.0  ;;  %v3301_v58 = vsel %vm994_vm6, %v2992_v32, %v1058_v23  ;;  %v3312_v56 = vmul.f32 0.2, %v3064_v43  ;;  %v3317_v10 = vsel %vm995_vm7, %v2996_v6, %v1059_v25 }
 0x264   :  { %3977 = vst [vmem:[#allocation7_spill] sm:$0xff] %v3192_v61  ;;  %v3296_v61 = vmul.f32 0.2, %v3052_v28  ;;  %v3322_v32 = vmul.f32 0.2, %v3068_v36  ;;  %vm1013_vm6 = vcmp.gt.f32.partialorder %v3068_v36, 0.0 }
 0x265   :  { %3978 = vst [vmem:[#allocation11_spill] sm:$0xff] %v3196_v1  ;;  %v3285_v1 = vsel %vm993_vm5, %v2988_v59, %v1057_v60  ;;  %vm1009_vm5 = vcmp.gt.f32.partialorder %v3052_v28, 0.0  ;;  %v3306_v59 = vmul.f32 0.2, %v3056_v29  ;;  %v3309_v60 = vmul.f32 0.2, %v3060_v20 }
 0x266   :  { %3979 = vst [vmem:[#allocation14_spill] sm:$0xff] %v3200_v5  ;;  %v3280_v5 = vmul.f32 0.2, %v3040_v16  ;;  %v3325_v23 = vmul.f32 0.2, %v3072_v42  ;;  %vm1025_vm7 = vcmp.gt.f32.partialorder %v3116_v19, 0.0 }
 0x267   :  { %3980 = vst [vmem:[#allocation4_spill] sm:$0xff] %v3204_v17  ;;  %v3264_v17 = vmul.f32 0.2, %v3028_v55  ;;  %v3328_v44 = vmul.f32 0.2, %v3076_v45 }
 0x268   :  { %3981 = vst [vmem:[#allocation8_spill] sm:$0xff] %v3208_v15  ;;  %v3261_v15 = vmul.f32 0.2, %v3024_v22  ;;  %v3338_v6 = vmul.f32 0.2, %v3080_v31 }
 0x269   :  { %3982 = vst [vmem:[#allocation9_spill] sm:$0xff] %v3212_v27  ;;  %v1063_v27 = vmul.f32 0.2, %v3012_v13  ;;  %v3341_v25 = vmul.f32 0.2, %v3084_v48 }
 0x26a   :  { %3983 = vst [vmem:[#allocation10_spill] sm:$0xff] %v3216_v41  ;;  %v1062_v41 = vmul.f32 0.2, %v3008_v11 }
 0x26b   :  { %3984 = vst [vmem:[#allocation12_spill] sm:$0xff] %v3220_v51  ;;  %v3252_v51 = vadd.f32 %v2924_v54, %v2980_v14  ;;  %v3269_v54 = vsel %vm992_vm4, %v2984_v52, %v1056_v2  ;;  %v3274_v14 = vmul.f32 0.2, %v3032_v35  ;;  %v3290_v52 = vmul.f32 0.2, %v3044_v7 }
 0x26c   :  { %3985 = vst [vmem:[#allocation22_spill] sm:$0xff] %v3224_v47  ;;  %v1061_v47 = vmul.f32 0.2, %v3004_v63  ;;  %v3293_v2 = vmul.f32 0.2, %v3048_v12  ;;  %vm1011_vm4 = vcmp.gt.f32.partialorder %v3060_v20, 0.0 }
 0x26d   :  { %3986 = vst [vmem:[#allocation23_spill] sm:$0xff] %v3228_v39  ;;  %v1060_v39 = vmul.f32 0.2, %v3000_v34 }
 0x26e   :  { %3987 = vst [vmem:[#allocation24_spill] sm:$0xff] %v3244_v4  ;;  %v1065_v4 = vmul.f32 0.2, %v3020_v37 }
 0x26f   :  { %3988 = vst [vmem:[#allocation25_spill] sm:$0xff] %v3252_v51  ;;  %v3277_v51 = vmul.f32 0.2, %v3036_v18  ;;  %v3333_v62 = vsel %vm996_vm8, %v3000_v34, %v1060_v39  ;;  %v3354_v34 = vmul.f32 0.2, %v3092_v8  ;;  %vm1020_vm8 = vcmp.gt.f32.partialorder %v3096_v26, 0.0 }
 0x270   :  { %3989 = vst [vmem:[#allocation26_spill] sm:$0xff] %v3325_v23  ;;  %v3344_v23 = vmul.f32 0.2, %v3088_v9  ;;  %v3357_v39 = vmul.f32 0.2, %v3096_v26 }
 0x271   :  { %3990 = vst [vmem:[#allocation27_spill] sm:$0xff] %v3328_v44  ;;  %v3349_v44 = vsel %vm997_vm9, %v3004_v63, %v1061_v47  ;;  %vm1016_vm9 = vcmp.gt.f32.partialorder %v3080_v31, 0.0  ;;  %v3370_v63 = vmul.f32 0.2, %v3104_v3  ;;  %v3373_v47 = vmul.f32 0.2, %v3108_v38 }
 0x272   :  { %3991 = vst [vmem:[#allocation28_spill] sm:$0xff] %v3341_v25  ;;  %v3360_v25 = vmul.f32 0.2, %v3100_v21 }
 0x273   :  { %3992 = vst [vmem:[#allocation29_spill] sm:$0xff] %v3344_v23  ;;  %v3365_v23 = vsel %vm998_vm10, %v3008_v11, %v1062_v41  ;;  %vm1018_vm10 = vcmp.gt.f32.partialorder %v3088_v9, 0.0  ;;  %v3384_v11 = vmul.f32 0.2, %v3116_v19  ;;  %v3387_v41 = vmul.f32 0.2, %v3120_v40 }
 0x274   :  { %3993 = vst [vmem:[#allocation30_spill] sm:$0xff] %v3357_v39  ;;  %v3376_v39 = vmul.f32 0.2, %v3112_v49 }
 0x275   :  { %3994 = vst [vmem:[#allocation31_spill] sm:$0xff] %v3360_v25  ;;  %v1127_v25 = vsel %vm999_vm11, %v3012_v13, %v1063_v27  ;;  %vm1021_vm11 = vcmp.gt.f32.partialorder %v3100_v21, 0.0  ;;  %v3398_v13 = vmul.f32 0.2, %v3128_v46  ;;  %v3401_v27 = vmul.f32 0.2, %v3132_v50 }
 0x276   :  { %3995 = vst [vmem:[#allocation32_spill] sm:$0xff] %v3370_v63  ;;  %v3390_v63 = vmul.f32 0.2, %v3124_v33 }
 0x277   :  { %3996 = vst [vmem:[#allocation33_spill] sm:$0xff] %v3373_v47 }
 0x278   :  { %3997 = vst [vmem:[#allocation34_spill] sm:$0xff] %v3376_v39  ;;  %v1128_v39 = vsel %vm1000_vm12, %v3016_v0, %v1064_v30  ;;  %vm1023_vm12 = vcmp.gt.f32.partialorder %v3108_v38, 0.0  ;;  %v4003_v0 = vld [vmem:[#allocation16_spill] sm:$0xff] }
 0x279   :  { %3998 = vst [vmem:[#allocation35_spill] sm:$0xff] %v3384_v11  ;;  %v3404_v11 = vmul.f32 0.2, %v3136_v53  ;;  %v3412_v30 = vmul.f32 0.2, %v4003_v0 }
 0x27a   :  { %3999 = vst [vmem:[#allocation36_spill] sm:$0xff] %v3387_v41  ;;  %v4005_v41 = vld [vmem:[#allocation17_spill] sm:$0xff] }
 0x27b   :  { %4000 = vst [vmem:[#allocation37_spill] sm:$0xff] %v3390_v63  ;;  %v1129_v63 = vsel %vm1001_vm13, %v3020_v37, %v1065_v4  ;;  %v3415_v47 = vmul.f32 0.2, %v4005_v41  ;;  %v4009_v37 = vld [vmem:[#allocation20_spill] sm:$0xff]  ;;  %vm1027_vm13 = vcmp.gt.f32.partialorder %v3124_v33, 0.0 }
 0x27c   :  { %4001 = vst [vmem:[#allocation38_spill] sm:$0xff] %v3398_v13  ;;  %v4007_v13 = vld [vmem:[#allocation18_spill] sm:$0xff]  ;;  %v3427_v4 = vmul.f32 0.2, %v4009_v37 }
 0x27d   :  { %4002 = vst [vmem:[#allocation39_spill] sm:$0xff] %v3404_v11  ;;  %v3418_v21 = vmul.f32 0.2, %v4007_v13  ;;  %v1130_v11 = vsel %vm1002_vm14, %v3024_v22, %v3261_v15  ;;  %v1132_v22 = vsel %vm1004_vm0, %v3032_v35, %v3274_v14  ;;  %vm1029_vm14 = vcmp.gt.f32.partialorder %v3132_v50, 0.0  ;;  %v4015_v14 = vld [vmem:[#allocation2_spill] sm:$0xff] }
 0x27e   :  { %4004 = vst [vmem:[#allocation16_spill] sm:$0xff] %v3412_v30  ;;  %v1524_v30 = vpack.c.bf16 %v3317_v10, %v3301_v58  ;;  %v4010_v10 = vld [vmem:[#allocation21_spill] sm:$0xff]  ;;  %v1134_v35 = vsel %vm1006_vm2, %v3040_v16, %v3280_v5  ;;  %vm1030_vm0 = vcmp.gt.f32.partialorder %v3136_v53, 0.0  ;;  %vm4012_vm2 = vcmp.gt.f32.partialorder %v3048_v12, 0.0 }
 0x27f   :  { %4006 = vst [vmem:[#allocation17_spill] sm:$0xff] %v3415_v47  ;;  %v1131_v47 = vsel %vm1003_vm15, %v3028_v55, %v3264_v17  ;;  %v1133_v55 = vsel %vm1005_vm1, %v3036_v18, %v3277_v51  ;;  %v1534_v17 = vpack.c.bf16 %v1127_v25, %v3365_v23  ;;  %vm1028_vm15 = vcmp.gt.f32.partialorder %v3128_v46, 0.0  ;;  %v4021_v23 = vld [vmem:[#allocation28_spill] sm:$0xff] }
 0x280   :  { %4008 = vst [vmem:[#allocation18_spill] sm:$0xff] %v3418_v21  ;;  %v1519_v21 = vpack.c.bf16 %v3285_v1, %v3269_v54  ;;  %v1529_v1 = vpack.c.bf16 %v3349_v44, %v3333_v62  ;;  %v3453_v58 = vmul.f32 0.2, %v4010_v10  ;;  %v1135_v18 = vsel %vm1007_vm3, %v3044_v7, %v3290_v52  ;;  %v4011_v44 = vld [vmem:[#allocation13_spill] sm:$0xff] }
 0x281   :  { %v1539_v62 = vpack.c.bf16 %v1129_v63, %v1128_v39  ;;  %v3469_v15 = vmul.f32 0.2, %v4011_v44  ;;  %v1136_v16 = vsel %vm4012_vm2, %v3048_v12, %v3293_v2  ;;  %v1137_v7 = vsel %vm1009_vm5, %v3052_v28, %v3296_v61  ;;  %1676 = vst [vmem:[%s3800_s4 + $0x8] sm:$0xff] %v1524_v30   ;;  %v4016_v2 = vld [vmem:[#allocation26_spill] sm:$0xff]  ;;  %v4023_v39 = vld [vmem:[#allocation5_spill] sm:$0xff]  ;;  %v4027_v30 = vld [vmem:[#allocation19_spill] sm:$0xff] }
 0x282   :  { %1520 = vst [vmem:[%s3800_s4] sm:$0xff] %v1519_v21   ;;  %v1544_v21 = vpack.c.bf16 %v1131_v47, %v1130_v11  ;;  %vm1032_vm3 = vcmp.gt.f32.partialorder %v4005_v41, 0.0  ;;  %v3485_v5 = vmul.f32 0.2, %v3164_v24  ;;  %vm4013_vm2 = vcmp.gt.f32.partialorder %v3056_v29, 0.0  ;;  %v4024_v47 = vld [vmem:[#allocation29_spill] sm:$0xff]  ;;  %v4026_v11 = vld [vmem:[#allocation6_spill] sm:$0xff] }
 0x283   :  { %v1138_v12 = vsel %vm4013_vm2, %v3056_v29, %v3306_v59  ;;  %v1139_v28 = vsel %vm1011_vm4, %v3060_v20, %v3309_v60  ;;  %1677 = vst [vmem:[%s3800_s4 + $0x10] sm:$0xff] %v1529_v1   ;;  %v1549_v61 = vpack.c.bf16 %v1133_v55, %v1132_v22  ;;  %vm1034_vm5 = vcmp.gt.f32.partialorder %v4009_v37, 0.0  ;;  %v4020_v60 = vld [vmem:[#allocation3_spill] sm:$0xff]  ;;  %v4028_v55 = vld [vmem:[#allocation30_spill] sm:$0xff] }
 0x284   :  { %v3501_v51 = vmul.f32 0.2, %v3168_v57  ;;  %vm4014_vm2 = vcmp.gt.f32.partialorder %v3064_v43, 0.0  ;;  %v1141_v20 = vsel %vm1013_vm6, %v3068_v36, %v3322_v32  ;;  %1678 = vst [vmem:[%s3800_s4 + $0x18] sm:$0xff] %v1534_v17   ;;  %v1554_v54 = vpack.c.bf16 %v1135_v18, %v1134_v35  ;;  %v4029_v1 = vld [vmem:[#allocation31_spill] sm:$0xff] }
 0x285   :  { %v1140_v29 = vsel %vm4014_vm2, %v3064_v43, %v3312_v56  ;;  %v3517_v52 = vmul.f32 0.2, %v4015_v14  ;;  %vm4017_vm2 = vcmp.gt.f32.partialorder %v3072_v42, 0.0  ;;  %v4018_v56 = vld [vmem:[#allocation27_spill] sm:$0xff]  ;;  %vm4019_vm6 = vcmp.gt.f32.partialorder %v3076_v45, 0.0  ;;  %1679 = vst [vmem:[%s3800_s4 + $0x20] sm:$0xff] %v1539_v62  }
 0x286   :  { %v1142_v43 = vsel %vm4017_vm2, %v3072_v42, %v4016_v2  ;;  %v1143_v36 = vsel %vm4019_vm6, %v3076_v45, %v4018_v56  ;;  %v1559_v59 = vpack.c.bf16 %v1137_v7, %v1136_v16  ;;  %vm1038_vm1 = vcmp.gt.f32.partialorder %v3168_v57, 0.0  ;;  %1680 = vst [vmem:[%s3800_s4 + $0x28] sm:$0xff] %v1544_v21   ;;  %v4030_v17 = vld [vmem:[#allocation15_spill] sm:$0xff]  ;;  %v4033_v16 = vld [vmem:[#allocation32_spill] sm:$0xff]  ;;  %v4035_v7 = vld [vmem:[#allocation33_spill] sm:$0xff] }
 0x287   :  { %v3533_v32 = vmul.f32 0.2, %v4020_v60  ;;  %v1144_v42 = vsel %vm1016_vm9, %v3080_v31, %v3338_v6  ;;  %vm4022_vm2 = vcmp.gt.f32.partialorder %v3084_v48, 0.0  ;;  %v1564_v25 = vpack.c.bf16 %v1139_v28, %v1138_v12  ;;  %1681 = vst [vmem:[%s3800_s4 + $0x30] sm:$0xff] %v1549_v61   ;;  %v4031_v35 = vld [vmem:[#allocation7_spill] sm:$0xff]  ;;  %v4036_v28 = vld [vmem:[#allocation14_spill] sm:$0xff] }
 0x288   :  { %v1145_v45 = vsel %vm4022_vm2, %v3084_v48, %v4021_v23  ;;  %vm1040_vm6 = vcmp.gt.f32.partialorder %v4020_v60, 0.0  ;;  %v3549_v63 = vmul.f32 0.2, %v4023_v39  ;;  %v1146_v31 = vsel %vm1018_vm10, %v3088_v9, %v4024_v47  ;;  %1682 = vst [vmem:[%s3800_s4 + $0x38] sm:$0xff] %v1554_v54   ;;  %v4032_v18 = vld [vmem:[#allocation11_spill] sm:$0xff]  ;;  %v4037_v61 = vld [vmem:[#allocation4_spill] sm:$0xff] }
 0x289   :  { %vm4025_vm9 = vcmp.gt.f32.partialorder %v3092_v8, 0.0  ;;  %v1569_v6 = vpack.c.bf16 %v1141_v20, %v1140_v29  ;;  %vm1042_vm2 = vcmp.gt.f32.partialorder %v4026_v11, 0.0  ;;  %vm1043_vm4 = vcmp.gt.f32.partialorder %v4027_v30, 0.0  ;;  %1683 = vst [vmem:[%s3800_s4 + $0x40] sm:$0xff] %v1559_v59   ;;  %v4038_v20 = vld [vmem:[#allocation34_spill] sm:$0xff]  ;;  %v4040_v54 = vld [vmem:[#allocation35_spill] sm:$0xff] }
 0x28a   :  { %v1147_v48 = vsel %vm4025_vm9, %v3092_v8, %v3354_v34  ;;  %v3565_v22 = vmul.f32 0.2, %v4026_v11  ;;  %v1148_v9 = vsel %vm1020_vm8, %v3096_v26, %v4028_v55  ;;  %v1149_v8 = vsel %vm1021_vm11, %v4030_v17, %v4029_v1  ;;  %1684 = vst [vmem:[%s3800_s4 + $0x48] sm:$0xff] %v1564_v25   ;;  %v4042_v56 = vld [vmem:[#allocation9_spill] sm:$0xff]  ;;  %v4043_v59 = vld [vmem:[#allocation36_spill] sm:$0xff]  ;;  %v4050_v55 = vld [vmem:[#allocation23_spill] sm:$0xff] }
 0x28b   :  { %v1574_v34 = vpack.c.bf16 %v1143_v36, %v1142_v43  ;;  %vm1044_vm10 = vcmp.gt.f32.partialorder %v4031_v35, 0.0  ;;  %v1107_v62 = vmul.f32 0.2, %v4027_v30  ;;  %vm4034_vm8 = vcmp.gt.f32.partialorder %v3104_v3, 0.0  ;;  %v4041_v43 = vld [vmem:[#allocation8_spill] sm:$0xff]  ;;  %1685 = vst [vmem:[%s3800_s4 + $0x50] sm:$0xff] %v1569_v6  }
 0x28c   :  { %v1150_v26 = vsel %vm4034_vm8, %v3104_v3, %v4033_v16  ;;  %v1151_v21 = vsel %vm1023_vm12, %v3108_v38, %v4035_v7  ;;  %v1579_v12 = vpack.c.bf16 %v1145_v45, %v1144_v42  ;;  %vm1046_vm11 = vcmp.gt.f32.partialorder %v4036_v28, 0.0  ;;  %v4045_v42 = vld [vmem:[#allocation37_spill] sm:$0xff]  ;;  %v4046_v45 = vld [vmem:[#allocation10_spill] sm:$0xff]  ;;  %v4047_v25 = vld [vmem:[#allocation12_spill] sm:$0xff] }
 0x28d   :  { %v1108_v29 = vmul.f32 0.2, %v4031_v35  ;;  %vm4039_vm8 = vcmp.gt.f32.partialorder %v3112_v49, 0.0  ;;  %v1153_v38 = vsel %vm1025_vm7, %v3116_v19, %v4040_v54  ;;  %v1584_v2 = vpack.c.bf16 %v1147_v48, %v1146_v31  ;;  %v4048_v31 = vld [vmem:[#allocation38_spill] sm:$0xff]  ;;  %1686 = vst [vmem:[%s3800_s4 + $0x58] sm:$0xff] %v1574_v34   ;;  %v4051_v1 = vld [vmem:[#allocation39_spill] sm:$0xff] }
 0x28e   :  { %v1152_v3 = vsel %vm4039_vm8, %v3112_v49, %v4038_v20  ;;  %vm1048_vm12 = vcmp.gt.f32.partialorder %v4041_v43, 0.0  ;;  %v1109_v36 = vmul.f32 0.2, %v4032_v18  ;;  %vm4044_vm8 = vcmp.gt.f32.partialorder %v3120_v40, 0.0  ;;  %v4049_v6 = vld [vmem:[#allocation22_spill] sm:$0xff]  ;;  %v4052_v17 = vld [vmem:[#allocation16_spill] sm:$0xff] }
 0x28f   :  { %v1154_v49 = vsel %vm4044_vm8, %v3120_v40, %v4043_v59  ;;  %v1155_v19 = vsel %vm1027_vm13, %v3124_v33, %v4045_v42  ;;  %v1589_v23 = vpack.c.bf16 %v1149_v8, %v1148_v9  ;;  %vm1050_vm7 = vcmp.gt.f32.partialorder %v4046_v45, 0.0  ;;  %1687 = vst [vmem:[%s3800_s4 + $0x60] sm:$0xff] %v1579_v12   ;;  %v4054_v8 = vld [vmem:[#allocation24_spill] sm:$0xff]  ;;  %v4055_v16 = vld [vmem:[#allocation17_spill] sm:$0xff] }
 0x290   :  { %vm1051_vm9 = vcmp.gt.f32.partialorder %v4047_v25, 0.0  ;;  %v1110_v47 = vmul.f32 0.2, %v4036_v28  ;;  %v1156_v40 = vsel %vm1028_vm15, %v3128_v46, %v4048_v31  ;;  %v1157_v33 = vsel %vm1029_vm14, %v3132_v50, %v3401_v27  ;;  %1688 = vst [vmem:[%s3800_s4 + $0x68] sm:$0xff] %v1584_v2  }
 0x291   :  { %v1594_v48 = vpack.c.bf16 %v1151_v21, %v1150_v26  ;;  %vm1052_vm13 = vcmp.gt.f32.partialorder %v4049_v6, 0.0  ;;  %vm1053_vm8 = vcmp.gt.f32.partialorder %v4050_v55, 0.0  ;;  %v1111_v9 = vmul.f32 0.2, %v4037_v61  ;;  %1689 = vst [vmem:[%s3800_s4 + $0x70] sm:$0xff] %v1589_v23  }
 0x292   :  { %v1158_v46 = vsel %vm1030_vm0, %v3136_v53, %v4051_v1  ;;  %vm4053_vm14 = vcmp.gt.f32.partialorder %v4003_v0, 0.0  ;;  %v1599_v27 = vpack.c.bf16 %v1153_v38, %v1152_v3  ;;  %vm1054_vm15 = vcmp.gt.f32.partialorder %v4054_v8, 0.0  ;;  %v4056_v53 = vld [vmem:[#allocation18_spill] sm:$0xff] }
 0x293   :  { %v1159_v50 = vsel %vm4053_vm14, %v4003_v0, %v4052_v17  ;;  %v1112_v34 = vmul.f32 0.2, %v4041_v43  ;;  %v1160_v26 = vsel %vm1032_vm3, %v4005_v41, %v4055_v16  ;;  %vm4057_vm0 = vcmp.gt.f32.partialorder %v4007_v13, 0.0  ;;  %1690 = vst [vmem:[%s3800_s4 + $0x78] sm:$0xff] %v1594_v48  }
 0x294   :  { %v1161_v7 = vsel %vm4057_vm0, %v4007_v13, %v4056_v53  ;;  %v1604_v0 = vpack.c.bf16 %v1155_v19, %v1154_v49  ;;  %v1113_v21 = vmul.f32 0.2, %v4042_v56  ;;  %v1162_v12 = vsel %vm1034_vm5, %v4009_v37, %v3427_v4  ;;  %1691 = vst [vmem:[%s3800_s4 + $0x80] sm:$0xff] %v1599_v27  }
 0x295   :  { %vm4058_vm3 = vcmp.gt.f32.partialorder %v4010_v10, 0.0  ;;  %v1609_v13 = vpack.c.bf16 %v1157_v33, %v1156_v40  ;;  %v1114_v20 = vmul.f32 0.2, %v4046_v45  ;;  %vm4059_vm14 = vcmp.gt.f32.partialorder %v4011_v44, 0.0 }
 0x296   :  { %v1163_v41 = vsel %vm4058_vm3, %v4010_v10, %v3453_v58  ;;  %v1164_v3 = vsel %vm4059_vm14, %v4011_v44, %v3469_v15  ;;  %vm4060_vm5 = vcmp.gt.f32.partialorder %v3164_v24, 0.0  ;;  %v1614_v4 = vpack.c.bf16 %v1159_v50, %v1158_v46  ;;  %1692 = vst [vmem:[%s3800_s4 + $0x88] sm:$0xff] %v1604_v0  }
 0x297   :  { %v1165_v37 = vsel %vm4060_vm5, %v3164_v24, %v3485_v5  ;;  %v1115_v10 = vmul.f32 0.2, %v4047_v25  ;;  %v1166_v58 = vsel %vm1038_vm1, %v3168_v57, %v3501_v51  ;;  %vm4061_vm0 = vcmp.gt.f32.partialorder %v4015_v14, 0.0  ;;  %1693 = vst [vmem:[%s3800_s4 + $0x90] sm:$0xff] %v1609_v13  }
 0x298   :  { %v1167_v44 = vsel %vm4061_vm0, %v4015_v14, %v3517_v52  ;;  %v1619_v24 = vpack.c.bf16 %v1161_v7, %v1160_v26  ;;  %v1116_v15 = vmul.f32 0.2, %v4049_v6  ;;  %v1168_v5 = vsel %vm1040_vm6, %v4020_v60, %v3533_v32  ;;  %1694 = vst [vmem:[%s3800_s4 + $0x98] sm:$0xff] %v1614_v4  }
 0x299   :  { %vm4062_vm1 = vcmp.gt.f32.partialorder %v4023_v39, 0.0  ;;  %v1624_v51 = vpack.c.bf16 %v1163_v41, %v1162_v12  ;;  %v1117_v14 = vmul.f32 0.2, %v4050_v55  ;;  %v1170_v52 = vsel %vm1042_vm2, %v4026_v11, %v3565_v22 }
 0x29a   :  { %v1169_v57 = vsel %vm4062_vm1, %v4023_v39, %v3549_v63  ;;  %v1171_v60 = vsel %vm1043_vm4, %v4027_v30, %v1107_v62  ;;  %v1629_v32 = vpack.c.bf16 %v1165_v37, %v1164_v3  ;;  %v1118_v39 = vmul.f32 0.2, %v4054_v8  ;;  %v4064_v30 = vld [vmem:[#allocation25_spill] sm:$0xff]  ;;  %1695 = vst [vmem:[%s3800_s4 + $0xa0] sm:$0xff] %v1619_v24  }
 0x29b   :  { %v1172_v63 = vsel %vm1044_vm10, %v4031_v35, %v1108_v29  ;;  %vm4063_vm6 = vcmp.gt.f32.partialorder %v4032_v18, 0.0  ;;  %v1634_v11 = vpack.c.bf16 %v1167_v44, %v1166_v58  ;;  %v1119_v22 = vmul.f32 0.2, %v4064_v30  ;;  %1696 = vst [vmem:[%s3800_s4 + $0xa8] sm:$0xff] %v1624_v51  }
 0x29c   :  { %v1173_v54 = vsel %vm4063_vm6, %v4032_v18, %v1109_v36  ;;  %v1174_v62 = vsel %vm1046_vm11, %v4036_v28, %v1110_v47  ;;  %vm4065_vm4 = vcmp.gt.f32.partialorder %v4037_v61, 0.0  ;;  %v1639_v35 = vpack.c.bf16 %v1169_v57, %v1168_v5  ;;  %1697 = vst [vmem:[%s3800_s4 + $0xb0] sm:$0xff] %v1629_v32  }
 0x29d   :  { %v1175_v38 = vsel %vm4065_vm4, %v4037_v61, %v1111_v9  ;;  %vm1055_vm2 = vcmp.gt.f32.partialorder %v4064_v30, 0.0  ;;  %v1176_v18 = vsel %vm1048_vm12, %v4041_v43, %v1112_v34  ;;  %vm4066_vm10 = vcmp.gt.f32.partialorder %v4042_v56, 0.0  ;;  %1698 = vst [vmem:[%s3800_s4 + $0xb8] sm:$0xff] %v1634_v11  }
 0x29e   :  { %v1177_v29 = vsel %vm4066_vm10, %v4042_v56, %v1113_v21  ;;  %v1644_v28 = vpack.c.bf16 %v1171_v60, %v1170_v52  ;;  %v1178_v61 = vsel %vm1050_vm7, %v4046_v45, %v1114_v20  ;;  %v1179_v2 = vsel %vm1051_vm9, %v4047_v25, %v1115_v10  ;;  %1699 = vst [vmem:[%s3800_s4 + $0xc0] sm:$0xff] %v1639_v35  }
 0x29f   :  { %v1649_v43 = vpack.c.bf16 %v1173_v54, %v1172_v63  ;;  %v1180_v56 = vsel %vm1052_vm13, %v4049_v6, %v1116_v15  ;;  %v1181_v36 = vsel %vm1053_vm8, %v4050_v55, %v1117_v14  ;;  %v1654_v59 = vpack.c.bf16 %v1175_v38, %v1174_v62 }
 0x2a0   :  { %v1182_v49 = vsel %vm1054_vm15, %v4054_v8, %v1118_v39  ;;  %v1183_v42 = vsel %vm1055_vm2, %v4064_v30, %v1119_v22  ;;  %v1659_v19 = vpack.c.bf16 %v1177_v29, %v1176_v18  ;;  %1700 = vst [vmem:[%s3800_s4 + $0xc8] sm:$0xff] %v1644_v28   ;;  %v1664_v23 = vpack.c.bf16 %v1179_v2, %v1178_v61 }
 0x2a1   :  { %1701 = vst [vmem:[%s3800_s4 + $0xd0] sm:$0xff] %v1649_v43   ;;  %v1669_v45 = vpack.c.bf16 %v1181_v36, %v1180_v56  ;;  %v1674_v25 = vpack.c.bf16 %v1183_v42, %v1182_v49 }
 0x2a2   :  { %1702 = vst [vmem:[%s3800_s4 + $0xd8] sm:$0xff] %v1654_v59  }
 0x2a3   :  { %1703 = vst [vmem:[%s3800_s4 + $0xe0] sm:$0xff] %v1659_v19  }
 0x2a4   :  { %1704 = vst [vmem:[%s3800_s4 + $0xe8] sm:$0xff] %v1664_v23  }
 0x2a5   :  { %1705 = vst [vmem:[%s3800_s4 + $0xf0] sm:$0xff] %v1669_v45  }
 0x2a6   :  { %1706 = vst [vmem:[%s3800_s4 + $0xf8] sm:$0xff] %v1674_v25  }

// kernel: netlocalD_forward.7
= control target key start
LH: loop header
LB: loop body
LE: loop exit
PB: predicated region body
PF: predicated region fallthrough
CT: control target
= control target key end

     0   :  { %s1047_s1 = inlined_call_operand.vmem [shape: bf16[256,128], index: 1, kind: input, shape index: {}]   ;;  %s1048_s0 = inlined_call_operand.vmem [shape: bf16[128,256], index: 0, kind: input, shape index: {}]   ;;  %s1049_s2 = inlined_call_operand.vmem [shape: f32[1,128], index: 2, kind: input, shape index: {}]   ;;  %s1050_s3 = inlined_call_operand.vmem [shape: f32[1,128], index: 3, kind: input, shape index: {}]   ;;  %s1051_s4 = inlined_call_operand.vmem [shape: bf16[128,128], index: 4, kind: output, shape index: {}]  }
   0x1   :  { %v724_v0 = vld [vmem:[%s1047_s1 + $0x38] sm:$0xff]  ;;  %v723_v2 = vld [vmem:[%s1047_s1 + $0x30] sm:$0xff]  ;;  %v722_v4 = vld [vmem:[%s1047_s1 + $0x28] sm:$0xff] }
   0x2   :  { %v732_v1 = vld [vmem:[%s1047_s1 + $0x78] sm:$0xff]  ;;  %241 = vmatpush.bf16.msra.mxu0 %v724_v0  ;;  %v731_v3 = vld [vmem:[%s1047_s1 + $0x70] sm:$0xff]  ;;  %780 = vmatpush.bf16.msra.mxu2 %v724_v0  ;;  %v730_v5 = vld [vmem:[%s1047_s1 + $0x68] sm:$0xff] }
   0x3   :  { %290 = vmatpush.bf16.msra.mxu1 %v732_v1  ;;  %788 = vmatpush.bf16.msra.mxu3 %v732_v1  ;;  %v721_v6 = vld [vmem:[%s1047_s1 + $0x20] sm:$0xff]  ;;  %v720_v8 = vld [vmem:[%s1047_s1 + $0x18] sm:$0xff]  ;;  %v719_v10 = vld [vmem:[%s1047_s1 + $0x10] sm:$0xff] }
   0x4   :  { %v729_v7 = vld [vmem:[%s1047_s1 + $0x60] sm:$0xff]  ;;  %v728_v9 = vld [vmem:[%s1047_s1 + $0x58] sm:$0xff]  ;;  %v727_v11 = vld [vmem:[%s1047_s1 + $0x50] sm:$0xff] }
   0x5   :  { %v718_v12 = vld [vmem:[%s1047_s1 + $0x8] sm:$0xff]  ;;  %v717_v14 = vld [vmem:[%s1047_s1] sm:$0xff]  ;;  %v583_v28 = vld [vmem:[%s1048_s0 + $0x10] sm:$0xf] }
   0x6   :  { %242 = vmatpush.bf16.msra.mxu0 %v723_v2  ;;  %781 = vmatpush.bf16.msra.mxu2 %v723_v2  ;;  %v726_v13 = vld [vmem:[%s1047_s1 + $0x48] sm:$0xff]  ;;  %v725_v15 = vld [vmem:[%s1047_s1 + $0x40] sm:$0xff]  ;;  %v704_v29 = vld [vmem:[%s1048_s0 + $0x14] sm:$0xf0] }
   0x7   :  { %291 = vmatpush.bf16.msra.mxu1 %v731_v3  ;;  %789 = vmatpush.bf16.msra.mxu3 %v731_v3  ;;  %v575_v16 = vld [vmem:[%s1048_s0] sm:$0xf]  ;;  %v702_v17 = vld [vmem:[%s1048_s0 + $0x4] sm:$0xf0]  ;;  %v701_v18 = vld [vmem:[%s1048_s0 + $0x4] sm:$0xf]  ;;  %v584_v36 = vor.u32 %v704_v29, %v583_v28 }
   0x8   :  { %v577_v19 = vld [vmem:[%s1048_s0 + $0x8] sm:$0xf0]  ;;  %v607_v20 = vld [vmem:[%s1048_s0 + $0x40] sm:$0xf]  ;;  %v710_v21 = vld [vmem:[%s1048_s0 + $0x44] sm:$0xf0]  ;;  %v576_v24 = vor.u32 %v702_v17, %v575_v16 }
   0x9   :  { %v709_v22 = vld [vmem:[%s1048_s0 + $0x44] sm:$0xf]  ;;  %v609_v23 = vld [vmem:[%s1048_s0 + $0x48] sm:$0xf0]  ;;  %v580_v25 = vor.u32 %v701_v18, %v577_v19  ;;  %v608_v26 = vor.u32 %v710_v21, %v607_v20  ;;  %v703_v30 = vld [vmem:[%s1048_s0 + $0x14] sm:$0xf] }
   0xa   :  { %243 = vmatpush.bf16.msra.mxu0 %v722_v4  ;;  %782 = vmatpush.bf16.msra.mxu2 %v722_v4  ;;  %v612_v27 = vor.u32 %v709_v22, %v609_v23  ;;  %v585_v31 = vld [vmem:[%s1048_s0 + $0x18] sm:$0xf0]  ;;  %v615_v32 = vld [vmem:[%s1048_s0 + $0x50] sm:$0xf]  ;;  %v712_v33 = vld [vmem:[%s1048_s0 + $0x54] sm:$0xf0] }
   0xb   :  { %292 = vmatpush.bf16.msra.mxu1 %v730_v5  ;;  %790 = vmatpush.bf16.msra.mxu3 %v730_v5  ;;  %v711_v34 = vld [vmem:[%s1048_s0 + $0x54] sm:$0xf]  ;;  %v617_v35 = vld [vmem:[%s1048_s0 + $0x58] sm:$0xf0]  ;;  %v588_v37 = vor.u32 %v703_v30, %v585_v31  ;;  %v616_v38 = vor.u32 %v712_v33, %v615_v32  ;;  %v591_v40 = vld [vmem:[%s1048_s0 + $0x20] sm:$0xf] }
   0xc   :  { %v620_v39 = vor.u32 %v711_v34, %v617_v35  ;;  %v706_v41 = vld [vmem:[%s1048_s0 + $0x24] sm:$0xf0]  ;;  %v705_v42 = vld [vmem:[%s1048_s0 + $0x24] sm:$0xf]  ;;  %v593_v43 = vld [vmem:[%s1048_s0 + $0x28] sm:$0xf0] }
   0xd   :  { %v623_v44 = vld [vmem:[%s1048_s0 + $0x60] sm:$0xf]  ;;  %v714_v45 = vld [vmem:[%s1048_s0 + $0x64] sm:$0xf0]  ;;  %v713_v46 = vld [vmem:[%s1048_s0 + $0x64] sm:$0xf]  ;;  %v592_v48 = vor.u32 %v706_v41, %v591_v40  ;;  %v596_v49 = vor.u32 %v705_v42, %v593_v43 }
   0xe   :  { %244 = vmatpush.bf16.msra.mxu0 %v721_v6  ;;  %783 = vmatpush.bf16.msra.mxu2 %v721_v6  ;;  %v625_v47 = vld [vmem:[%s1048_s0 + $0x68] sm:$0xf0]  ;;  %v624_v50 = vor.u32 %v714_v45, %v623_v44  ;;  %v599_v52 = vld [vmem:[%s1048_s0 + $0x30] sm:$0xf]  ;;  %v708_v53 = vld [vmem:[%s1048_s0 + $0x34] sm:$0xf0] }
   0xf   :  { %293 = vmatpush.bf16.msra.mxu1 %v729_v7  ;;  %791 = vmatpush.bf16.msra.mxu3 %v729_v7  ;;  %v628_v51 = vor.u32 %v713_v46, %v625_v47  ;;  %v707_v54 = vld [vmem:[%s1048_s0 + $0x34] sm:$0xf]  ;;  %v601_v55 = vld [vmem:[%s1048_s0 + $0x38] sm:$0xf0]  ;;  %v631_v56 = vld [vmem:[%s1048_s0 + $0x70] sm:$0xf]  ;;  %v600_v60 = vor.u32 %v708_v53, %v599_v52 }
  0x10   :  { %v716_v57 = vld [vmem:[%s1048_s0 + $0x74] sm:$0xf0]  ;;  %v715_v58 = vld [vmem:[%s1048_s0 + $0x74] sm:$0xf]  ;;  %v633_v59 = vld [vmem:[%s1048_s0 + $0x78] sm:$0xf0]  ;;  %v604_v61 = vor.u32 %v707_v54, %v601_v55 }
  0x11   :  { %v632_v62 = vor.u32 %v716_v57, %v631_v56  ;;  %v636_v63 = vor.u32 %v715_v58, %v633_v59 }
  0x12   :  { %245 = vmatpush.bf16.msra.mxu0 %v720_v8  ;;  %784 = vmatpush.bf16.msra.mxu2 %v720_v8 }
  0x13   :  { %294 = vmatpush.bf16.msra.mxu1 %v728_v9  ;;  %792 = vmatpush.bf16.msra.mxu3 %v728_v9 }
  0x16   :  { %246 = vmatpush.bf16.msra.mxu0 %v719_v10  ;;  %785 = vmatpush.bf16.msra.mxu2 %v719_v10 }
  0x17   :  { %295 = vmatpush.bf16.msra.mxu1 %v727_v11  ;;  %793 = vmatpush.bf16.msra.mxu3 %v727_v11 }
  0x1a   :  { %247 = vmatpush.bf16.msra.mxu0 %v718_v12  ;;  %786 = vmatpush.bf16.msra.mxu2 %v718_v12 }
  0x1b   :  { %296 = vmatpush.bf16.msra.mxu1 %v726_v13  ;;  %794 = vmatpush.bf16.msra.mxu3 %v726_v13 }
  0x1e   :  { %248 = vmatpush.bf16.msra.mxu0 %v717_v14  ;;  %787 = vmatpush.bf16.msra.mxu2 %v717_v14 }
  0x1f   :  { %297 = vmatpush.bf16.msra.mxu1 %v725_v15  ;;  %795 = vmatpush.bf16.msra.mxu3 %v725_v15 }
  0x21   :  { %249 = vmatmul.bf16.vlgmr.msra.gmra.mxu0 %v576_v24  ;;  %269 = vmatmul.bf16.vlgmr.msra.gmra.mxu2 %v608_v26 }
  0x22   :  { %298 = vmatmul.bf16.vlgmr.msra.gmra.mxu1 %v580_v25  ;;  %318 = vmatmul.bf16.vlgmr.msra.gmra.mxu3 %v612_v27 }
  0x31   :  { %254 = vmatmul.bf16.gmra.mxu0 %v584_v36  ;;  %274 = vmatmul.bf16.gmra.mxu2 %v616_v38 }
  0x32   :  { %303 = vmatmul.bf16.gmra.mxu1 %v588_v37  ;;  %323 = vmatmul.bf16.gmra.mxu3 %v620_v39 }
  0x41   :  { %259 = vmatmul.bf16.gmra.mxu0 %v592_v48  ;;  %279 = vmatmul.bf16.gmra.mxu2 %v624_v50  ;;  %v803_v48 = vmov 128.0  }
  0x42   :  { %308 = vmatmul.bf16.gmra.mxu1 %v596_v49  ;;  %328 = vmatmul.bf16.gmra.mxu3 %v628_v51  ;;  %799 = vrcp.f32 %v803_v48 }
  0x48   :  { %v800_v53 = vpop.eup %799 }
  0x49   :  { %vm365_vm0 = vweird.f32 %v800_v53 }
  0x51   :  { %264 = vmatmul.bf16.gmra.mxu0 %v600_v60  ;;  %284 = vmatmul.bf16.gmra.mxu2 %v632_v62  ;;  %v361_v60 = vmul.f32 128.0, %v800_v53 }
  0x52   :  { %313 = vmatmul.bf16.gmra.mxu1 %v604_v61  ;;  %333 = vmatmul.bf16.gmra.mxu3 %v636_v63 }
  0x9e   :  { %v250_v0 = vpop.f32.mrf.mxu0 }
  0x9f   :  { %v299_v1 = vpop.f32.mrf.mxu1 }
  0xa0   :  { %v300_v23 = vadd.f32 %v299_v1, %v250_v0  ;;  %v362_v1 = vsub.f32 1.0, %v361_v60 }
  0xa4   :  { %v270_v2 = vpop.f32.mrf.mxu2 }
  0xa5   :  { %v319_v3 = vpop.f32.mrf.mxu3 }
  0xa6   :  { %v252_v4 = vpop.f32.mrf.mxu0  ;;  %v320_v42 = vadd.f32 %v319_v3, %v270_v2 }
  0xa7   :  { %v301_v5 = vpop.f32.mrf.mxu1 }
  0xa8   :  { %v302_v22 = vadd.f32 %v301_v5, %v252_v4  ;;  %v363_v4 = vmul.f32 %v800_v53, %v362_v1 }
  0xaa   :  { %v339_v25 = vadd.f32 %v302_v22, %v300_v23 }
  0xac   :  { %v272_v6 = vpop.f32.mrf.mxu2 }
  0xad   :  { %v321_v7 = vpop.f32.mrf.mxu3 }
  0xae   :  { %v255_v8 = vpop.f32.mrf.mxu0  ;;  %v322_v46 = vadd.f32 %v321_v7, %v272_v6  ;;  %v364_v7 = vadd.f32 %v800_v53, %v363_v4 }
  0xaf   :  { %v304_v9 = vpop.f32.mrf.mxu1 }
  0xb0   :  { %v305_v24 = vadd.f32 %v304_v9, %v255_v8 }
  0xb2   :  { %v340_v29 = vadd.f32 %v339_v25, %v305_v24 }
  0xb4   :  { %v275_v10 = vpop.f32.mrf.mxu2 }
  0xb5   :  { %v324_v11 = vpop.f32.mrf.mxu3 }
  0xb6   :  { %v257_v12 = vpop.f32.mrf.mxu0  ;;  %v325_v49 = vadd.f32 %v324_v11, %v275_v10  ;;  %v366_v10 = vsel %vm365_vm0, %v800_v53, %v364_v7 }
  0xb7   :  { %v306_v13 = vpop.f32.mrf.mxu1 }
  0xb8   :  { %v307_v26 = vadd.f32 %v306_v13, %v257_v12 }
  0xba   :  { %v341_v33 = vadd.f32 %v340_v29, %v307_v26 }
  0xbc   :  { %v277_v14 = vpop.f32.mrf.mxu2 }
  0xbd   :  { %v326_v15 = vpop.f32.mrf.mxu3 }
  0xbe   :  { %v260_v16 = vpop.f32.mrf.mxu0  ;;  %v327_v51 = vadd.f32 %v326_v15, %v277_v14 }
  0xbf   :  { %v309_v17 = vpop.f32.mrf.mxu1 }
  0xc0   :  { %v310_v30 = vadd.f32 %v309_v17, %v260_v16 }
  0xc2   :  { %v342_v35 = vadd.f32 %v341_v33, %v310_v30 }
  0xc4   :  { %v280_v18 = vpop.f32.mrf.mxu2 }
  0xc5   :  { %v329_v19 = vpop.f32.mrf.mxu3 }
  0xc6   :  { %v262_v20 = vpop.f32.mrf.mxu0  ;;  %v330_v54 = vadd.f32 %v329_v19, %v280_v18 }
  0xc7   :  { %v311_v21 = vpop.f32.mrf.mxu1 }
  0xc8   :  { %v312_v34 = vadd.f32 %v311_v21, %v262_v20 }
  0xca   :  { %v343_v37 = vadd.f32 %v342_v35, %v312_v34 }
  0xcc   :  { %v282_v31 = vpop.f32.mrf.mxu2 }
  0xcd   :  { %v331_v32 = vpop.f32.mrf.mxu3 }
  0xce   :  { %v265_v27 = vpop.f32.mrf.mxu0  ;;  %v332_v56 = vadd.f32 %v331_v32, %v282_v31 }
  0xcf   :  { %v314_v28 = vpop.f32.mrf.mxu1 }
  0xd0   :  { %v315_v36 = vadd.f32 %v314_v28, %v265_v27 }
  0xd2   :  { %v344_v40 = vadd.f32 %v343_v37, %v315_v36 }
  0xd4   :  { %v285_v44 = vpop.f32.mrf.mxu2 }
  0xd5   :  { %v334_v45 = vpop.f32.mrf.mxu3 }
  0xd6   :  { %v267_v38 = vpop.f32.mrf.mxu0  ;;  %v335_v61 = vadd.f32 %v334_v45, %v285_v44 }
  0xd7   :  { %v316_v39 = vpop.f32.mrf.mxu1 }
  0xd8   :  { %v317_v41 = vadd.f32 %v316_v39, %v267_v38 }
  0xda   :  { %v345_v43 = vadd.f32 %v344_v40, %v317_v41 }
  0xdc   :  { %v346_v47 = vadd.f32 %v345_v43, %v320_v42  ;;  %v287_v58 = vpop.f32.mrf.mxu2 }
  0xdd   :  { %v336_v59 = vpop.f32.mrf.mxu3 }
  0xde   :  { %v347_v50 = vadd.f32 %v346_v47, %v322_v46  ;;  %v337_v0 = vadd.f32 %v336_v59, %v287_v58 }
  0xe0   :  { %v348_v52 = vadd.f32 %v347_v50, %v325_v49 }
  0xe2   :  { %v349_v55 = vadd.f32 %v348_v52, %v327_v51 }
  0xe4   :  { %v350_v57 = vadd.f32 %v349_v55, %v330_v54 }
  0xe6   :  { %v351_v62 = vadd.f32 %v350_v57, %v332_v56 }
  0xe8   :  { %v352_v63 = vadd.f32 %v351_v62, %v335_v61 }
  0xea   :  { %v353_v2 = vadd.f32 %v352_v63, %v337_v0 }
  0xec   :  { %v354_v3 = vrot.slane %v353_v2, 4 }
  0xee   :  { %v355_v5 = vadd.f32 %v354_v3, %v353_v2 }
  0xf0   :  { %v356_v6 = vrot.slane %v355_v5, 2 }
  0xf2   :  { %v357_v8 = vadd.f32 %v356_v6, %v355_v5 }
  0xf4   :  { %v358_v9 = vrot.slane %v357_v8, 1 }
  0xf6   :  { %v359_v11 = vadd.f32 %v358_v9, %v357_v8 }
  0xf8   :  { %v367_v12 = vmul.f32 %v366_v10, %v359_v11 }
  0xfa   :  { %v973_v13 = vsub.f32 %v300_v23, %v367_v12  ;;  %v975_v14 = vsub.f32 %v302_v22, %v367_v12  ;;  %v977_v15 = vsub.f32 %v305_v24, %v367_v12  ;;  %v983_v18 = vsub.f32 %v307_v26, %v367_v12 }
  0xfb   :  { %v985_v19 = vsub.f32 %v310_v30, %v367_v12  ;;  %v989_v23 = vsub.f32 %v312_v34, %v367_v12  ;;  %v374_v25 = vsub.f32 %v315_v36, %v367_v12  ;;  %v375_v29 = vsub.f32 %v317_v41, %v367_v12 }
  0xfc   :  { %v384_v16 = vmul.f32 %v973_v13, %v973_v13  ;;  %v385_v17 = vmul.f32 %v975_v14, %v975_v14  ;;  %v386_v20 = vmul.f32 %v977_v15, %v977_v15  ;;  %v387_v22 = vmul.f32 %v983_v18, %v983_v18 }
  0xfd   :  { %v388_v27 = vmul.f32 %v985_v19, %v985_v19  ;;  %v389_v26 = vmul.f32 %v989_v23, %v989_v23  ;;  %v376_v31 = vsub.f32 %v320_v42, %v367_v12  ;;  %v390_v32 = vmul.f32 %v374_v25, %v374_v25 }
  0xfe   :  { %v400_v21 = vadd.f32 %v385_v17, %v384_v16  ;;  %v377_v35 = vsub.f32 %v322_v46, %v367_v12  ;;  %v391_v34 = vmul.f32 %v375_v29, %v375_v29  ;;  %v378_v38 = vsub.f32 %v325_v49, %v367_v12 }
  0xff   :  { %v392_v39 = vmul.f32 %v376_v31, %v376_v31  ;;  %v379_v43 = vsub.f32 %v327_v51, %v367_v12  ;;  %v380_v45 = vsub.f32 %v330_v54, %v367_v12  ;;  %v381_v41 = vsub.f32 %v332_v56, %v367_v12 }
 0x100   :  { %v401_v24 = vadd.f32 %v400_v21, %v386_v20  ;;  %v393_v36 = vmul.f32 %v377_v35, %v377_v35  ;;  %v394_v47 = vmul.f32 %v378_v38, %v378_v38  ;;  %v382_v53 = vsub.f32 %v335_v61, %v367_v12  ;;  %v797_v20 = vld [vmem:[%s1049_s2] ss:$0 sm:$0xff] }
 0x101   :  { %v395_v50 = vmul.f32 %v379_v43, %v379_v43  ;;  %v396_v55 = vmul.f32 %v380_v45, %v380_v45  ;;  %v383_v57 = vsub.f32 %v337_v0, %v367_v12  ;;  %v397_v58 = vmul.f32 %v381_v41, %v381_v41 }
 0x102   :  { %v402_v28 = vadd.f32 %v401_v24, %v387_v22  ;;  %v398_v59 = vmul.f32 %v382_v53, %v382_v53 }
 0x103   :  { %v399_v49 = vmul.f32 %v383_v57, %v383_v57 }
 0x104   :  { %v403_v30 = vadd.f32 %v402_v28, %v388_v27 }
 0x106   :  { %v404_v33 = vadd.f32 %v403_v30, %v389_v26 }
 0x108   :  { %v405_v37 = vadd.f32 %v404_v33, %v390_v32 }
 0x10a   :  { %v406_v40 = vadd.f32 %v405_v37, %v391_v34 }
 0x10c   :  { %v407_v44 = vadd.f32 %v406_v40, %v392_v39  ;;  %v798_v39 = vld [vmem:[%s1050_s3] ss:$0 sm:$0xff] }
 0x10e   :  { %v408_v48 = vadd.f32 %v407_v44, %v393_v36 }
 0x110   :  { %v409_v52 = vadd.f32 %v408_v48, %v394_v47 }
 0x112   :  { %v410_v42 = vadd.f32 %v409_v52, %v395_v50 }
 0x114   :  { %v411_v46 = vadd.f32 %v410_v42, %v396_v55 }
 0x116   :  { %v412_v60 = vadd.f32 %v411_v46, %v397_v58 }
 0x118   :  { %v413_v62 = vadd.f32 %v412_v60, %v398_v59 }
 0x11a   :  { %v414_v63 = vadd.f32 %v413_v62, %v399_v49 }
 0x11c   :  { %v415_v51 = vrot.slane %v414_v63, 4 }
 0x11e   :  { %v416_v1 = vadd.f32 %v415_v51, %v414_v63 }
 0x120   :  { %v417_v2 = vrot.slane %v416_v1, 2 }
 0x122   :  { %v418_v54 = vadd.f32 %v417_v2, %v416_v1 }
 0x124   :  { %v419_v3 = vrot.slane %v418_v54, 1 }
 0x126   :  { %v420_v4 = vadd.f32 %v419_v3, %v418_v54 }
 0x128   :  { %v421_v56 = vmul.f32 %v420_v4, %v366_v10 }
 0x12a   :  { %v422_v5 = vadd.f32 1e-05, %v421_v56 }
 0x12c   :  { %801 = vrsqrt.f32 %v422_v5  ;;  %vm429_vm2 = vweird.f32 %v422_v5 }
 0x132   :  { %v802_v61 = vpop.eup %801 }
 0x133   :  { %v424_v6 = vmul.f32 %v802_v61, %v422_v5  ;;  %vm430_vm1 = vweird.f32 %v802_v61 }
 0x134   :  { %vm431_vm3 = vmor %vm429_vm2, %vm430_vm1 }
 0x135   :  { %v425_v7 = vmul.f32 %v802_v61, %v424_v6 }
 0x137   :  { %v426_v0 = vmul.f32 0.5, %v425_v7 }
 0x139   :  { %v427_v8 = vsub.f32 1.5, %v426_v0 }
 0x13b   :  { %v428_v9 = vmul.f32 %v802_v61, %v427_v8 }
 0x13d   :  { %v432_v11 = vsel %vm431_vm3, %v802_v61, %v428_v9 }
 0x13e   :  { %v433_v12 = vmul.f32 %v432_v11, %v973_v13  ;;  %v434_v16 = vmul.f32 %v432_v11, %v975_v14  ;;  %v435_v17 = vmul.f32 %v432_v11, %v977_v15  ;;  %v436_v10 = vmul.f32 %v432_v11, %v983_v18 }
 0x13f   :  { %v437_v21 = vmul.f32 %v432_v11, %v985_v19  ;;  %v438_v22 = vmul.f32 %v432_v11, %v989_v23  ;;  %v439_v24 = vmul.f32 %v432_v11, %v374_v25  ;;  %v440_v27 = vmul.f32 %v432_v11, %v375_v29 }
 0x140   :  { %v441_v28 = vmul.f32 %v432_v11, %v376_v31  ;;  %v442_v26 = vmul.f32 %v432_v11, %v377_v35  ;;  %v443_v30 = vmul.f32 %v432_v11, %v378_v38  ;;  %v444_v13 = vmul.f32 %v432_v11, %v379_v43 }
 0x141   :  { %v445_v32 = vmul.f32 %v432_v11, %v380_v45  ;;  %v446_v14 = vmul.f32 %v432_v11, %v381_v41  ;;  %v447_v33 = vmul.f32 %v432_v11, %v382_v53  ;;  %v453_v15 = vmul.f32 %v797_v20, %v433_v12 }
 0x142   :  { %v454_v34 = vmul.f32 %v797_v20, %v434_v16  ;;  %v455_v18 = vmul.f32 %v797_v20, %v435_v17  ;;  %v456_v37 = vmul.f32 %v797_v20, %v436_v10  ;;  %v457_v19 = vmul.f32 %v797_v20, %v437_v21 }
 0x143   :  { %v458_v40 = vmul.f32 %v797_v20, %v438_v22  ;;  %v459_v23 = vmul.f32 %v797_v20, %v439_v24  ;;  %v460_v25 = vmul.f32 %v797_v20, %v440_v27  ;;  %v461_v29 = vmul.f32 %v797_v20, %v441_v28 }
 0x144   :  { %v462_v31 = vmul.f32 %v797_v20, %v442_v26  ;;  %v463_v35 = vmul.f32 %v797_v20, %v443_v30  ;;  %v464_v38 = vmul.f32 %v797_v20, %v444_v13  ;;  %v448_v43 = vmul.f32 %v432_v11, %v383_v57 }
 0x145   :  { %v465_v36 = vmul.f32 %v797_v20, %v445_v32  ;;  %v466_v44 = vmul.f32 %v797_v20, %v446_v14  ;;  %v467_v45 = vmul.f32 %v797_v20, %v447_v33  ;;  %v473_v47 = vadd.f32 %v798_v39, %v453_v15 }
 0x146   :  { %v474_v48 = vadd.f32 %v798_v39, %v454_v34  ;;  %v475_v41 = vadd.f32 %v798_v39, %v455_v18  ;;  %v476_v50 = vadd.f32 %v798_v39, %v456_v37  ;;  %v477_v52 = vadd.f32 %v798_v39, %v457_v19 }
 0x147   :  { %v478_v53 = vadd.f32 %v798_v39, %v458_v40  ;;  %v479_v55 = vadd.f32 %v798_v39, %v459_v23  ;;  %v480_v42 = vadd.f32 %v798_v39, %v460_v25  ;;  %v481_v58 = vadd.f32 %v798_v39, %v461_v29 }
 0x148   :  { %v482_v46 = vadd.f32 %v798_v39, %v462_v31  ;;  %v483_v59 = vadd.f32 %v798_v39, %v463_v35  ;;  %v484_v60 = vadd.f32 %v798_v39, %v464_v38  ;;  %v468_v49 = vmul.f32 %v797_v20, %v448_v43 }
 0x149   :  { %v485_v62 = vadd.f32 %v798_v39, %v465_v36  ;;  %v486_v63 = vadd.f32 %v798_v39, %v466_v44  ;;  %v487_v51 = vadd.f32 %v798_v39, %v467_v45  ;;  %vm489_vm4 = vcmp.gt.f32.partialorder %v473_v47, 0.0 }
 0x14a   :  { %vm490_vm5 = vcmp.gt.f32.partialorder %v474_v48, 0.0  ;;  %vm491_vm6 = vcmp.gt.f32.partialorder %v475_v41, 0.0  ;;  %vm492_vm7 = vcmp.gt.f32.partialorder %v476_v50, 0.0  ;;  %vm493_vm8 = vcmp.gt.f32.partialorder %v477_v52, 0.0 }
 0x14b   :  { %vm494_vm9 = vcmp.gt.f32.partialorder %v478_v53, 0.0  ;;  %vm495_vm10 = vcmp.gt.f32.partialorder %v479_v55, 0.0  ;;  %vm496_vm11 = vcmp.gt.f32.partialorder %v480_v42, 0.0  ;;  %vm497_vm12 = vcmp.gt.f32.partialorder %v481_v58, 0.0 }
 0x14c   :  { %vm498_vm13 = vcmp.gt.f32.partialorder %v482_v46, 0.0  ;;  %vm499_vm14 = vcmp.gt.f32.partialorder %v483_v59, 0.0  ;;  %vm500_vm15 = vcmp.gt.f32.partialorder %v484_v60, 0.0  ;;  %vm501_vm0 = vcmp.gt.f32.partialorder %v485_v62, 0.0 }
 0x14d   :  { %vm502_vm1 = vcmp.gt.f32.partialorder %v486_v63, 0.0  ;;  %v505_v57 = vmul.f32 0.2, %v473_v47  ;;  %v506_v1 = vmul.f32 0.2, %v474_v48  ;;  %v488_v2 = vadd.f32 %v798_v39, %v468_v49 }
 0x14e   :  { %v507_v54 = vmul.f32 0.2, %v475_v41  ;;  %v508_v3 = vmul.f32 0.2, %v476_v50  ;;  %v509_v4 = vmul.f32 0.2, %v477_v52 }
 0x14f   :  { %v510_v56 = vmul.f32 0.2, %v478_v53  ;;  %v511_v5 = vmul.f32 0.2, %v479_v55  ;;  %v512_v61 = vmul.f32 0.2, %v480_v42  ;;  %v521_v8 = vsel %vm489_vm4, %v473_v47, %v505_v57 }
 0x150   :  { %v513_v6 = vmul.f32 0.2, %v481_v58  ;;  %v514_v7 = vmul.f32 0.2, %v482_v46  ;;  %v515_v0 = vmul.f32 0.2, %v483_v59  ;;  %v522_v16 = vsel %vm490_vm5, %v474_v48, %v506_v1 }
 0x151   :  { %v516_v9 = vmul.f32 0.2, %v484_v60  ;;  %v517_v11 = vmul.f32 0.2, %v485_v62  ;;  %v518_v12 = vmul.f32 0.2, %v486_v63  ;;  %v523_v20 = vsel %vm491_vm6, %v475_v41, %v507_v54 }
 0x152   :  { %v519_v17 = vmul.f32 0.2, %v487_v51  ;;  %v520_v10 = vmul.f32 0.2, %v488_v2  ;;  %v524_v21 = vsel %vm492_vm7, %v476_v50, %v508_v3  ;;  %v525_v22 = vsel %vm493_vm8, %v477_v52, %v509_v4 }
 0x153   :  { %v526_v24 = vsel %vm494_vm9, %v478_v53, %v510_v56  ;;  %v527_v27 = vsel %vm495_vm10, %v479_v55, %v511_v5  ;;  %v528_v28 = vsel %vm496_vm11, %v480_v42, %v512_v61  ;;  %vm503_vm2 = vcmp.gt.f32.partialorder %v487_v51, 0.0 }
 0x154   :  { %vm504_vm3 = vcmp.gt.f32.partialorder %v488_v2, 0.0  ;;  %v529_v26 = vsel %vm497_vm12, %v481_v58, %v513_v6  ;;  %v530_v30 = vsel %vm498_vm13, %v482_v46, %v514_v7  ;;  %v531_v13 = vsel %vm499_vm14, %v483_v59, %v515_v0 }
 0x155   :  { %v532_v32 = vsel %vm500_vm15, %v484_v60, %v516_v9  ;;  %v736_v14 = vpack.c.bf16 %v522_v16, %v521_v8  ;;  %v741_v33 = vpack.c.bf16 %v524_v21, %v523_v20  ;;  %v533_v15 = vsel %vm501_vm0, %v485_v62, %v517_v11 }
 0x156   :  { %v534_v34 = vsel %vm502_vm1, %v486_v63, %v518_v12  ;;  %v746_v18 = vpack.c.bf16 %v526_v24, %v525_v22  ;;  %v751_v37 = vpack.c.bf16 %v528_v28, %v527_v27  ;;  %v535_v39 = vsel %vm503_vm2, %v487_v51, %v519_v17 }
 0x157   :  { %v536_v19 = vsel %vm504_vm3, %v488_v2, %v520_v10  ;;  %737 = vst [vmem:[%s1051_s4] sm:$0xff] %v736_v14   ;;  %v756_v40 = vpack.c.bf16 %v530_v30, %v529_v26  ;;  %v761_v23 = vpack.c.bf16 %v532_v32, %v531_v13  ;;  %v766_v25 = vpack.c.bf16 %v534_v34, %v533_v15 }
 0x158   :  { %773 = vst [vmem:[%s1051_s4 + $0x8] sm:$0xff] %v741_v33   ;;  %v771_v29 = vpack.c.bf16 %v536_v19, %v535_v39 }
 0x159   :  { %774 = vst [vmem:[%s1051_s4 + $0x10] sm:$0xff] %v746_v18  }
 0x15a   :  { %775 = vst [vmem:[%s1051_s4 + $0x18] sm:$0xff] %v751_v37  }
 0x15b   :  { %776 = vst [vmem:[%s1051_s4 + $0x20] sm:$0xff] %v756_v40  }
 0x15c   :  { %777 = vst [vmem:[%s1051_s4 + $0x28] sm:$0xff] %v761_v23  }
 0x15d   :  { %778 = vst [vmem:[%s1051_s4 + $0x30] sm:$0xff] %v766_v25  }
 0x15e   :  { %779 = vst [vmem:[%s1051_s4 + $0x38] sm:$0xff] %v771_v29  }

// kernel: netlocalD_forward.8
= control target key start
LH: loop header
LB: loop body
LE: loop exit
PB: predicated region body
PF: predicated region fallthrough
CT: control target
= control target key end

     0   :  { %s887_s1 = inlined_call_operand.vmem [shape: bf16[512,128], index: 1, kind: input, shape index: {}]   ;;  %s888_s0 = inlined_call_operand.vmem [shape: bf16[32,512], index: 0, kind: input, shape index: {}]   ;;  %s889_s2 = inlined_call_operand.vmem [shape: f32[1,128], index: 2, kind: input, shape index: {}]   ;;  %s890_s3 = inlined_call_operand.vmem [shape: f32[1,128], index: 3, kind: input, shape index: {}]   ;;  %s891_s4 = inlined_call_operand.vmem [shape: bf16[32,128], index: 4, kind: output, shape index: {}]  }
   0x1   :  { %v662_v0 = vld [vmem:[%s887_s1 + $0x38] sm:$0xff]  ;;  %v661_v4 = vld [vmem:[%s887_s1 + $0x30] sm:$0xff]  ;;  %v660_v8 = vld [vmem:[%s887_s1 + $0x28] sm:$0xff] }
   0x2   :  { %v670_v1 = vld [vmem:[%s887_s1 + $0x78] sm:$0xff]  ;;  %321 = vmatpush.bf16.msra.mxu0 %v662_v0  ;;  %v669_v5 = vld [vmem:[%s887_s1 + $0x70] sm:$0xff]  ;;  %v668_v9 = vld [vmem:[%s887_s1 + $0x68] sm:$0xff] }
   0x3   :  { %v678_v2 = vld [vmem:[%s887_s1 + $0xb8] sm:$0xff]  ;;  %340 = vmatpush.bf16.msra.mxu1 %v670_v1  ;;  %v677_v6 = vld [vmem:[%s887_s1 + $0xb0] sm:$0xff]  ;;  %v676_v10 = vld [vmem:[%s887_s1 + $0xa8] sm:$0xff] }
   0x4   :  { %v686_v3 = vld [vmem:[%s887_s1 + $0xf8] sm:$0xff]  ;;  %359 = vmatpush.bf16.msra.mxu2 %v678_v2  ;;  %v685_v7 = vld [vmem:[%s887_s1 + $0xf0] sm:$0xff]  ;;  %v684_v11 = vld [vmem:[%s887_s1 + $0xe8] sm:$0xff] }
   0x5   :  { %378 = vmatpush.bf16.msra.mxu3 %v686_v3  ;;  %v659_v12 = vld [vmem:[%s887_s1 + $0x20] sm:$0xff]  ;;  %v658_v16 = vld [vmem:[%s887_s1 + $0x18] sm:$0xff]  ;;  %v657_v20 = vld [vmem:[%s887_s1 + $0x10] sm:$0xff] }
   0x6   :  { %322 = vmatpush.bf16.msra.mxu0 %v661_v4  ;;  %v667_v13 = vld [vmem:[%s887_s1 + $0x60] sm:$0xff]  ;;  %v666_v17 = vld [vmem:[%s887_s1 + $0x58] sm:$0xff]  ;;  %v665_v21 = vld [vmem:[%s887_s1 + $0x50] sm:$0xff] }
   0x7   :  { %341 = vmatpush.bf16.msra.mxu1 %v669_v5  ;;  %v675_v14 = vld [vmem:[%s887_s1 + $0xa0] sm:$0xff]  ;;  %v674_v18 = vld [vmem:[%s887_s1 + $0x98] sm:$0xff]  ;;  %v673_v22 = vld [vmem:[%s887_s1 + $0x90] sm:$0xff]  ;;  %v705_v5 = vmov 32.0  }
   0x8   :  { %360 = vmatpush.bf16.msra.mxu2 %v677_v6  ;;  %v683_v15 = vld [vmem:[%s887_s1 + $0xe0] sm:$0xff]  ;;  %v682_v19 = vld [vmem:[%s887_s1 + $0xd8] sm:$0xff]  ;;  %v681_v23 = vld [vmem:[%s887_s1 + $0xd0] sm:$0xff]  ;;  %701 = vrcp.f32 %v705_v5 }
   0x9   :  { %379 = vmatpush.bf16.msra.mxu3 %v685_v7  ;;  %v656_v24 = vld [vmem:[%s887_s1 + $0x8] sm:$0xff]  ;;  %v655_v28 = vld [vmem:[%s887_s1] sm:$0xff]  ;;  %v649_v33 = vld [vmem:[%s888_s0 + $0xc] sm:$0xf0] }
   0xa   :  { %323 = vmatpush.bf16.msra.mxu0 %v660_v8  ;;  %v664_v25 = vld [vmem:[%s887_s1 + $0x48] sm:$0xff]  ;;  %v663_v29 = vld [vmem:[%s887_s1 + $0x40] sm:$0xff]  ;;  %v491_v35 = vld [vmem:[%s888_s0 + $0x10] sm:$0xf0] }
   0xb   :  { %342 = vmatpush.bf16.msra.mxu1 %v668_v9  ;;  %v672_v26 = vld [vmem:[%s887_s1 + $0x88] sm:$0xff]  ;;  %v671_v30 = vld [vmem:[%s887_s1 + $0x80] sm:$0xff]  ;;  %v650_v37 = vld [vmem:[%s888_s0 + $0x14] sm:$0xf0] }
   0xc   :  { %361 = vmatpush.bf16.msra.mxu2 %v676_v10  ;;  %v680_v27 = vld [vmem:[%s887_s1 + $0xc8] sm:$0xff]  ;;  %v679_v31 = vld [vmem:[%s887_s1 + $0xc0] sm:$0xff]  ;;  %v499_v39 = vld [vmem:[%s888_s0 + $0x18] sm:$0xf0] }
   0xd   :  { %380 = vmatpush.bf16.msra.mxu3 %v684_v11  ;;  %v489_v32 = vld [vmem:[%s888_s0] sm:$0xf]  ;;  %v647_v34 = vld [vmem:[%s888_s0 + $0x4] sm:$0xf]  ;;  %v497_v36 = vld [vmem:[%s888_s0 + $0x8] sm:$0xf] }
   0xe   :  { %324 = vmatpush.bf16.msra.mxu0 %v659_v12  ;;  %v648_v38 = vld [vmem:[%s888_s0 + $0xc] sm:$0xf]  ;;  %v490_v40 = vor.u32 %v649_v33, %v489_v32  ;;  %v494_v41 = vor.u32 %v647_v34, %v491_v35  ;;  %v498_v42 = vor.u32 %v650_v37, %v497_v36  ;;  %v505_v44 = vld [vmem:[%s888_s0 + $0x20] sm:$0xf]  ;;  %v653_v45 = vld [vmem:[%s888_s0 + $0x2c] sm:$0xf0] }
   0xf   :  { %343 = vmatpush.bf16.msra.mxu1 %v667_v13  ;;  %v502_v43 = vor.u32 %v648_v38, %v499_v39  ;;  %v651_v46 = vld [vmem:[%s888_s0 + $0x24] sm:$0xf]  ;;  %v507_v47 = vld [vmem:[%s888_s0 + $0x30] sm:$0xf0]  ;;  %v513_v48 = vld [vmem:[%s888_s0 + $0x28] sm:$0xf]  ;;  %v506_v52 = vor.u32 %v653_v45, %v505_v44  ;;  %v702_v13 = vpop.eup %701 }
  0x10   :  { %362 = vmatpush.bf16.msra.mxu2 %v675_v14  ;;  %v654_v49 = vld [vmem:[%s888_s0 + $0x34] sm:$0xf0]  ;;  %v652_v50 = vld [vmem:[%s888_s0 + $0x2c] sm:$0xf]  ;;  %v515_v51 = vld [vmem:[%s888_s0 + $0x38] sm:$0xf0]  ;;  %v510_v53 = vor.u32 %v651_v46, %v507_v47  ;;  %vm411_vm0 = vweird.f32 %v702_v13 }
  0x11   :  { %381 = vmatpush.bf16.msra.mxu3 %v683_v15  ;;  %v514_v54 = vor.u32 %v654_v49, %v513_v48  ;;  %v518_v55 = vor.u32 %v652_v50, %v515_v51 }
  0x12   :  { %325 = vmatpush.bf16.msra.mxu0 %v658_v16 }
  0x13   :  { %344 = vmatpush.bf16.msra.mxu1 %v666_v17 }
  0x14   :  { %363 = vmatpush.bf16.msra.mxu2 %v674_v18 }
  0x15   :  { %382 = vmatpush.bf16.msra.mxu3 %v682_v19  ;;  %v407_v19 = vmul.f32 32.0, %v702_v13 }
  0x16   :  { %326 = vmatpush.bf16.msra.mxu0 %v657_v20 }
  0x17   :  { %345 = vmatpush.bf16.msra.mxu1 %v665_v21 }
  0x18   :  { %364 = vmatpush.bf16.msra.mxu2 %v673_v22 }
  0x19   :  { %383 = vmatpush.bf16.msra.mxu3 %v681_v23 }
  0x1a   :  { %327 = vmatpush.bf16.msra.mxu0 %v656_v24 }
  0x1b   :  { %346 = vmatpush.bf16.msra.mxu1 %v664_v25  ;;  %v408_v25 = vsub.f32 1.0, %v407_v19 }
  0x1c   :  { %365 = vmatpush.bf16.msra.mxu2 %v672_v26 }
  0x1d   :  { %384 = vmatpush.bf16.msra.mxu3 %v680_v27 }
  0x1e   :  { %328 = vmatpush.bf16.msra.mxu0 %v655_v28  ;;  %v409_v28 = vmul.f32 %v702_v13, %v408_v25 }
  0x1f   :  { %347 = vmatpush.bf16.msra.mxu1 %v663_v29 }
  0x20   :  { %366 = vmatpush.bf16.msra.mxu2 %v671_v30 }
  0x21   :  { %385 = vmatpush.bf16.msra.mxu3 %v679_v31  ;;  %329 = vmatmul.bf16.vlgmr.msra.gmra.mxu0 %v490_v40  ;;  %v410_v31 = vadd.f32 %v702_v13, %v409_v28 }
  0x22   :  { %348 = vmatmul.bf16.vlgmr.msra.gmra.mxu1 %v494_v41 }
  0x23   :  { %367 = vmatmul.bf16.vlgmr.msra.gmra.mxu2 %v498_v42  ;;  %v412_v34 = vsel %vm411_vm0, %v702_v13, %v410_v31 }
  0x24   :  { %386 = vmatmul.bf16.vlgmr.msra.gmra.mxu3 %v502_v43 }
  0x31   :  { %334 = vmatmul.bf16.gmra.mxu0 %v506_v52 }
  0x32   :  { %353 = vmatmul.bf16.gmra.mxu1 %v510_v53 }
  0x33   :  { %372 = vmatmul.bf16.gmra.mxu2 %v514_v54 }
  0x34   :  { %391 = vmatmul.bf16.gmra.mxu3 %v518_v55 }
  0x9e   :  { %v330_v56 = vpop.f32.mrf.mxu0 }
  0x9f   :  { %v349_v57 = vpop.f32.mrf.mxu1 }
  0xa0   :  { %v350_v2 = vadd.f32 %v349_v57, %v330_v56 }
  0xa6   :  { %v368_v58 = vpop.f32.mrf.mxu2  ;;  %v332_v60 = vpop.f32.mrf.mxu0 }
  0xa7   :  { %v387_v59 = vpop.f32.mrf.mxu3  ;;  %v351_v61 = vpop.f32.mrf.mxu1  ;;  %v369_v9 = vadd.f32 %v368_v58, %v350_v2 }
  0xa8   :  { %v352_v3 = vadd.f32 %v351_v61, %v332_v60 }
  0xa9   :  { %v388_v15 = vadd.f32 %v387_v59, %v369_v9 }
  0xae   :  { %v370_v62 = vpop.f32.mrf.mxu2  ;;  %v335_v0 = vpop.f32.mrf.mxu0 }
  0xaf   :  { %v389_v63 = vpop.f32.mrf.mxu3  ;;  %v354_v1 = vpop.f32.mrf.mxu1  ;;  %v371_v8 = vadd.f32 %v370_v62, %v352_v3  ;;  %v699_v62 = vld [vmem:[%s889_s2] ss:$0 sm:$0xff] }
  0xb0   :  { %v355_v4 = vadd.f32 %v354_v1, %v335_v0 }
  0xb1   :  { %v390_v14 = vadd.f32 %v389_v63, %v371_v8 }
  0xb3   :  { %v397_v20 = vadd.f32 %v390_v14, %v388_v15 }
  0xb6   :  { %v373_v6 = vpop.f32.mrf.mxu2  ;;  %v337_v11 = vpop.f32.mrf.mxu0 }
  0xb7   :  { %v392_v7 = vpop.f32.mrf.mxu3  ;;  %v374_v10 = vadd.f32 %v373_v6, %v355_v4  ;;  %v356_v12 = vpop.f32.mrf.mxu1  ;;  %v700_v4 = vld [vmem:[%s890_s3] ss:$0 sm:$0xff] }
  0xb8   :  { %v357_v17 = vadd.f32 %v356_v12, %v337_v11 }
  0xb9   :  { %v393_v16 = vadd.f32 %v392_v7, %v374_v10 }
  0xbb   :  { %v398_v23 = vadd.f32 %v397_v20, %v393_v16 }
  0xbe   :  { %v375_v18 = vpop.f32.mrf.mxu2 }
  0xbf   :  { %v376_v21 = vadd.f32 %v375_v18, %v357_v17  ;;  %v394_v22 = vpop.f32.mrf.mxu3 }
  0xc1   :  { %v395_v24 = vadd.f32 %v394_v22, %v376_v21 }
  0xc3   :  { %v399_v26 = vadd.f32 %v398_v23, %v395_v24 }
  0xc5   :  { %v400_v27 = vrot.slane %v399_v26, 4 }
  0xc7   :  { %v401_v29 = vadd.f32 %v400_v27, %v399_v26 }
  0xc9   :  { %v402_v30 = vrot.slane %v401_v29, 2 }
  0xcb   :  { %v403_v32 = vadd.f32 %v402_v30, %v401_v29 }
  0xcd   :  { %v404_v33 = vrot.slane %v403_v32, 1 }
  0xcf   :  { %v405_v35 = vadd.f32 %v404_v33, %v403_v32 }
  0xd1   :  { %v413_v36 = vmul.f32 %v412_v34, %v405_v35 }
  0xd3   :  { %v414_v37 = vsub.f32 %v388_v15, %v413_v36  ;;  %v415_v38 = vsub.f32 %v390_v14, %v413_v36  ;;  %v416_v39 = vsub.f32 %v393_v16, %v413_v36  ;;  %v417_v40 = vsub.f32 %v395_v24, %v413_v36 }
  0xd5   :  { %v418_v41 = vmul.f32 %v414_v37, %v414_v37  ;;  %v419_v42 = vmul.f32 %v415_v38, %v415_v38  ;;  %v420_v43 = vmul.f32 %v416_v39, %v416_v39  ;;  %v421_v45 = vmul.f32 %v417_v40, %v417_v40 }
  0xd7   :  { %v422_v44 = vadd.f32 %v419_v42, %v418_v41 }
  0xd9   :  { %v423_v46 = vadd.f32 %v422_v44, %v420_v43 }
  0xdb   :  { %v424_v47 = vadd.f32 %v423_v46, %v421_v45 }
  0xdd   :  { %v425_v48 = vrot.slane %v424_v47, 4 }
  0xdf   :  { %v426_v49 = vadd.f32 %v425_v48, %v424_v47 }
  0xe1   :  { %v427_v50 = vrot.slane %v426_v49, 2 }
  0xe3   :  { %v428_v51 = vadd.f32 %v427_v50, %v426_v49 }
  0xe5   :  { %v429_v52 = vrot.slane %v428_v51, 1 }
  0xe7   :  { %v430_v53 = vadd.f32 %v429_v52, %v428_v51 }
  0xe9   :  { %v431_v54 = vmul.f32 %v430_v53, %v412_v34 }
  0xeb   :  { %v432_v55 = vadd.f32 1e-05, %v431_v54 }
  0xed   :  { %703 = vrsqrt.f32 %v432_v55  ;;  %vm439_vm2 = vweird.f32 %v432_v55 }
  0xf3   :  { %v704_v56 = vpop.eup %703 }
  0xf4   :  { %v434_v57 = vmul.f32 %v704_v56, %v432_v55  ;;  %vm440_vm1 = vweird.f32 %v704_v56 }
  0xf5   :  { %vm441_vm3 = vmor %vm439_vm2, %vm440_vm1 }
  0xf6   :  { %v435_v58 = vmul.f32 %v704_v56, %v434_v57 }
  0xf8   :  { %v436_v59 = vmul.f32 0.5, %v435_v58 }
  0xfa   :  { %v437_v60 = vsub.f32 1.5, %v436_v59 }
  0xfc   :  { %v438_v61 = vmul.f32 %v704_v56, %v437_v60 }
  0xfe   :  { %v442_v63 = vsel %vm441_vm3, %v704_v56, %v438_v61 }
  0xff   :  { %v443_v0 = vmul.f32 %v442_v63, %v414_v37  ;;  %v444_v1 = vmul.f32 %v442_v63, %v415_v38  ;;  %v445_v2 = vmul.f32 %v442_v63, %v416_v39  ;;  %v446_v3 = vmul.f32 %v442_v63, %v417_v40 }
 0x101   :  { %v451_v5 = vmul.f32 %v699_v62, %v443_v0  ;;  %v452_v6 = vmul.f32 %v699_v62, %v444_v1  ;;  %v453_v7 = vmul.f32 %v699_v62, %v445_v2  ;;  %v454_v8 = vmul.f32 %v699_v62, %v446_v3 }
 0x103   :  { %v459_v9 = vadd.f32 %v700_v4, %v451_v5  ;;  %v460_v10 = vadd.f32 %v700_v4, %v452_v6  ;;  %v461_v11 = vadd.f32 %v700_v4, %v453_v7  ;;  %v462_v12 = vadd.f32 %v700_v4, %v454_v8 }
 0x105   :  { %vm463_vm4 = vcmp.gt.f32.partialorder %v459_v9, 0.0  ;;  %vm464_vm5 = vcmp.gt.f32.partialorder %v460_v10, 0.0  ;;  %vm465_vm6 = vcmp.gt.f32.partialorder %v461_v11, 0.0  ;;  %vm466_vm7 = vcmp.gt.f32.partialorder %v462_v12, 0.0 }
 0x106   :  { %v467_v13 = vmul.f32 0.2, %v459_v9  ;;  %v468_v14 = vmul.f32 0.2, %v460_v10  ;;  %v469_v15 = vmul.f32 0.2, %v461_v11 }
 0x107   :  { %v470_v16 = vmul.f32 0.2, %v462_v12 }
 0x108   :  { %v471_v17 = vsel %vm463_vm4, %v459_v9, %v467_v13  ;;  %v472_v18 = vsel %vm464_vm5, %v460_v10, %v468_v14  ;;  %v473_v19 = vsel %vm465_vm6, %v461_v11, %v469_v15 }
 0x109   :  { %v474_v20 = vsel %vm466_vm7, %v462_v12, %v470_v16  ;;  %v690_v21 = vpack.c.bf16 %v472_v18, %v471_v17 }
 0x10a   :  { %v695_v22 = vpack.c.bf16 %v474_v20, %v473_v19 }
 0x10b   :  { %691 = vst [vmem:[%s891_s4] sm:$0xff] %v690_v21  }
 0x10c   :  { %697 = vst [vmem:[%s891_s4 + $0x8] sm:$0xff] %v695_v22  }

// kernel: netlocalD_forward.9
= control target key start
LH: loop header
LB: loop body
LE: loop exit
PB: predicated region body
PF: predicated region fallthrough
CT: control target
= control target key end

     0   :  { %s1211_s1 = inlined_call_operand.vmem [shape: bf16[1024,128], index: 1, kind: input, shape index: {}]   ;;  %s1212_s0 = inlined_call_operand.vmem [shape: bf16[2,1024], index: 0, kind: input, shape index: {}]   ;;  %s1213_s2 = inlined_call_operand.vmem [shape: f32[2,128], index: 2, kind: output, shape index: {}]  }
   0x1   :  { %v937_v0 = vld [vmem:[%s1211_s1 + $0x38] sm:$0xff]  ;;  %v936_v4 = vld [vmem:[%s1211_s1 + $0x30] sm:$0xff]  ;;  %v935_v8 = vld [vmem:[%s1211_s1 + $0x28] sm:$0xff] }
   0x2   :  { %v945_v1 = vld [vmem:[%s1211_s1 + $0x78] sm:$0xff]  ;;  %542 = vmatpush.bf16.msra.mxu0 %v937_v0  ;;  %v944_v5 = vld [vmem:[%s1211_s1 + $0x70] sm:$0xff]  ;;  %v943_v9 = vld [vmem:[%s1211_s1 + $0x68] sm:$0xff] }
   0x3   :  { %v953_v2 = vld [vmem:[%s1211_s1 + $0xb8] sm:$0xff]  ;;  %555 = vmatpush.bf16.msra.mxu1 %v945_v1  ;;  %v952_v6 = vld [vmem:[%s1211_s1 + $0xb0] sm:$0xff]  ;;  %v951_v10 = vld [vmem:[%s1211_s1 + $0xa8] sm:$0xff] }
   0x4   :  { %v961_v3 = vld [vmem:[%s1211_s1 + $0xf8] sm:$0xff]  ;;  %568 = vmatpush.bf16.msra.mxu2 %v953_v2  ;;  %v960_v7 = vld [vmem:[%s1211_s1 + $0xf0] sm:$0xff]  ;;  %v959_v11 = vld [vmem:[%s1211_s1 + $0xe8] sm:$0xff] }
   0x5   :  { %581 = vmatpush.bf16.msra.mxu3 %v961_v3  ;;  %v934_v12 = vld [vmem:[%s1211_s1 + $0x20] sm:$0xff]  ;;  %v933_v17 = vld [vmem:[%s1211_s1 + $0x18] sm:$0xff]  ;;  %v932_v21 = vld [vmem:[%s1211_s1 + $0x10] sm:$0xff] }
   0x6   :  { %543 = vmatpush.bf16.msra.mxu0 %v936_v4  ;;  %v942_v13 = vld [vmem:[%s1211_s1 + $0x60] sm:$0xff]  ;;  %v941_v18 = vld [vmem:[%s1211_s1 + $0x58] sm:$0xff]  ;;  %v940_v22 = vld [vmem:[%s1211_s1 + $0x50] sm:$0xff] }
   0x7   :  { %556 = vmatpush.bf16.msra.mxu1 %v944_v5  ;;  %v950_v14 = vld [vmem:[%s1211_s1 + $0xa0] sm:$0xff]  ;;  %v949_v19 = vld [vmem:[%s1211_s1 + $0x98] sm:$0xff]  ;;  %v948_v23 = vld [vmem:[%s1211_s1 + $0x90] sm:$0xff] }
   0x8   :  { %569 = vmatpush.bf16.msra.mxu2 %v952_v6  ;;  %v958_v15 = vld [vmem:[%s1211_s1 + $0xe0] sm:$0xff]  ;;  %v957_v20 = vld [vmem:[%s1211_s1 + $0xd8] sm:$0xff]  ;;  %v956_v24 = vld [vmem:[%s1211_s1 + $0xd0] sm:$0xff] }
   0x9   :  { %582 = vmatpush.bf16.msra.mxu3 %v960_v7  ;;  %v11_v16 = vld [vmem:[%s1212_s0] sm:$0xff]  ;;  %v931_v25 = vld [vmem:[%s1211_s1 + $0x8] sm:$0xff]  ;;  %v969_v33 = vld [vmem:[%s1211_s1 + $0x138] sm:$0xff] }
   0xa   :  { %544 = vmatpush.bf16.msra.mxu0 %v935_v8  ;;  %141 = vst [vmem:[#allocation1] ss:$9 sm:$0xff] %v11_v16  ;;  %v939_v26 = vld [vmem:[%s1211_s1 + $0x48] sm:$0xff]  ;;  %v930_v29 = vld [vmem:[%s1211_s1] sm:$0xff]  ;;  %v977_v34 = vld [vmem:[%s1211_s1 + $0x178] sm:$0xff] }
   0xb   :  { %557 = vmatpush.bf16.msra.mxu1 %v943_v9  ;;  %v947_v27 = vld [vmem:[%s1211_s1 + $0x88] sm:$0xff]  ;;  %v938_v30 = vld [vmem:[%s1211_s1 + $0x40] sm:$0xff]  ;;  %v985_v35 = vld [vmem:[%s1211_s1 + $0x1b8] sm:$0xff] }
   0xc   :  { %570 = vmatpush.bf16.msra.mxu2 %v951_v10  ;;  %v955_v28 = vld [vmem:[%s1211_s1 + $0xc8] sm:$0xff]  ;;  %v946_v31 = vld [vmem:[%s1211_s1 + $0x80] sm:$0xff]  ;;  %v993_v36 = vld [vmem:[%s1211_s1 + $0x1f8] sm:$0xff] }
   0xd   :  { %583 = vmatpush.bf16.msra.mxu3 %v959_v11  ;;  %v954_v32 = vld [vmem:[%s1211_s1 + $0xc0] sm:$0xff]  ;;  %v968_v37 = vld [vmem:[%s1211_s1 + $0x130] sm:$0xff]  ;;  %v967_v45 = vld [vmem:[%s1211_s1 + $0x128] sm:$0xff] }
   0xe   :  { %545 = vmatpush.bf16.msra.mxu0 %v934_v12  ;;  %v976_v40 = vld [vmem:[%s1211_s1 + $0x170] sm:$0xff]  ;;  %v975_v46 = vld [vmem:[%s1211_s1 + $0x168] sm:$0xff]  ;;  %v966_v49 = vld [vmem:[%s1211_s1 + $0x120] sm:$0xff] }
   0xf   :  { %558 = vmatpush.bf16.msra.mxu1 %v942_v13  ;;  %v984_v43 = vld [vmem:[%s1211_s1 + $0x1b0] sm:$0xff]  ;;  %v983_v47 = vld [vmem:[%s1211_s1 + $0x1a8] sm:$0xff]  ;;  %v974_v50 = vld [vmem:[%s1211_s1 + $0x160] sm:$0xff] }
  0x10   :  { %571 = vmatpush.bf16.msra.mxu2 %v950_v14  ;;  %v992_v44 = vld [vmem:[%s1211_s1 + $0x1f0] sm:$0xff]  ;;  %v991_v48 = vld [vmem:[%s1211_s1 + $0x1e8] sm:$0xff]  ;;  %v982_v51 = vld [vmem:[%s1211_s1 + $0x1a0] sm:$0xff] }
  0x11   :  { %584 = vmatpush.bf16.msra.mxu3 %v958_v15  ;;  %v144_v38 = vld [vmem:[#allocation1 + $0x12] sm:$0xff]  ;;  %v142_v39 = vld [vmem:[#allocation1] sm:$0xff]  ;;  %v143_v42 = vld [vmem:[#allocation1 + $0x9] sm:$0xff] }
  0x12   :  { %546 = vmatpush.bf16.msra.mxu0 %v933_v17  ;;  %v145_v41 = vld [vmem:[#allocation1 + $0x1b] sm:$0xff]  ;;  %v964_v57 = vld [vmem:[%s1211_s1 + $0x110] sm:$0xff]  ;;  %v963_v61 = vld [vmem:[%s1211_s1 + $0x108] sm:$0xff] }
  0x13   :  { %559 = vmatpush.bf16.msra.mxu1 %v941_v18  ;;  %v990_v52 = vld [vmem:[%s1211_s1 + $0x1e0] sm:$0xff]  ;;  %v965_v53 = vld [vmem:[%s1211_s1 + $0x118] sm:$0xff]  ;;  %v972_v58 = vld [vmem:[%s1211_s1 + $0x150] sm:$0xff] }
  0x14   :  { %572 = vmatpush.bf16.msra.mxu2 %v949_v19  ;;  %v973_v54 = vld [vmem:[%s1211_s1 + $0x158] sm:$0xff]  ;;  %v980_v59 = vld [vmem:[%s1211_s1 + $0x190] sm:$0xff]  ;;  %v971_v62 = vld [vmem:[%s1211_s1 + $0x148] sm:$0xff] }
  0x15   :  { %585 = vmatpush.bf16.msra.mxu3 %v957_v20  ;;  %v981_v55 = vld [vmem:[%s1211_s1 + $0x198] sm:$0xff]  ;;  %v988_v60 = vld [vmem:[%s1211_s1 + $0x1d0] sm:$0xff]  ;;  %v979_v63 = vld [vmem:[%s1211_s1 + $0x188] sm:$0xff] }
  0x16   :  { %547 = vmatpush.bf16.msra.mxu0 %v932_v21  ;;  %v989_v56 = vld [vmem:[%s1211_s1 + $0x1d8] sm:$0xff]  ;;  %v987_v0 = vld [vmem:[%s1211_s1 + $0x1c8] sm:$0xff]  ;;  %v962_v1 = vld [vmem:[%s1211_s1 + $0x100] sm:$0xff] }
  0x17   :  { %560 = vmatpush.bf16.msra.mxu1 %v940_v22  ;;  %v970_v2 = vld [vmem:[%s1211_s1 + $0x140] sm:$0xff]  ;;  %v147_v6 = vld [vmem:[#allocation1 + $0x2d] sm:$0xff]  ;;  %v148_v7 = vld [vmem:[#allocation1 + $0x36] sm:$0xff] }
  0x18   :  { %573 = vmatpush.bf16.msra.mxu2 %v948_v23  ;;  %v978_v3 = vld [vmem:[%s1211_s1 + $0x180] sm:$0xff] }
  0x19   :  { %586 = vmatpush.bf16.msra.mxu3 %v956_v24  ;;  %v986_v4 = vld [vmem:[%s1211_s1 + $0x1c0] sm:$0xff] }
  0x1a   :  { %548 = vmatpush.bf16.msra.mxu0 %v931_v25  ;;  %v146_v5 = vld [vmem:[#allocation1 + $0x24] sm:$0xff] }
  0x1b   :  { %561 = vmatpush.bf16.msra.mxu1 %v939_v26  ;;  %v149_v8 = vld [vmem:[#allocation1 + $0x3f] sm:$0xff] }
  0x1c   :  { %574 = vmatpush.bf16.msra.mxu2 %v947_v27 }
  0x1d   :  { %587 = vmatpush.bf16.msra.mxu3 %v955_v28 }
  0x1e   :  { %549 = vmatpush.bf16.msra.mxu0 %v930_v29 }
  0x1f   :  { %562 = vmatpush.bf16.msra.mxu1 %v938_v30 }
  0x20   :  { %575 = vmatpush.bf16.msra.mxu2 %v946_v31 }
  0x21   :  { %588 = vmatpush.bf16.msra.mxu3 %v954_v32  ;;  %550 = vmatmul.bf16.vlgmr.msra.gmra.mxu0 %v142_v39 }
  0x22   :  { %594 = vmatpush.bf16.msrb.mxu0 %v969_v33  ;;  %563 = vmatmul.bf16.vlgmr.msra.gmra.mxu1 %v143_v42 }
  0x23   :  { %607 = vmatpush.bf16.msrb.mxu1 %v977_v34  ;;  %576 = vmatmul.bf16.vlgmr.msra.gmra.mxu2 %v144_v38 }
  0x24   :  { %620 = vmatpush.bf16.msrb.mxu2 %v985_v35  ;;  %589 = vmatmul.bf16.vlgmr.msra.gmra.mxu3 %v145_v41 }
  0x25   :  { %633 = vmatpush.bf16.msrb.mxu3 %v993_v36 }
  0x26   :  { %595 = vmatpush.bf16.msrb.mxu0 %v968_v37 }
  0x27   :  { %608 = vmatpush.bf16.msrb.mxu1 %v976_v40 }
  0x28   :  { %621 = vmatpush.bf16.msrb.mxu2 %v984_v43 }
  0x29   :  { %634 = vmatpush.bf16.msrb.mxu3 %v992_v44 }
  0x2a   :  { %596 = vmatpush.bf16.msrb.mxu0 %v967_v45 }
  0x2b   :  { %609 = vmatpush.bf16.msrb.mxu1 %v975_v46 }
  0x2c   :  { %622 = vmatpush.bf16.msrb.mxu2 %v983_v47 }
  0x2d   :  { %635 = vmatpush.bf16.msrb.mxu3 %v991_v48 }
  0x2e   :  { %597 = vmatpush.bf16.msrb.mxu0 %v966_v49 }
  0x2f   :  { %610 = vmatpush.bf16.msrb.mxu1 %v974_v50 }
  0x30   :  { %623 = vmatpush.bf16.msrb.mxu2 %v982_v51 }
  0x31   :  { %636 = vmatpush.bf16.msrb.mxu3 %v990_v52 }
  0x32   :  { %598 = vmatpush.bf16.msrb.mxu0 %v965_v53 }
  0x33   :  { %611 = vmatpush.bf16.msrb.mxu1 %v973_v54 }
  0x34   :  { %624 = vmatpush.bf16.msrb.mxu2 %v981_v55 }
  0x35   :  { %637 = vmatpush.bf16.msrb.mxu3 %v989_v56 }
  0x36   :  { %599 = vmatpush.bf16.msrb.mxu0 %v964_v57 }
  0x37   :  { %612 = vmatpush.bf16.msrb.mxu1 %v972_v58 }
  0x38   :  { %625 = vmatpush.bf16.msrb.mxu2 %v980_v59 }
  0x39   :  { %638 = vmatpush.bf16.msrb.mxu3 %v988_v60 }
  0x3a   :  { %600 = vmatpush.bf16.msrb.mxu0 %v963_v61 }
  0x3b   :  { %613 = vmatpush.bf16.msrb.mxu1 %v971_v62 }
  0x3c   :  { %626 = vmatpush.bf16.msrb.mxu2 %v979_v63 }
  0x3d   :  { %639 = vmatpush.bf16.msrb.mxu3 %v987_v0 }
  0x3e   :  { %601 = vmatpush.bf16.msrb.mxu0 %v962_v1 }
  0x3f   :  { %614 = vmatpush.bf16.msrb.mxu1 %v970_v2 }
  0x40   :  { %627 = vmatpush.bf16.msrb.mxu2 %v978_v3 }
  0x41   :  { %640 = vmatpush.bf16.msrb.mxu3 %v986_v4  ;;  %602 = vmatmul.bf16.vlgmr.msrb.gmra.mxu0 %v146_v5 }
  0x42   :  { %615 = vmatmul.bf16.vlgmr.msrb.gmra.mxu1 %v147_v6 }
  0x43   :  { %628 = vmatmul.bf16.vlgmr.msrb.gmra.mxu2 %v148_v7 }
  0x44   :  { %641 = vmatmul.bf16.vlgmr.msrb.gmra.mxu3 %v149_v8 }
  0x9e   :  { %v551_v9 = vpop.f32.mrf.mxu0 }
  0x9f   :  { %v564_v10 = vpop.f32.mrf.mxu1 }
  0xa0   :  { %v565_v17 = vadd.f32 %v564_v10, %v551_v9 }
  0xa6   :  { %v577_v11 = vpop.f32.mrf.mxu2  ;;  %v553_v13 = vpop.f32.mrf.mxu0 }
  0xa7   :  { %v590_v12 = vpop.f32.mrf.mxu3  ;;  %v566_v14 = vpop.f32.mrf.mxu1  ;;  %v578_v18 = vadd.f32 %v577_v11, %v565_v17 }
  0xa9   :  { %v591_v19 = vadd.f32 %v590_v12, %v578_v18 }
  0xae   :  { %v579_v15 = vpop.f32.mrf.mxu2 }
  0xaf   :  { %v592_v16 = vpop.f32.mrf.mxu3 }
  0xbe   :  { %v603_v20 = vpop.f32.mrf.mxu0 }
  0xbf   :  { %v616_v21 = vpop.f32.mrf.mxu1  ;;  %v604_v22 = vadd.f32 %v603_v20, %v591_v19 }
  0xc1   :  { %v617_v23 = vadd.f32 %v616_v21, %v604_v22 }
  0xc6   :  { %v629_v24 = vpop.f32.mrf.mxu2  ;;  %v605_v27 = vpop.f32.mrf.mxu0 }
  0xc7   :  { %v642_v25 = vpop.f32.mrf.mxu3  ;;  %v630_v26 = vadd.f32 %v629_v24, %v617_v23  ;;  %v618_v28 = vpop.f32.mrf.mxu1 }
  0xc9   :  { %v643_v29 = vadd.f32 %v642_v25, %v630_v26 }
  0xcb   :  { %v646_v30 = vand.u32 2147483647, %v643_v29  ;;  %vm650_vm4 = vcmp.ge.f32.partialorder %v643_v29, 0.0 }
  0xcd   :  { %v647_v31 = vsub.f32 0.0, %v646_v30 }
  0xce   :  { %v631_v32 = vpop.f32.mrf.mxu2 }
  0xcf   :  { %v644_v33 = vpop.f32.mrf.mxu3  ;;  %v648_v34 = vmul.f32 1.442695, %v647_v31 }
  0xd1   :  { %994 = vpow2.f32 %v648_v34 }
  0xd7   :  { %v995_v35 = vpop.eup %994 }
  0xd8   :  { %v651_v36 = vadd.f32 1.0, %v995_v35 }
  0xda   :  { %996 = vrcp.f32 %v651_v36  ;;  %v663_v40 = vand.u32 2147483648, %v651_v36  ;;  %v661_v42 = vand.u32 2147483647, %v651_v36  ;;  %vm657_vm1 = vweird.f32 %v651_v36 }
  0xdc   :  { %v664_v44 = vor.u32 1.1754944e-38, %v663_v40  ;;  %vm662_vm3 = vcmp.eq.f32.partialorder %v661_v42, 8.507059e+37 }
  0xe0   :  { %v997_v37 = vpop.eup %996 }
  0xe1   :  { %v653_v38 = vmul.f32 %v997_v37, %v651_v36  ;;  %vm658_vm0 = vweird.f32 %v997_v37 }
  0xe2   :  { %vm659_vm2 = vmor %vm657_vm1, %vm658_vm0 }
  0xe3   :  { %v654_v39 = vsub.f32 1.0, %v653_v38 }
  0xe5   :  { %v655_v41 = vmul.f32 %v997_v37, %v654_v39 }
  0xe7   :  { %v656_v43 = vadd.f32 %v997_v37, %v655_v41 }
  0xe9   :  { %v660_v45 = vsel %vm659_vm2, %v997_v37, %v656_v43 }
  0xea   :  { %v665_v46 = vsel %vm662_vm3, %v664_v44, %v660_v45 }
  0xeb   :  { %v667_v47 = vmul.f32 %v995_v35, %v665_v46 }
  0xed   :  { %v668_v48 = vsel %vm650_vm4, %v665_v46, %v667_v47 }
  0xee   :  { %669 = vst [vmem:[%s1213_s2] sm:$0x3] %v668_v48 }

</bundles_post_ra>
